<compile_context>
chip_gen: v7x
topology: tpu7x:2x2x1
jax: 0.10.0
libtpu: 0.0.40
codegen_flags: <defaults>
</compile_context>

<pallas_src>
import functools
import numpy as np

import jax
import jax.numpy as jnp
from jax import lax
from jax.experimental import pallas as pl
from jax.experimental.pallas import tpu as pltpu

_BN_EPS = 1e-5
_LN_EPS = 1e-5


# ----------------------------------------------------------------------------
# In-kernel helpers
# ----------------------------------------------------------------------------
def _elu(v):
    # ELU(alpha=1): v > 0 ? v : exp(v) - 1
    return jnp.where(v > 0, v, jnp.exp(jnp.minimum(v, 0.0)) - 1.0)


def _layernorm(v, g, b, eps=_LN_EPS):
    mu = jnp.mean(v, axis=-1, keepdims=True)
    var = jnp.mean(jnp.square(v - mu), axis=-1, keepdims=True)
    return (v - mu) * lax.rsqrt(var + eps) * g + b


def _lstm_gate(g, H, c_prev):
    # g: (rows, 4H) pre-activations, gate columns packed as [i, f, o, g]
    sig = jax.nn.sigmoid(g[:, :3 * H])
    i_g = sig[:, :H]
    f_g = sig[:, H:2 * H]
    o_g = sig[:, 2 * H:3 * H]
    c_hat = jnp.tanh(g[:, 3 * H:])
    c = i_g * c_hat if c_prev is None else f_g * c_prev + i_g * c_hat
    h = o_g * jnp.tanh(c)
    return h, c


# ----------------------------------------------------------------------------
# Single fused kernel:
#   joint CNN encoders (block-diag weights) -> biLSTM (2 layers) -> classifier
# ----------------------------------------------------------------------------
def _fused_kernel(B, T, H,
                  x_ref, w1_ref, w2_ref, w3_ref, w4_ref, st_ref, pool_ref,
                  wih1_ref, whh1w_ref, b1_ref, wih2_ref, whh2f_ref, b2_ref,
                  cw1_ref, cw2_ref, cw3_ref, cvec_ref,
                  o_ref,
                  halo_ref, gstack_ref, h1_ref):
    dot = functools.partial(jnp.dot, preferred_element_type=jnp.float32)

    # ---- CNN encoders: 4x (Conv1d(k=3,p=1) + folded BN + ELU + AvgPool(2)) -------
    # Activations are channels-last with batch-folded, l-major rows (row = l*B + b)
    # and BOTH modalities side by side along lanes ([emg | eeg]); conv weights are
    # block-diagonal so one matmul serves both encoders at once.
    h = x_ref[...]                                            # (L*B, Ce+Cg)
    for k, w_ref in enumerate((w1_ref, w2_ref, w3_ref, w4_ref)):
        M, Cin = h.shape
        Cout = w_ref.shape[-1]                                # joint output channels
        Mo = M // 2

        # Conv padding=1 neighbours via a zero-halo scratch (static-offset VMEM
        # stores/loads only; no (M,M) shift matmuls, no per-block iota masks).
        zer = jnp.zeros((B, Cin), jnp.float32)
        halo_ref[0:B, 0:Cin] = zer
        halo_ref[B + M:2 * B + M, 0:Cin] = zer
        halo_ref[B:B + M, 0:Cin] = h
        h_m1 = halo_ref[0:M, 0:Cin]                           # x[l-1]; zeros at l=0
        h_p1 = halo_ref[2 * B:2 * B + M, 0:Cin]               # x[l+1]; zeros at l=L-1

        y = dot(h, w_ref[1]) + dot(h_m1, w_ref[0]) + dot(h_p1, w_ref[2])
        st = st_ref[k]                                        # (2, Cmax): scale, shift
        y = _elu(y * st[0:1, :Cout] + st[1:2, :Cout])         # folded BN (+bias) + ELU

        # AvgPool1d(2): host-precomputed 0.5-valued selection matrix, MXU matmul.
        h = dot(pool_ref[k][:Mo, :M], y)                      # (M//2, Cout)

    feats = h                                                 # (T*B, 2*C4), [emg|eeg]

    # ---- LSTM layer 1 (bidirectional): hoisted projection + fused fwd/bwd loop ----
    gx1 = dot(feats, wih1_ref[...])                           # (T*B, 8H)
    gx1f = gx1[:, :4 * H] + b1_ref[0:1, :]                    # forward pre-activations
    gx1b = gx1[:, 4 * H:] + b1_ref[1:2, :]                    # backward pre-activations

    # Per-step stacked gate inputs: rows [2sB : 2sB+B] = fwd t=s,
    # rows [2sB+B : 2(s+1)B] = bwd t=T-1-s.  Built once, off the serial chain.
    for s in range(T):
        gstack_ref[2 * s * B:(2 * s + 1) * B, :] = gx1f[s * B:(s + 1) * B, :]
        gstack_ref[(2 * s + 1) * B:2 * (s + 1) * B, :] = \
            gx1b[(T - 1 - s) * B:(T - s) * B, :]

    whh1w = whh1w_ref[...]                                    # (H, 8H) = [Whh_f | Whh_b]
    rowsel = lax.broadcasted_iota(jnp.int32, (2 * B, 1), 0) < B   # True = forward rows

    h_st = c_st = None
    for s in range(T):                                        # T fused serial steps
        g = gstack_ref[2 * s * B:2 * (s + 1) * B, :]          # (2B, 4H)
        if h_st is not None:
            r = dot(h_st, whh1w)                              # (2B, 8H)
            g = g + jnp.where(rowsel, r[:, :4 * H], r[:, 4 * H:])
        h_st, c_st = _lstm_gate(g, H, c_st)
        tf, tb = s, T - 1 - s
        h1_ref[tf * B:(tf + 1) * B, 0:H] = h_st[:B, :]        # layer-1 fwd h(t)
        h1_ref[tb * B:(tb + 1) * B, H:2 * H] = h_st[B:, :]    # layer-1 bwd h(t)

    h1_seq = h1_ref[...]                                      # (T*B, 2H), lane-dense

    # ---- LSTM layer 2: the classifier only consumes t = T-1 -----------------------
    gx2 = dot(h1_seq, wih2_ref[...])                          # (T*B, 8H)
    gx2f = gx2[:, :4 * H] + b2_ref[0:1, :]
    gx2b_last = gx2[(T - 1) * B:, 4 * H:] + b2_ref[1:2, :]    # bwd dir, first step only

    # Forward step t=0 and the single required backward step share one gate call
    # (both start from zero state, so no recurrent matmul).
    gstack_ref[0:B, :] = gx2f[:B, :]
    gstack_ref[B:2 * B, :] = gx2b_last
    h0, c0 = _lstm_gate(gstack_ref[0:2 * B, :], H, None)
    h2f, c2f = h0[:B, :], c0[:B, :]
    h2b = h0[B:, :]                                           # == lstm_out[:, T-1, H:]

    whh2f = whh2f_ref[...]
    for t in range(1, T):                                     # remaining forward steps
        g = gx2f[t * B:(t + 1) * B, :] + dot(h2f, whh2f)
        h2f, c2f = _lstm_gate(g, H, c2f)

    # ---- classifier: Linear -> LN -> ELU -> Linear -> LN -> ELU -> Linear ---------
    # cat([h2f, h2b]) @ W1 realized by splitting W1 rows (no in-kernel concat).
    d1 = cw1_ref.shape[1]
    d2 = cw2_ref.shape[1]
    ncls = cw3_ref.shape[1]
    cv = cvec_ref[...]
    y = dot(h2f, cw1_ref[0:H, :]) + dot(h2b, cw1_ref[H:2 * H, :]) + cv[0:1, :d1]
    y = _elu(_layernorm(y, cv[1:2, :d1], cv[2:3, :d1]))
    y = dot(y, cw2_ref[...]) + cv[3:4, :d2]
    y = _elu(_layernorm(y, cv[4:5, :d2], cv[5:6, :d2]))
    o_ref[...] = dot(y, cw3_ref[...]) + cv[6:7, :ncls]


# ----------------------------------------------------------------------------
# Host-side packing + the single pallas_call
# ----------------------------------------------------------------------------
def _build_pool_matrices(L, B, n_blocks):
    """pools[k]: AvgPool1d(2) selection matrix (0.5 taps) for CNN block k, acting on
    l-major batch-folded rows; zero-padded to the block-0 size so all blocks share
    one stacked operand."""
    M0 = L * B
    pools = np.zeros((n_blocks, M0 // 2, M0), np.float32)
    M = M0
    for k in range(n_blocks):
        Mo = M // 2
        for i in range(Mo):
            l, b = divmod(i, B)
            pools[k, i, (2 * l) * B + b] = 0.5
            pools[k, i, (2 * l + 1) * B + b] = 0.5
        M = Mo
    return jnp.asarray(pools)


def forward(emg, eeg, params):
    B, Ce, L = emg.shape
    _, Cg, _ = eeg.shape
    emg_enc, eeg_enc = params["emg_enc"], params["eeg_enc"]
    n_blocks = len(emg_enc)
    assert n_blocks == 4, "CNNEncoder has 4 blocks"
    T = L // (2 ** n_blocks)
    C4 = emg_enc[-1]["w"].shape[0]
    H = params["lstm"][0]["fwd"]["w_hh"].shape[1]
    num_classes = params["cls"]["w3"].shape[1]
    f32 = jnp.float32

    # ---- joint l-major channels-last input: row = l*B + b, lanes = [emg | eeg] ----
    def prep_x(x):
        b_, c_, l_ = x.shape
        return jnp.transpose(x, (2, 0, 1)).reshape(l_ * b_, c_).astype(f32)

    x_both = jnp.concatenate([prep_x(emg), prep_x(eeg)], axis=1)

    # ---- block-diagonal conv taps + folded BN scale/shift (running stats) ---------
    def block_w(be, bg):
        we = jnp.transpose(be["w"], (2, 1, 0)).astype(f32)        # (3, Cin, Cout)
        wg = jnp.transpose(bg["w"], (2, 1, 0)).astype(f32)
        cin_e, cout = we.shape[1], we.shape[2]
        cin_g = wg.shape[1]
        top = jnp.concatenate([we, jnp.zeros((3, cin_e, cout), f32)], axis=2)
        bot = jnp.concatenate([jnp.zeros((3, cin_g, cout), f32), wg], axis=2)
        return jnp.concatenate([top, bot], axis=1)                # (3, Cin_e+Cin_g, 2*Cout)

    def block_st(be, bg, pad_to):
        def fold(blk):
            s = blk["gamma"] * lax.rsqrt(blk["rvar"] + _BN_EPS)
            t = (blk["b"] - blk["rmean"]) * s + blk["beta"]
            return s, t
        se, te = fold(be)
        sg, tg = fold(bg)
        st = jnp.stack([jnp.concatenate([se, sg]), jnp.concatenate([te, tg])], axis=0)
        return jnp.pad(st, ((0, 0), (0, pad_to - st.shape[1]))).astype(f32)

    conv_w = [block_w(emg_enc[k], eeg_enc[k]) for k in range(n_blocks)]
    conv_st = jnp.stack([block_st(emg_enc[k], eeg_enc[k], 2 * C4)
                         for k in range(n_blocks)], axis=0)        # (4, 2, 2*C4)
    pools = _build_pool_matrices(L, B, n_blocks)                   # (4, L*B//2, L*B)
    halo_cols = max(int(w.shape[1]) for w in conv_w)

    # ---- LSTM weights: gate order [i, f, o, g]; fwd/bwd packed together ------------
    def reorder(w):
        return jnp.concatenate([w[:2 * H], w[3 * H:4 * H], w[2 * H:3 * H]], axis=0)

    def prep_dir(p):
        wih = jnp.transpose(reorder(p["w_ih"])).astype(f32)        # (Din, 4H)
        whh = jnp.transpose(reorder(p["w_hh"])).astype(f32)        # (H, 4H)
        b = reorder(p["b_ih"] + p["b_hh"]).reshape(1, 4 * H).astype(f32)
        return wih, whh, b

    wih1f, whh1f, b1f = prep_dir(params["lstm"][0]["fwd"])
    wih1b, whh1b, b1b = prep_dir(params["lstm"][0]["bwd"])
    wih2f, whh2f, b2f = prep_dir(params["lstm"][1]["fwd"])
    wih2b, _unused, b2b = prep_dir(params["lstm"][1]["bwd"])

    wih1 = jnp.concatenate([wih1f, wih1b], axis=1)                 # (2*C4, 8H)
    whh1w = jnp.concatenate([whh1f, whh1b], axis=1)                # (H, 8H)
    b1 = jnp.concatenate([b1f, b1b], axis=0)                       # (2, 4H)
    wih2 = jnp.concatenate([wih2f, wih2b], axis=1)                 # (2H, 8H)
    b2 = jnp.concatenate([b2f, b2b], axis=0)                       # (2, 4H)

    # ---- classifier weights; all bias / LayerNorm vectors packed into one array ----
    c = params["cls"]
    d1, d2 = c["w1"].shape[1], c["w2"].shape[1]
    dmax = max(d1, d2, num_classes)

    def padv(v):
        v = v.reshape(-1).astype(f32)
        return jnp.pad(v, (0, dmax - v.shape[0]))

    cvec = jnp.stack([padv(c["b1"]), padv(c["g1"]), padv(c["be1"]),
                      padv(c["b2"]), padv(c["g2"]), padv(c["be2"]),
                      padv(c["b3"])], axis=0)                      # (7, dmax)

    kernel = functools.partial(_fused_kernel, B, T, H)
    return pl.pallas_call(
        kernel,
        out_shape=jax.ShapeDtypeStruct((B, num_classes), f32),
        scratch_shapes=[
            pltpu.VMEM((L * B + 2 * B, halo_cols), f32),   # conv zero-halo buffer
            pltpu.VMEM((2 * T * B, 4 * H), f32),           # stacked fwd/bwd gate inputs
            pltpu.VMEM((T * B, 2 * H), f32),               # layer-1 [h_fwd | h_bwd] seq
        ],
    )(x_both, *conv_w, conv_st, pools,
      wih1, whh1w, b1, wih2, whh2f, b2,
      c["w1"].astype(f32), c["w2"].astype(f32), c["w3"].astype(f32), cvec)


# ----------------------------------------------------------------------------
# Deterministic parameter initialization (synthetic, PyTorch layouts)
# ----------------------------------------------------------------------------
def init_cnn_block(key, c_in, c_out):
    k = jax.random.split(key, 6)
    return dict(
        w=jax.random.normal(k[0], (c_out, c_in, 3), jnp.float32) / np.sqrt(3 * c_in),
        b=0.1 * jax.random.normal(k[1], (c_out,), jnp.float32),
        gamma=1.0 + 0.1 * jax.random.normal(k[2], (c_out,), jnp.float32),
        beta=0.1 * jax.random.normal(k[3], (c_out,), jnp.float32),
        rmean=0.1 * jax.random.normal(k[4], (c_out,), jnp.float32),
        rvar=1.0 + 0.5 * jax.random.uniform(k[5], (c_out,), jnp.float32),
    )


def init_params(key, emg_channels, eeg_channels, hidden_dim, num_classes):
    keys = iter(jax.random.split(key, 32))

    def encoder(c_in):
        chans = [c_in, hidden_dim, hidden_dim * 2, hidden_dim * 4, hidden_dim * 8]
        return [init_cnn_block(next(keys), chans[i], chans[i + 1]) for i in range(4)]

    emg_enc = encoder(emg_channels)
    eeg_enc = encoder(eeg_channels)

    H = hidden_dim * 4
    lstm_layers = []
    d_in = hidden_dim * 8 * 2
    for _ in range(2):
        layer_p = {}
        for dname in ("fwd", "bwd"):
            k = jax.random.split(next(keys), 4)
            scale = 1.0 / np.sqrt(H)
            layer_p[dname] = dict(
                w_ih=scale * jax.random.normal(k[0], (4 * H, d_in), jnp.float32),
                w_hh=scale * jax.random.normal(k[1], (4 * H, H), jnp.float32),
                b_ih=scale * jax.random.normal(k[2], (4 * H,), jnp.float32),
                b_hh=scale * jax.random.normal(k[3], (4 * H,), jnp.float32),
            )
        lstm_layers.append(layer_p)
        d_in = 2 * H

    d0, d1, d2 = hidden_dim * 8, hidden_dim * 4, hidden_dim * 2
    k = jax.random.split(next(keys), 10)
    cls = dict(
        w1=jax.random.normal(k[0], (d0, d1), jnp.float32) / np.sqrt(d0),
        b1=0.1 * jax.random.normal(k[1], (1, d1), jnp.float32),
        g1=1.0 + 0.1 * jax.random.normal(k[2], (1, d1), jnp.float32),
        be1=0.1 * jax.random.normal(k[3], (1, d1), jnp.float32),
        w2=jax.random.normal(k[4], (d1, d2), jnp.float32) / np.sqrt(d1),
        b2=0.1 * jax.random.normal(k[5], (1, d2), jnp.float32),
        g2=1.0 + 0.1 * jax.random.normal(k[6], (1, d2), jnp.float32),
        be2=0.1 * jax.random.normal(k[7], (1, d2), jnp.float32),
        w3=jax.random.normal(k[8], (d2, num_classes), jnp.float32) / np.sqrt(d2),
        b3=0.1 * jax.random.normal(k[9], (1, num_classes), jnp.float32),
    )
    return dict(emg_enc=emg_enc, eeg_enc=eeg_enc, lstm=lstm_layers, cls=cls)


if __name__ == "__main__":
    B = 2
    EMG_CH, EEG_CH = 4, 4
    HIDDEN_DIM = 16
    NUM_CLASSES = 8
    L = 64  # input signal length; 4x AvgPool(2) -> seq_len T = 4 for the LSTM

    key = jax.random.PRNGKey(0)
    kp, ke, kg = jax.random.split(key, 3)
    params = init_params(kp, EMG_CH, EEG_CH, HIDDEN_DIM, NUM_CLASSES)
    emg = jax.random.normal(ke, (B, EMG_CH, L), jnp.float32)
    eeg = jax.random.normal(kg, (B, EEG_CH, L), jnp.float32)

    out = jax.jit(forward)(emg, eeg, params)
    out = jax.block_until_ready(out)

    assert out.shape == (B, NUM_CLASSES), out.shape
    assert bool(jnp.all(jnp.isfinite(out)))
    print("KERNEL_OK")
</pallas_src>

<mosaic_0001>
module attributes {stable_mosaic.version = 11 : i64} {
  func.func @_fused_kernel(%arg0: memref<128x8xf32, #tpu.memory_space<vmem>>, %arg1: memref<3x8x32xf32, #tpu.memory_space<vmem>>, %arg2: memref<3x32x64xf32, #tpu.memory_space<vmem>>, %arg3: memref<3x64x128xf32, #tpu.memory_space<vmem>>, %arg4: memref<3x128x256xf32, #tpu.memory_space<vmem>>, %arg5: memref<4x2x256xf32, #tpu.memory_space<vmem>>, %arg6: memref<4x64x128xf32, #tpu.memory_space<vmem>>, %arg7: memref<256x512xf32, #tpu.memory_space<vmem>>, %arg8: memref<64x512xf32, #tpu.memory_space<vmem>>, %arg9: memref<2x256xf32, #tpu.memory_space<vmem>>, %arg10: memref<128x512xf32, #tpu.memory_space<vmem>>, %arg11: memref<64x256xf32, #tpu.memory_space<vmem>>, %arg12: memref<2x256xf32, #tpu.memory_space<vmem>>, %arg13: memref<128x64xf32, #tpu.memory_space<vmem>>, %arg14: memref<64x32xf32, #tpu.memory_space<vmem>>, %arg15: memref<32x8xf32, #tpu.memory_space<vmem>>, %arg16: memref<7x64xf32, #tpu.memory_space<vmem>>, %arg17: memref<2x8xf32, #tpu.memory_space<vmem>>, %arg18: memref<132x128xf32, #tpu.memory_space<vmem>>, %arg19: memref<16x256xf32, #tpu.memory_space<vmem>>, %arg20: memref<8x128xf32, #tpu.memory_space<vmem>>) attributes {dimension_semantics = [], scalar_prefetch = 0 : i64, scratch_operands = 3 : i64, tpu.core_type = #tpu.core_type<tc>} {
    %c0 = arith.constant 0 : index
    %c0_0 = arith.constant 0 : index
    %0 = vector.load %arg0[%c0, %c0_0] : memref<128x8xf32, #tpu.memory_space<vmem>>, vector<128x8xf32>
    %cst = arith.constant 0.000000e+00 : f32
    %1 = vector.broadcast %cst : f32 to vector<2x8xf32>
    %c0_1 = arith.constant 0 : index
    %c0_2 = arith.constant 0 : index
    %2 = vector.load %arg18[%c0_1, %c0_2] : memref<132x128xf32, #tpu.memory_space<vmem>>, vector<2x8xf32>
    tpu.vector_store %arg18[%c0_1, %c0_2], %1 {strides = array<i32>} : memref<132x128xf32, #tpu.memory_space<vmem>>, vector<2x8xf32>,
    %c130 = arith.constant 130 : index
    %c0_3 = arith.constant 0 : index
    %3 = vector.load %arg18[%c130, %c0_3] : memref<132x128xf32, #tpu.memory_space<vmem>>, vector<2x8xf32>
    tpu.vector_store %arg18[%c130, %c0_3], %1 {strides = array<i32>} : memref<132x128xf32, #tpu.memory_space<vmem>>, vector<2x8xf32>,
    %c2 = arith.constant 2 : index
    %c0_4 = arith.constant 0 : index
    %4 = vector.load %arg18[%c2, %c0_4] : memref<132x128xf32, #tpu.memory_space<vmem>>, vector<128x8xf32>
    tpu.vector_store %arg18[%c2, %c0_4], %0 {strides = array<i32>} : memref<132x128xf32, #tpu.memory_space<vmem>>, vector<128x8xf32>,
    %c0_5 = arith.constant 0 : index
    %c0_6 = arith.constant 0 : index
    %5 = vector.load %arg18[%c0_5, %c0_6] : memref<132x128xf32, #tpu.memory_space<vmem>>, vector<128x8xf32>
    %c4 = arith.constant 4 : index
    %c0_7 = arith.constant 0 : index
    %6 = vector.load %arg18[%c4, %c0_7] : memref<132x128xf32, #tpu.memory_space<vmem>>, vector<128x8xf32>
    %c1 = arith.constant 1 : index
    %c0_8 = arith.constant 0 : index
    %c0_9 = arith.constant 0 : index
    %7 = vector.load %arg1[%c1, %c0_8, %c0_9] : memref<3x8x32xf32, #tpu.memory_space<vmem>>, vector<1x8x32xf32>
    %8 = vector.shape_cast %7 : vector<1x8x32xf32> to vector<8x32xf32>
    %cst_10 = arith.constant dense<0.000000e+00> : vector<128x32xf32>
    %9 = tpu.matmul %0, %8, %cst_10 {dimension_numbers = #tpu.dot_dimension_numbers<[1], [0], [0], [1], [0, 0, 1, 1], [], []>} : vector<128x8xf32>, vector<8x32xf32>, vector<128x32xf32> -> vector<128x32xf32>
    %c0_11 = arith.constant 0 : index
    %c0_12 = arith.constant 0 : index
    %c0_13 = arith.constant 0 : index
    %10 = vector.load %arg1[%c0_11, %c0_12, %c0_13] : memref<3x8x32xf32, #tpu.memory_space<vmem>>, vector<1x8x32xf32>
    %11 = vector.shape_cast %10 : vector<1x8x32xf32> to vector<8x32xf32>
    %cst_14 = arith.constant dense<0.000000e+00> : vector<128x32xf32>
    %12 = tpu.matmul %5, %11, %cst_14 {dimension_numbers = #tpu.dot_dimension_numbers<[1], [0], [0], [1], [0, 0, 1, 1], [], []>} : vector<128x8xf32>, vector<8x32xf32>, vector<128x32xf32> -> vector<128x32xf32>
    %13 = arith.addf %9, %12 : vector<128x32xf32>
    %c2_15 = arith.constant 2 : index
    %c0_16 = arith.constant 0 : index
    %c0_17 = arith.constant 0 : index
    %14 = vector.load %arg1[%c2_15, %c0_16, %c0_17] : memref<3x8x32xf32, #tpu.memory_space<vmem>>, vector<1x8x32xf32>
    %15 = vector.shape_cast %14 : vector<1x8x32xf32> to vector<8x32xf32>
    %cst_18 = arith.constant dense<0.000000e+00> : vector<128x32xf32>
    %16 = tpu.matmul %6, %15, %cst_18 {dimension_numbers = #tpu.dot_dimension_numbers<[1], [0], [0], [1], [0, 0, 1, 1], [], []>} : vector<128x8xf32>, vector<8x32xf32>, vector<128x32xf32> -> vector<128x32xf32>
    %17 = arith.addf %13, %16 : vector<128x32xf32>
    %c0_19 = arith.constant 0 : index
    %c0_20 = arith.constant 0 : index
    %c0_21 = arith.constant 0 : index
    %18 = vector.load %arg5[%c0_19, %c0_20, %c0_21] : memref<4x2x256xf32, #tpu.memory_space<vmem>>, vector<1x2x256xf32>
    %19 = vector.shape_cast %18 : vector<1x2x256xf32> to vector<2x256xf32>
    %20 = vector.extract_strided_slice %19 {offsets = [0, 0], sizes = [1, 32], strides = [1, 1]} : vector<2x256xf32> to vector<1x32xf32>
    %21 = vector.broadcast %20 : vector<1x32xf32> to vector<128x32xf32>
    %22 = arith.mulf %17, %21 : vector<128x32xf32>
    %23 = vector.extract_strided_slice %19 {offsets = [1, 0], sizes = [1, 32], strides = [1, 1]} : vector<2x256xf32> to vector<1x32xf32>
    %24 = vector.broadcast %23 : vector<1x32xf32> to vector<128x32xf32>
    %25 = arith.addf %22, %24 : vector<128x32xf32>
    %cst_22 = arith.constant 0.000000e+00 : f32
    %26 = vector.broadcast %cst_22 : f32 to vector<128x32xf32>
    %27 = arith.cmpf ogt, %25, %26 : vector<128x32xf32>
    %cst_23 = arith.constant 0.000000e+00 : f32
    %28 = vector.broadcast %cst_23 : f32 to vector<128x32xf32>
    %29 = arith.minimumf %25, %28 : vector<128x32xf32>
    %30 = math.exp %29 : vector<128x32xf32>
    %cst_24 = arith.constant 1.000000e+00 : f32
    %31 = vector.broadcast %cst_24 : f32 to vector<128x32xf32>
    %32 = arith.subf %30, %31 : vector<128x32xf32>
    %33 = arith.select %27, %25, %32 : vector<128x32xi1>, vector<128x32xf32>
    %c0_25 = arith.constant 0 : index
    %c0_26 = arith.constant 0 : index
    %c0_27 = arith.constant 0 : index
    %34 = vector.load %arg6[%c0_25, %c0_26, %c0_27] : memref<4x64x128xf32, #tpu.memory_space<vmem>>, vector<1x64x128xf32>
    %35 = vector.shape_cast %34 : vector<1x64x128xf32> to vector<64x128xf32>
    %cst_28 = arith.constant dense<0.000000e+00> : vector<64x32xf32>
    %36 = tpu.matmul %35, %33, %cst_28 {dimension_numbers = #tpu.dot_dimension_numbers<[1], [0], [0], [1], [0, 0, 1, 1], [], []>} : vector<64x128xf32>, vector<128x32xf32>, vector<64x32xf32> -> vector<64x32xf32>
    %cst_29 = arith.constant 0.000000e+00 : f32
    %37 = vector.broadcast %cst_29 : f32 to vector<2x32xf32>
    %c0_30 = arith.constant 0 : index
    %c0_31 = arith.constant 0 : index
    %38 = vector.load %arg18[%c0_30, %c0_31] : memref<132x128xf32, #tpu.memory_space<vmem>>, vector<2x32xf32>
    tpu.vector_store %arg18[%c0_30, %c0_31], %37 {strides = array<i32>} : memref<132x128xf32, #tpu.memory_space<vmem>>, vector<2x32xf32>,
    %c66 = arith.constant 66 : index
    %c0_32 = arith.constant 0 : index
    %39 = vector.load %arg18[%c66, %c0_32] : memref<132x128xf32, #tpu.memory_space<vmem>>, vector<2x32xf32>
    tpu.vector_store %arg18[%c66, %c0_32], %37 {strides = array<i32>} : memref<132x128xf32, #tpu.memory_space<vmem>>, vector<2x32xf32>,
    %c2_33 = arith.constant 2 : index
    %c0_34 = arith.constant 0 : index
    %40 = vector.load %arg18[%c2_33, %c0_34] : memref<132x128xf32, #tpu.memory_space<vmem>>, vector<64x32xf32>
    tpu.vector_store %arg18[%c2_33, %c0_34], %36 {strides = array<i32>} : memref<132x128xf32, #tpu.memory_space<vmem>>, vector<64x32xf32>,
    %c0_35 = arith.constant 0 : index
    %c0_36 = arith.constant 0 : index
    %41 = vector.load %arg18[%c0_35, %c0_36] : memref<132x128xf32, #tpu.memory_space<vmem>>, vector<64x32xf32>
    %c4_37 = arith.constant 4 : index
    %c0_38 = arith.constant 0 : index
    %42 = vector.load %arg18[%c4_37, %c0_38] : memref<132x128xf32, #tpu.memory_space<vmem>>, vector<64x32xf32>
    %c1_39 = arith.constant 1 : index
    %c0_40 = arith.constant 0 : index
    %c0_41 = arith.constant 0 : index
    %43 = vector.load %arg2[%c1_39, %c0_40, %c0_41] : memref<3x32x64xf32, #tpu.memory_space<vmem>>, vector<1x32x64xf32>
    %44 = vector.shape_cast %43 : vector<1x32x64xf32> to vector<32x64xf32>
    %cst_42 = arith.constant dense<0.000000e+00> : vector<64x64xf32>
    %45 = tpu.matmul %36, %44, %cst_42 {dimension_numbers = #tpu.dot_dimension_numbers<[1], [0], [0], [1], [0, 0, 1, 1], [], []>} : vector<64x32xf32>, vector<32x64xf32>, vector<64x64xf32> -> vector<64x64xf32>
    %c0_43 = arith.constant 0 : index
    %c0_44 = arith.constant 0 : index
    %c0_45 = arith.constant 0 : index
    %46 = vector.load %arg2[%c0_43, %c0_44, %c0_45] : memref<3x32x64xf32, #tpu.memory_space<vmem>>, vector<1x32x64xf32>
    %47 = vector.shape_cast %46 : vector<1x32x64xf32> to vector<32x64xf32>
    %cst_46 = arith.constant dense<0.000000e+00> : vector<64x64xf32>
    %48 = tpu.matmul %41, %47, %cst_46 {dimension_numbers = #tpu.dot_dimension_numbers<[1], [0], [0], [1], [0, 0, 1, 1], [], []>} : vector<64x32xf32>, vector<32x64xf32>, vector<64x64xf32> -> vector<64x64xf32>
    %49 = arith.addf %45, %48 : vector<64x64xf32>
    %c2_47 = arith.constant 2 : index
    %c0_48 = arith.constant 0 : index
    %c0_49 = arith.constant 0 : index
    %50 = vector.load %arg2[%c2_47, %c0_48, %c0_49] : memref<3x32x64xf32, #tpu.memory_space<vmem>>, vector<1x32x64xf32>
    %51 = vector.shape_cast %50 : vector<1x32x64xf32> to vector<32x64xf32>
    %cst_50 = arith.constant dense<0.000000e+00> : vector<64x64xf32>
    %52 = tpu.matmul %42, %51, %cst_50 {dimension_numbers = #tpu.dot_dimension_numbers<[1], [0], [0], [1], [0, 0, 1, 1], [], []>} : vector<64x32xf32>, vector<32x64xf32>, vector<64x64xf32> -> vector<64x64xf32>
    %53 = arith.addf %49, %52 : vector<64x64xf32>
    %c1_51 = arith.constant 1 : index
    %c0_52 = arith.constant 0 : index
    %c0_53 = arith.constant 0 : index
    %54 = vector.load %arg5[%c1_51, %c0_52, %c0_53] : memref<4x2x256xf32, #tpu.memory_space<vmem>>, vector<1x2x256xf32>
    %55 = vector.shape_cast %54 : vector<1x2x256xf32> to vector<2x256xf32>
    %56 = vector.extract_strided_slice %55 {offsets = [0, 0], sizes = [1, 64], strides = [1, 1]} : vector<2x256xf32> to vector<1x64xf32>
    %57 = vector.broadcast %56 : vector<1x64xf32> to vector<64x64xf32>
    %58 = arith.mulf %53, %57 : vector<64x64xf32>
    %59 = vector.extract_strided_slice %55 {offsets = [1, 0], sizes = [1, 64], strides = [1, 1]} : vector<2x256xf32> to vector<1x64xf32>
    %60 = vector.broadcast %59 : vector<1x64xf32> to vector<64x64xf32>
    %61 = arith.addf %58, %60 : vector<64x64xf32>
    %cst_54 = arith.constant 0.000000e+00 : f32
    %62 = vector.broadcast %cst_54 : f32 to vector<64x64xf32>
    %63 = arith.cmpf ogt, %61, %62 : vector<64x64xf32>
    %cst_55 = arith.constant 0.000000e+00 : f32
    %64 = vector.broadcast %cst_55 : f32 to vector<64x64xf32>
    %65 = arith.minimumf %61, %64 : vector<64x64xf32>
    %66 = math.exp %65 : vector<64x64xf32>
    %cst_56 = arith.constant 1.000000e+00 : f32
    %67 = vector.broadcast %cst_56 : f32 to vector<64x64xf32>
    %68 = arith.subf %66, %67 : vector<64x64xf32>
    %69 = arith.select %63, %61, %68 : vector<64x64xi1>, vector<64x64xf32>
    %c1_57 = arith.constant 1 : index
    %c0_58 = arith.constant 0 : index
    %c0_59 = arith.constant 0 : index
    %70 = vector.load %arg6[%c1_57, %c0_58, %c0_59] : memref<4x64x128xf32, #tpu.memory_space<vmem>>, vector<1x64x128xf32>
    %71 = vector.shape_cast %70 : vector<1x64x128xf32> to vector<64x128xf32>
    %72 = vector.extract_strided_slice %71 {offsets = [0, 0], sizes = [32, 64], strides = [1, 1]} : vector<64x128xf32> to vector<32x64xf32>
    %cst_60 = arith.constant dense<0.000000e+00> : vector<32x64xf32>
    %73 = tpu.matmul %72, %69, %cst_60 {dimension_numbers = #tpu.dot_dimension_numbers<[1], [0], [0], [1], [0, 0, 1, 1], [], []>} : vector<32x64xf32>, vector<64x64xf32>, vector<32x64xf32> -> vector<32x64xf32>
    %cst_61 = arith.constant 0.000000e+00 : f32
    %74 = vector.broadcast %cst_61 : f32 to vector<2x64xf32>
    %c0_62 = arith.constant 0 : index
    %c0_63 = arith.constant 0 : index
    %75 = vector.load %arg18[%c0_62, %c0_63] : memref<132x128xf32, #tpu.memory_space<vmem>>, vector<2x64xf32>
    tpu.vector_store %arg18[%c0_62, %c0_63], %74 {strides = array<i32>} : memref<132x128xf32, #tpu.memory_space<vmem>>, vector<2x64xf32>,
    %c34 = arith.constant 34 : index
    %c0_64 = arith.constant 0 : index
    %76 = vector.load %arg18[%c34, %c0_64] : memref<132x128xf32, #tpu.memory_space<vmem>>, vector<2x64xf32>
    tpu.vector_store %arg18[%c34, %c0_64], %74 {strides = array<i32>} : memref<132x128xf32, #tpu.memory_space<vmem>>, vector<2x64xf32>,
    %c2_65 = arith.constant 2 : index
    %c0_66 = arith.constant 0 : index
    %77 = vector.load %arg18[%c2_65, %c0_66] : memref<132x128xf32, #tpu.memory_space<vmem>>, vector<32x64xf32>
    tpu.vector_store %arg18[%c2_65, %c0_66], %73 {strides = array<i32>} : memref<132x128xf32, #tpu.memory_space<vmem>>, vector<32x64xf32>,
    %c0_67 = arith.constant 0 : index
    %c0_68 = arith.constant 0 : index
    %78 = vector.load %arg18[%c0_67, %c0_68] : memref<132x128xf32, #tpu.memory_space<vmem>>, vector<32x64xf32>
    %c4_69 = arith.constant 4 : index
    %c0_70 = arith.constant 0 : index
    %79 = vector.load %arg18[%c4_69, %c0_70] : memref<132x128xf32, #tpu.memory_space<vmem>>, vector<32x64xf32>
    %c1_71 = arith.constant 1 : index
    %c0_72 = arith.constant 0 : index
    %c0_73 = arith.constant 0 : index
    %80 = vector.load %arg3[%c1_71, %c0_72, %c0_73] : memref<3x64x128xf32, #tpu.memory_space<vmem>>, vector<1x64x128xf32>
    %81 = vector.shape_cast %80 : vector<1x64x128xf32> to vector<64x128xf32>
    %cst_74 = arith.constant dense<0.000000e+00> : vector<32x128xf32>
    %82 = tpu.matmul %73, %81, %cst_74 {dimension_numbers = #tpu.dot_dimension_numbers<[1], [0], [0], [1], [0, 0, 1, 1], [], []>} : vector<32x64xf32>, vector<64x128xf32>, vector<32x128xf32> -> vector<32x128xf32>
    %c0_75 = arith.constant 0 : index
    %c0_76 = arith.constant 0 : index
    %c0_77 = arith.constant 0 : index
    %83 = vector.load %arg3[%c0_75, %c0_76, %c0_77] : memref<3x64x128xf32, #tpu.memory_space<vmem>>, vector<1x64x128xf32>
    %84 = vector.shape_cast %83 : vector<1x64x128xf32> to vector<64x128xf32>
    %cst_78 = arith.constant dense<0.000000e+00> : vector<32x128xf32>
    %85 = tpu.matmul %78, %84, %cst_78 {dimension_numbers = #tpu.dot_dimension_numbers<[1], [0], [0], [1], [0, 0, 1, 1], [], []>} : vector<32x64xf32>, vector<64x128xf32>, vector<32x128xf32> -> vector<32x128xf32>
    %86 = arith.addf %82, %85 : vector<32x128xf32>
    %c2_79 = arith.constant 2 : index
    %c0_80 = arith.constant 0 : index
    %c0_81 = arith.constant 0 : index
    %87 = vector.load %arg3[%c2_79, %c0_80, %c0_81] : memref<3x64x128xf32, #tpu.memory_space<vmem>>, vector<1x64x128xf32>
    %88 = vector.shape_cast %87 : vector<1x64x128xf32> to vector<64x128xf32>
    %cst_82 = arith.constant dense<0.000000e+00> : vector<32x128xf32>
    %89 = tpu.matmul %79, %88, %cst_82 {dimension_numbers = #tpu.dot_dimension_numbers<[1], [0], [0], [1], [0, 0, 1, 1], [], []>} : vector<32x64xf32>, vector<64x128xf32>, vector<32x128xf32> -> vector<32x128xf32>
    %90 = arith.addf %86, %89 : vector<32x128xf32>
    %c2_83 = arith.constant 2 : index
    %c0_84 = arith.constant 0 : index
    %c0_85 = arith.constant 0 : index
    %91 = vector.load %arg5[%c2_83, %c0_84, %c0_85] : memref<4x2x256xf32, #tpu.memory_space<vmem>>, vector<1x2x256xf32>
    %92 = vector.shape_cast %91 : vector<1x2x256xf32> to vector<2x256xf32>
    %93 = vector.extract_strided_slice %92 {offsets = [0, 0], sizes = [1, 128], strides = [1, 1]} : vector<2x256xf32> to vector<1x128xf32>
    %94 = vector.broadcast %93 : vector<1x128xf32> to vector<32x128xf32>
    %95 = arith.mulf %90, %94 : vector<32x128xf32>
    %96 = vector.extract_strided_slice %92 {offsets = [1, 0], sizes = [1, 128], strides = [1, 1]} : vector<2x256xf32> to vector<1x128xf32>
    %97 = vector.broadcast %96 : vector<1x128xf32> to vector<32x128xf32>
    %98 = arith.addf %95, %97 : vector<32x128xf32>
    %cst_86 = arith.constant 0.000000e+00 : f32
    %99 = vector.broadcast %cst_86 : f32 to vector<32x128xf32>
    %100 = arith.cmpf ogt, %98, %99 : vector<32x128xf32>
    %cst_87 = arith.constant 0.000000e+00 : f32
    %101 = vector.broadcast %cst_87 : f32 to vector<32x128xf32>
    %102 = arith.minimumf %98, %101 : vector<32x128xf32>
    %103 = math.exp %102 : vector<32x128xf32>
    %cst_88 = arith.constant 1.000000e+00 : f32
    %104 = vector.broadcast %cst_88 : f32 to vector<32x128xf32>
    %105 = arith.subf %103, %104 : vector<32x128xf32>
    %106 = arith.select %100, %98, %105 : vector<32x128xi1>, vector<32x128xf32>
    %c2_89 = arith.constant 2 : index
    %c0_90 = arith.constant 0 : index
    %c0_91 = arith.constant 0 : index
    %107 = vector.load %arg6[%c2_89, %c0_90, %c0_91] : memref<4x64x128xf32, #tpu.memory_space<vmem>>, vector<1x64x128xf32>
    %108 = vector.shape_cast %107 : vector<1x64x128xf32> to vector<64x128xf32>
    %109 = vector.extract_strided_slice %108 {offsets = [0, 0], sizes = [16, 32], strides = [1, 1]} : vector<64x128xf32> to vector<16x32xf32>
    %cst_92 = arith.constant dense<0.000000e+00> : vector<16x128xf32>
    %110 = tpu.matmul %109, %106, %cst_92 {dimension_numbers = #tpu.dot_dimension_numbers<[1], [0], [0], [1], [0, 0, 1, 1], [], []>} : vector<16x32xf32>, vector<32x128xf32>, vector<16x128xf32> -> vector<16x128xf32>
    %cst_93 = arith.constant 0.000000e+00 : f32
    %111 = vector.broadcast %cst_93 : f32 to vector<2x128xf32>
    %c0_94 = arith.constant 0 : index
    %c0_95 = arith.constant 0 : index
    %112 = vector.load %arg18[%c0_94, %c0_95] : memref<132x128xf32, #tpu.memory_space<vmem>>, vector<2x128xf32>
    tpu.vector_store %arg18[%c0_94, %c0_95], %111 {strides = array<i32>} : memref<132x128xf32, #tpu.memory_space<vmem>>, vector<2x128xf32>,
    %c18 = arith.constant 18 : index
    %c0_96 = arith.constant 0 : index
    %113 = vector.load %arg18[%c18, %c0_96] : memref<132x128xf32, #tpu.memory_space<vmem>>, vector<2x128xf32>
    tpu.vector_store %arg18[%c18, %c0_96], %111 {strides = array<i32>} : memref<132x128xf32, #tpu.memory_space<vmem>>, vector<2x128xf32>,
    %c2_97 = arith.constant 2 : index
    %c0_98 = arith.constant 0 : index
    %114 = vector.load %arg18[%c2_97, %c0_98] : memref<132x128xf32, #tpu.memory_space<vmem>>, vector<16x128xf32>
    tpu.vector_store %arg18[%c2_97, %c0_98], %110 {strides = array<i32>} : memref<132x128xf32, #tpu.memory_space<vmem>>, vector<16x128xf32>,
    %c0_99 = arith.constant 0 : index
    %c0_100 = arith.constant 0 : index
    %115 = vector.load %arg18[%c0_99, %c0_100] : memref<132x128xf32, #tpu.memory_space<vmem>>, vector<16x128xf32>
    %c4_101 = arith.constant 4 : index
    %c0_102 = arith.constant 0 : index
    %116 = vector.load %arg18[%c4_101, %c0_102] : memref<132x128xf32, #tpu.memory_space<vmem>>, vector<16x128xf32>
    %c1_103 = arith.constant 1 : index
    %c0_104 = arith.constant 0 : index
    %c0_105 = arith.constant 0 : index
    %117 = vector.load %arg4[%c1_103, %c0_104, %c0_105] : memref<3x128x256xf32, #tpu.memory_space<vmem>>, vector<1x128x256xf32>
    %118 = vector.shape_cast %117 : vector<1x128x256xf32> to vector<128x256xf32>
    %cst_106 = arith.constant dense<0.000000e+00> : vector<16x256xf32>
    %119 = tpu.matmul %110, %118, %cst_106 {dimension_numbers = #tpu.dot_dimension_numbers<[1], [0], [0], [1], [0, 0, 1, 1], [], []>} : vector<16x128xf32>, vector<128x256xf32>, vector<16x256xf32> -> vector<16x256xf32>
    %c0_107 = arith.constant 0 : index
    %c0_108 = arith.constant 0 : index
    %c0_109 = arith.constant 0 : index
    %120 = vector.load %arg4[%c0_107, %c0_108, %c0_109] : memref<3x128x256xf32, #tpu.memory_space<vmem>>, vector<1x128x256xf32>
    %121 = vector.shape_cast %120 : vector<1x128x256xf32> to vector<128x256xf32>
    %cst_110 = arith.constant dense<0.000000e+00> : vector<16x256xf32>
    %122 = tpu.matmul %115, %121, %cst_110 {dimension_numbers = #tpu.dot_dimension_numbers<[1], [0], [0], [1], [0, 0, 1, 1], [], []>} : vector<16x128xf32>, vector<128x256xf32>, vector<16x256xf32> -> vector<16x256xf32>
    %123 = arith.addf %119, %122 : vector<16x256xf32>
    %c2_111 = arith.constant 2 : index
    %c0_112 = arith.constant 0 : index
    %c0_113 = arith.constant 0 : index
    %124 = vector.load %arg4[%c2_111, %c0_112, %c0_113] : memref<3x128x256xf32, #tpu.memory_space<vmem>>, vector<1x128x256xf32>
    %125 = vector.shape_cast %124 : vector<1x128x256xf32> to vector<128x256xf32>
    %cst_114 = arith.constant dense<0.000000e+00> : vector<16x256xf32>
    %126 = tpu.matmul %116, %125, %cst_114 {dimension_numbers = #tpu.dot_dimension_numbers<[1], [0], [0], [1], [0, 0, 1, 1], [], []>} : vector<16x128xf32>, vector<128x256xf32>, vector<16x256xf32> -> vector<16x256xf32>
    %127 = arith.addf %123, %126 : vector<16x256xf32>
    %c3 = arith.constant 3 : index
    %c0_115 = arith.constant 0 : index
    %c0_116 = arith.constant 0 : index
    %128 = vector.load %arg5[%c3, %c0_115, %c0_116] : memref<4x2x256xf32, #tpu.memory_space<vmem>>, vector<1x2x256xf32>
    %129 = vector.shape_cast %128 : vector<1x2x256xf32> to vector<2x256xf32>
    %130 = vector.extract_strided_slice %129 {offsets = [0, 0], sizes = [1, 256], strides = [1, 1]} : vector<2x256xf32> to vector<1x256xf32>
    %131 = vector.broadcast %130 : vector<1x256xf32> to vector<16x256xf32>
    %132 = arith.mulf %127, %131 : vector<16x256xf32>
    %133 = vector.extract_strided_slice %129 {offsets = [1, 0], sizes = [1, 256], strides = [1, 1]} : vector<2x256xf32> to vector<1x256xf32>
    %134 = vector.broadcast %133 : vector<1x256xf32> to vector<16x256xf32>
    %135 = arith.addf %132, %134 : vector<16x256xf32>
    %cst_117 = arith.constant 0.000000e+00 : f32
    %136 = vector.broadcast %cst_117 : f32 to vector<16x256xf32>
    %137 = arith.cmpf ogt, %135, %136 : vector<16x256xf32>
    %cst_118 = arith.constant 0.000000e+00 : f32
    %138 = vector.broadcast %cst_118 : f32 to vector<16x256xf32>
    %139 = arith.minimumf %135, %138 : vector<16x256xf32>
    %140 = math.exp %139 : vector<16x256xf32>
    %cst_119 = arith.constant 1.000000e+00 : f32
    %141 = vector.broadcast %cst_119 : f32 to vector<16x256xf32>
    %142 = arith.subf %140, %141 : vector<16x256xf32>
    %143 = arith.select %137, %135, %142 : vector<16x256xi1>, vector<16x256xf32>
    %c3_120 = arith.constant 3 : index
    %c0_121 = arith.constant 0 : index
    %c0_122 = arith.constant 0 : index
    %144 = vector.load %arg6[%c3_120, %c0_121, %c0_122] : memref<4x64x128xf32, #tpu.memory_space<vmem>>, vector<1x64x128xf32>
    %145 = vector.shape_cast %144 : vector<1x64x128xf32> to vector<64x128xf32>
    %146 = vector.extract_strided_slice %145 {offsets = [0, 0], sizes = [8, 16], strides = [1, 1]} : vector<64x128xf32> to vector<8x16xf32>
    %cst_123 = arith.constant dense<0.000000e+00> : vector<8x256xf32>
    %147 = tpu.matmul %146, %143, %cst_123 {dimension_numbers = #tpu.dot_dimension_numbers<[1], [0], [0], [1], [0, 0, 1, 1], [], []>} : vector<8x16xf32>, vector<16x256xf32>, vector<8x256xf32> -> vector<8x256xf32>
    %c0_124 = arith.constant 0 : index
    %c0_125 = arith.constant 0 : index
    %148 = vector.load %arg7[%c0_124, %c0_125] : memref<256x512xf32, #tpu.memory_space<vmem>>, vector<256x512xf32>
    %cst_126 = arith.constant dense<0.000000e+00> : vector<8x512xf32>
    %149 = tpu.matmul %147, %148, %cst_126 {dimension_numbers = #tpu.dot_dimension_numbers<[1], [0], [0], [1], [0, 0, 1, 1], [], []>} : vector<8x256xf32>, vector<256x512xf32>, vector<8x512xf32> -> vector<8x512xf32>
    %150 = vector.extract_strided_slice %149 {offsets = [0, 0], sizes = [8, 256], strides = [1, 1]} : vector<8x512xf32> to vector<8x256xf32>
    %c0_127 = arith.constant 0 : index
    %c0_128 = arith.constant 0 : index
    %151 = vector.load %arg9[%c0_127, %c0_128] : memref<2x256xf32, #tpu.memory_space<vmem>>, vector<1x256xf32>
    %152 = vector.broadcast %151 : vector<1x256xf32> to vector<8x256xf32>
    %153 = arith.addf %150, %152 : vector<8x256xf32>
    %154 = vector.extract_strided_slice %149 {offsets = [0, 256], sizes = [8, 256], strides = [1, 1]} : vector<8x512xf32> to vector<8x256xf32>
    %c1_129 = arith.constant 1 : index
    %c0_130 = arith.constant 0 : index
    %155 = vector.load %arg9[%c1_129, %c0_130] : memref<2x256xf32, #tpu.memory_space<vmem>>, vector<1x256xf32>
    %156 = vector.broadcast %155 : vector<1x256xf32> to vector<8x256xf32>
    %157 = arith.addf %154, %156 : vector<8x256xf32>
    %158 = vector.extract_strided_slice %153 {offsets = [0, 0], sizes = [2, 256], strides = [1, 1]} : vector<8x256xf32> to vector<2x256xf32>
    %c0_131 = arith.constant 0 : index
    %c0_132 = arith.constant 0 : index
    %159 = vector.load %arg19[%c0_131, %c0_132] : memref<16x256xf32, #tpu.memory_space<vmem>>, vector<2x256xf32>
    tpu.vector_store %arg19[%c0_131, %c0_132], %158 {strides = array<i32>} : memref<16x256xf32, #tpu.memory_space<vmem>>, vector<2x256xf32>,
    %160 = vector.extract_strided_slice %157 {offsets = [6, 0], sizes = [2, 256], strides = [1, 1]} : vector<8x256xf32> to vector<2x256xf32>
    %c2_133 = arith.constant 2 : index
    %c0_134 = arith.constant 0 : index
    %161 = vector.load %arg19[%c2_133, %c0_134] : memref<16x256xf32, #tpu.memory_space<vmem>>, vector<2x256xf32>
    tpu.vector_store %arg19[%c2_133, %c0_134], %160 {strides = array<i32>} : memref<16x256xf32, #tpu.memory_space<vmem>>, vector<2x256xf32>,
    %162 = vector.extract_strided_slice %153 {offsets = [2, 0], sizes = [2, 256], strides = [1, 1]} : vector<8x256xf32> to vector<2x256xf32>
    %c4_135 = arith.constant 4 : index
    %c0_136 = arith.constant 0 : index
    %163 = vector.load %arg19[%c4_135, %c0_136] : memref<16x256xf32, #tpu.memory_space<vmem>>, vector<2x256xf32>
    tpu.vector_store %arg19[%c4_135, %c0_136], %162 {strides = array<i32>} : memref<16x256xf32, #tpu.memory_space<vmem>>, vector<2x256xf32>,
    %164 = vector.extract_strided_slice %157 {offsets = [4, 0], sizes = [2, 256], strides = [1, 1]} : vector<8x256xf32> to vector<2x256xf32>
    %c6 = arith.constant 6 : index
    %c0_137 = arith.constant 0 : index
    %165 = vector.load %arg19[%c6, %c0_137] : memref<16x256xf32, #tpu.memory_space<vmem>>, vector<2x256xf32>
    tpu.vector_store %arg19[%c6, %c0_137], %164 {strides = array<i32>} : memref<16x256xf32, #tpu.memory_space<vmem>>, vector<2x256xf32>,
    %166 = vector.extract_strided_slice %153 {offsets = [4, 0], sizes = [2, 256], strides = [1, 1]} : vector<8x256xf32> to vector<2x256xf32>
    %c8 = arith.constant 8 : index
    %c0_138 = arith.constant 0 : index
    %167 = vector.load %arg19[%c8, %c0_138] : memref<16x256xf32, #tpu.memory_space<vmem>>, vector<2x256xf32>
    tpu.vector_store %arg19[%c8, %c0_138], %166 {strides = array<i32>} : memref<16x256xf32, #tpu.memory_space<vmem>>, vector<2x256xf32>,
    %168 = vector.extract_strided_slice %157 {offsets = [2, 0], sizes = [2, 256], strides = [1, 1]} : vector<8x256xf32> to vector<2x256xf32>
    %c10 = arith.constant 10 : index
    %c0_139 = arith.constant 0 : index
    %169 = vector.load %arg19[%c10, %c0_139] : memref<16x256xf32, #tpu.memory_space<vmem>>, vector<2x256xf32>
    tpu.vector_store %arg19[%c10, %c0_139], %168 {strides = array<i32>} : memref<16x256xf32, #tpu.memory_space<vmem>>, vector<2x256xf32>,
    %170 = vector.extract_strided_slice %153 {offsets = [6, 0], sizes = [2, 256], strides = [1, 1]} : vector<8x256xf32> to vector<2x256xf32>
    %c12 = arith.constant 12 : index
    %c0_140 = arith.constant 0 : index
    %171 = vector.load %arg19[%c12, %c0_140] : memref<16x256xf32, #tpu.memory_space<vmem>>, vector<2x256xf32>
    tpu.vector_store %arg19[%c12, %c0_140], %170 {strides = array<i32>} : memref<16x256xf32, #tpu.memory_space<vmem>>, vector<2x256xf32>,
    %172 = vector.extract_strided_slice %157 {offsets = [0, 0], sizes = [2, 256], strides = [1, 1]} : vector<8x256xf32> to vector<2x256xf32>
    %c14 = arith.constant 14 : index
    %c0_141 = arith.constant 0 : index
    %173 = vector.load %arg19[%c14, %c0_141] : memref<16x256xf32, #tpu.memory_space<vmem>>, vector<2x256xf32>
    tpu.vector_store %arg19[%c14, %c0_141], %172 {strides = array<i32>} : memref<16x256xf32, #tpu.memory_space<vmem>>, vector<2x256xf32>,
    %c0_142 = arith.constant 0 : index
    %c0_143 = arith.constant 0 : index
    %174 = vector.load %arg8[%c0_142, %c0_143] : memref<64x512xf32, #tpu.memory_space<vmem>>, vector<64x512xf32>
    %175 = tpu.iota {dimensions = array<i32: 0>} : vector<4x1xi32>
    %c2_i32 = arith.constant 2 : i32
    %176 = vector.broadcast %c2_i32 : i32 to vector<4x1xi32>
    %177 = arith.cmpi slt, %175, %176 : vector<4x1xi32>
    %c0_144 = arith.constant 0 : index
    %c0_145 = arith.constant 0 : index
    %178 = vector.load %arg19[%c0_144, %c0_145] : memref<16x256xf32, #tpu.memory_space<vmem>>, vector<4x256xf32>
    %179 = vector.extract_strided_slice %178 {offsets = [0, 0], sizes = [4, 192], strides = [1, 1]} : vector<4x256xf32> to vector<4x192xf32>
    %180 = arith.negf %179 : vector<4x192xf32>
    %181 = math.exp %180 : vector<4x192xf32>
    %cst_146 = arith.constant 1.000000e+00 : f32
    %182 = vector.broadcast %cst_146 : f32 to vector<4x192xf32>
    %183 = arith.addf %182, %181 : vector<4x192xf32>
    %184 = arith.divf %182, %183 : vector<4x192xf32>
    %185 = vector.extract_strided_slice %184 {offsets = [0, 0], sizes = [4, 64], strides = [1, 1]} : vector<4x192xf32> to vector<4x64xf32>
    %186 = vector.extract_strided_slice %184 {offsets = [0, 128], sizes = [4, 64], strides = [1, 1]} : vector<4x192xf32> to vector<4x64xf32>
    %187 = vector.extract_strided_slice %178 {offsets = [0, 192], sizes = [4, 64], strides = [1, 1]} : vector<4x256xf32> to vector<4x64xf32>
    %188 = math.tanh %187 : vector<4x64xf32>
    %189 = arith.mulf %185, %188 : vector<4x64xf32>
    %190 = math.tanh %189 : vector<4x64xf32>
    %191 = arith.mulf %186, %190 : vector<4x64xf32>
    %192 = vector.extract_strided_slice %191 {offsets = [0, 0], sizes = [2, 64], strides = [1, 1]} : vector<4x64xf32> to vector<2x64xf32>
    %c0_147 = arith.constant 0 : index
    %c0_148 = arith.constant 0 : index
    %193 = vector.load %arg20[%c0_147, %c0_148] : memref<8x128xf32, #tpu.memory_space<vmem>>, vector<2x64xf32>
    tpu.vector_store %arg20[%c0_147, %c0_148], %192 {strides = array<i32>} : memref<8x128xf32, #tpu.memory_space<vmem>>, vector<2x64xf32>,
    %194 = vector.extract_strided_slice %191 {offsets = [2, 0], sizes = [2, 64], strides = [1, 1]} : vector<4x64xf32> to vector<2x64xf32>
    %c6_149 = arith.constant 6 : index
    %c64 = arith.constant 64 : index
    %195 = vector.load %arg20[%c6_149, %c64] : memref<8x128xf32, #tpu.memory_space<vmem>>, vector<2x64xf32>
    tpu.vector_store %arg20[%c6_149, %c64], %194 {strides = array<i32>} : memref<8x128xf32, #tpu.memory_space<vmem>>, vector<2x64xf32>,
    %c4_150 = arith.constant 4 : index
    %c0_151 = arith.constant 0 : index
    %196 = vector.load %arg19[%c4_150, %c0_151] : memref<16x256xf32, #tpu.memory_space<vmem>>, vector<4x256xf32>
    %cst_152 = arith.constant dense<0.000000e+00> : vector<4x512xf32>
    %197 = tpu.matmul %191, %174, %cst_152 {dimension_numbers = #tpu.dot_dimension_numbers<[1], [0], [0], [1], [0, 0, 1, 1], [], []>} : vector<4x64xf32>, vector<64x512xf32>, vector<4x512xf32> -> vector<4x512xf32>
    %198 = vector.extract_strided_slice %197 {offsets = [0, 0], sizes = [4, 256], strides = [1, 1]} : vector<4x512xf32> to vector<4x256xf32>
    %199 = vector.extract_strided_slice %197 {offsets = [0, 256], sizes = [4, 256], strides = [1, 1]} : vector<4x512xf32> to vector<4x256xf32>
    %200 = vector.shape_cast %177 : vector<4x1xi1> to vector<4x1xi1>
    %201 = vector.broadcast %200 : vector<4x1xi1> to vector<4x256xi1>
    %202 = arith.select %201, %198, %199 : vector<4x256xi1>, vector<4x256xf32>
    %203 = arith.addf %196, %202 : vector<4x256xf32>
    %204 = vector.extract_strided_slice %203 {offsets = [0, 0], sizes = [4, 192], strides = [1, 1]} : vector<4x256xf32> to vector<4x192xf32>
    %205 = arith.negf %204 : vector<4x192xf32>
    %206 = math.exp %205 : vector<4x192xf32>
    %cst_153 = arith.constant 1.000000e+00 : f32
    %207 = vector.broadcast %cst_153 : f32 to vector<4x192xf32>
    %208 = arith.addf %207, %206 : vector<4x192xf32>
    %209 = arith.divf %207, %208 : vector<4x192xf32>
    %210 = vector.extract_strided_slice %209 {offsets = [0, 0], sizes = [4, 64], strides = [1, 1]} : vector<4x192xf32> to vector<4x64xf32>
    %211 = vector.extract_strided_slice %209 {offsets = [0, 64], sizes = [4, 64], strides = [1, 1]} : vector<4x192xf32> to vector<4x64xf32>
    %212 = vector.extract_strided_slice %209 {offsets = [0, 128], sizes = [4, 64], strides = [1, 1]} : vector<4x192xf32> to vector<4x64xf32>
    %213 = vector.extract_strided_slice %203 {offsets = [0, 192], sizes = [4, 64], strides = [1, 1]} : vector<4x256xf32> to vector<4x64xf32>
    %214 = math.tanh %213 : vector<4x64xf32>
    %215 = arith.mulf %211, %189 : vector<4x64xf32>
    %216 = arith.mulf %210, %214 : vector<4x64xf32>
    %217 = arith.addf %215, %216 : vector<4x64xf32>
    %218 = math.tanh %217 : vector<4x64xf32>
    %219 = arith.mulf %212, %218 : vector<4x64xf32>
    %220 = vector.extract_strided_slice %219 {offsets = [0, 0], sizes = [2, 64], strides = [1, 1]} : vector<4x64xf32> to vector<2x64xf32>
    %c2_154 = arith.constant 2 : index
    %c0_155 = arith.constant 0 : index
    %221 = vector.load %arg20[%c2_154, %c0_155] : memref<8x128xf32, #tpu.memory_space<vmem>>, vector<2x64xf32>
    tpu.vector_store %arg20[%c2_154, %c0_155], %220 {strides = array<i32>} : memref<8x128xf32, #tpu.memory_space<vmem>>, vector<2x64xf32>,
    %222 = vector.extract_strided_slice %219 {offsets = [2, 0], sizes = [2, 64], strides = [1, 1]} : vector<4x64xf32> to vector<2x64xf32>
    %c4_156 = arith.constant 4 : index
    %c64_157 = arith.constant 64 : index
    %223 = vector.load %arg20[%c4_156, %c64_157] : memref<8x128xf32, #tpu.memory_space<vmem>>, vector<2x64xf32>
    tpu.vector_store %arg20[%c4_156, %c64_157], %222 {strides = array<i32>} : memref<8x128xf32, #tpu.memory_space<vmem>>, vector<2x64xf32>,
    %c8_158 = arith.constant 8 : index
    %c0_159 = arith.constant 0 : index
    %224 = vector.load %arg19[%c8_158, %c0_159] : memref<16x256xf32, #tpu.memory_space<vmem>>, vector<4x256xf32>
    %cst_160 = arith.constant dense<0.000000e+00> : vector<4x512xf32>
    %225 = tpu.matmul %219, %174, %cst_160 {dimension_numbers = #tpu.dot_dimension_numbers<[1], [0], [0], [1], [0, 0, 1, 1], [], []>} : vector<4x64xf32>, vector<64x512xf32>, vector<4x512xf32> -> vector<4x512xf32>
    %226 = vector.extract_strided_slice %225 {offsets = [0, 0], sizes = [4, 256], strides = [1, 1]} : vector<4x512xf32> to vector<4x256xf32>
    %227 = vector.extract_strided_slice %225 {offsets = [0, 256], sizes = [4, 256], strides = [1, 1]} : vector<4x512xf32> to vector<4x256xf32>
    %228 = vector.shape_cast %177 : vector<4x1xi1> to vector<4x1xi1>
    %229 = vector.broadcast %228 : vector<4x1xi1> to vector<4x256xi1>
    %230 = arith.select %229, %226, %227 : vector<4x256xi1>, vector<4x256xf32>
    %231 = arith.addf %224, %230 : vector<4x256xf32>
    %232 = vector.extract_strided_slice %231 {offsets = [0, 0], sizes = [4, 192], strides = [1, 1]} : vector<4x256xf32> to vector<4x192xf32>
    %233 = arith.negf %232 : vector<4x192xf32>
    %234 = math.exp %233 : vector<4x192xf32>
    %cst_161 = arith.constant 1.000000e+00 : f32
    %235 = vector.broadcast %cst_161 : f32 to vector<4x192xf32>
    %236 = arith.addf %235, %234 : vector<4x192xf32>
    %237 = arith.divf %235, %236 : vector<4x192xf32>
    %238 = vector.extract_strided_slice %237 {offsets = [0, 0], sizes = [4, 64], strides = [1, 1]} : vector<4x192xf32> to vector<4x64xf32>
    %239 = vector.extract_strided_slice %237 {offsets = [0, 64], sizes = [4, 64], strides = [1, 1]} : vector<4x192xf32> to vector<4x64xf32>
    %240 = vector.extract_strided_slice %237 {offsets = [0, 128], sizes = [4, 64], strides = [1, 1]} : vector<4x192xf32> to vector<4x64xf32>
    %241 = vector.extract_strided_slice %231 {offsets = [0, 192], sizes = [4, 64], strides = [1, 1]} : vector<4x256xf32> to vector<4x64xf32>
    %242 = math.tanh %241 : vector<4x64xf32>
    %243 = arith.mulf %239, %217 : vector<4x64xf32>
    %244 = arith.mulf %238, %242 : vector<4x64xf32>
    %245 = arith.addf %243, %244 : vector<4x64xf32>
    %246 = math.tanh %245 : vector<4x64xf32>
    %247 = arith.mulf %240, %246 : vector<4x64xf32>
    %248 = vector.extract_strided_slice %247 {offsets = [0, 0], sizes = [2, 64], strides = [1, 1]} : vector<4x64xf32> to vector<2x64xf32>
    %c4_162 = arith.constant 4 : index
    %c0_163 = arith.constant 0 : index
    %249 = vector.load %arg20[%c4_162, %c0_163] : memref<8x128xf32, #tpu.memory_space<vmem>>, vector<2x64xf32>
    tpu.vector_store %arg20[%c4_162, %c0_163], %248 {strides = array<i32>} : memref<8x128xf32, #tpu.memory_space<vmem>>, vector<2x64xf32>,
    %250 = vector.extract_strided_slice %247 {offsets = [2, 0], sizes = [2, 64], strides = [1, 1]} : vector<4x64xf32> to vector<2x64xf32>
    %c2_164 = arith.constant 2 : index
    %c64_165 = arith.constant 64 : index
    %251 = vector.load %arg20[%c2_164, %c64_165] : memref<8x128xf32, #tpu.memory_space<vmem>>, vector<2x64xf32>
    tpu.vector_store %arg20[%c2_164, %c64_165], %250 {strides = array<i32>} : memref<8x128xf32, #tpu.memory_space<vmem>>, vector<2x64xf32>,
    %c12_166 = arith.constant 12 : index
    %c0_167 = arith.constant 0 : index
    %252 = vector.load %arg19[%c12_166, %c0_167] : memref<16x256xf32, #tpu.memory_space<vmem>>, vector<4x256xf32>
    %cst_168 = arith.constant dense<0.000000e+00> : vector<4x512xf32>
    %253 = tpu.matmul %247, %174, %cst_168 {dimension_numbers = #tpu.dot_dimension_numbers<[1], [0], [0], [1], [0, 0, 1, 1], [], []>} : vector<4x64xf32>, vector<64x512xf32>, vector<4x512xf32> -> vector<4x512xf32>
    %254 = vector.extract_strided_slice %253 {offsets = [0, 0], sizes = [4, 256], strides = [1, 1]} : vector<4x512xf32> to vector<4x256xf32>
    %255 = vector.extract_strided_slice %253 {offsets = [0, 256], sizes = [4, 256], strides = [1, 1]} : vector<4x512xf32> to vector<4x256xf32>
    %256 = vector.shape_cast %177 : vector<4x1xi1> to vector<4x1xi1>
    %257 = vector.broadcast %256 : vector<4x1xi1> to vector<4x256xi1>
    %258 = arith.select %257, %254, %255 : vector<4x256xi1>, vector<4x256xf32>
    %259 = arith.addf %252, %258 : vector<4x256xf32>
    %260 = vector.extract_strided_slice %259 {offsets = [0, 0], sizes = [4, 192], strides = [1, 1]} : vector<4x256xf32> to vector<4x192xf32>
    %261 = arith.negf %260 : vector<4x192xf32>
    %262 = math.exp %261 : vector<4x192xf32>
    %cst_169 = arith.constant 1.000000e+00 : f32
    %263 = vector.broadcast %cst_169 : f32 to vector<4x192xf32>
    %264 = arith.addf %263, %262 : vector<4x192xf32>
    %265 = arith.divf %263, %264 : vector<4x192xf32>
    %266 = vector.extract_strided_slice %265 {offsets = [0, 0], sizes = [4, 64], strides = [1, 1]} : vector<4x192xf32> to vector<4x64xf32>
    %267 = vector.extract_strided_slice %265 {offsets = [0, 64], sizes = [4, 64], strides = [1, 1]} : vector<4x192xf32> to vector<4x64xf32>
    %268 = vector.extract_strided_slice %265 {offsets = [0, 128], sizes = [4, 64], strides = [1, 1]} : vector<4x192xf32> to vector<4x64xf32>
    %269 = vector.extract_strided_slice %259 {offsets = [0, 192], sizes = [4, 64], strides = [1, 1]} : vector<4x256xf32> to vector<4x64xf32>
    %270 = math.tanh %269 : vector<4x64xf32>
    %271 = arith.mulf %267, %245 : vector<4x64xf32>
    %272 = arith.mulf %266, %270 : vector<4x64xf32>
    %273 = arith.addf %271, %272 : vector<4x64xf32>
    %274 = math.tanh %273 : vector<4x64xf32>
    %275 = arith.mulf %268, %274 : vector<4x64xf32>
    %276 = vector.extract_strided_slice %275 {offsets = [0, 0], sizes = [2, 64], strides = [1, 1]} : vector<4x64xf32> to vector<2x64xf32>
    %c6_170 = arith.constant 6 : index
    %c0_171 = arith.constant 0 : index
    %277 = vector.load %arg20[%c6_170, %c0_171] : memref<8x128xf32, #tpu.memory_space<vmem>>, vector<2x64xf32>
    tpu.vector_store %arg20[%c6_170, %c0_171], %276 {strides = array<i32>} : memref<8x128xf32, #tpu.memory_space<vmem>>, vector<2x64xf32>,
    %278 = vector.extract_strided_slice %275 {offsets = [2, 0], sizes = [2, 64], strides = [1, 1]} : vector<4x64xf32> to vector<2x64xf32>
    %c0_172 = arith.constant 0 : index
    %c64_173 = arith.constant 64 : index
    %279 = vector.load %arg20[%c0_172, %c64_173] : memref<8x128xf32, #tpu.memory_space<vmem>>, vector<2x64xf32>
    tpu.vector_store %arg20[%c0_172, %c64_173], %278 {strides = array<i32>} : memref<8x128xf32, #tpu.memory_space<vmem>>, vector<2x64xf32>,
    %c0_174 = arith.constant 0 : index
    %c0_175 = arith.constant 0 : index
    %280 = vector.load %arg20[%c0_174, %c0_175] : memref<8x128xf32, #tpu.memory_space<vmem>>, vector<8x128xf32>
    %c0_176 = arith.constant 0 : index
    %c0_177 = arith.constant 0 : index
    %281 = vector.load %arg10[%c0_176, %c0_177] : memref<128x512xf32, #tpu.memory_space<vmem>>, vector<128x512xf32>
    %cst_178 = arith.constant dense<0.000000e+00> : vector<8x512xf32>
    %282 = tpu.matmul %280, %281, %cst_178 {dimension_numbers = #tpu.dot_dimension_numbers<[1], [0], [0], [1], [0, 0, 1, 1], [], []>} : vector<8x128xf32>, vector<128x512xf32>, vector<8x512xf32> -> vector<8x512xf32>
    %283 = vector.extract_strided_slice %282 {offsets = [0, 0], sizes = [8, 256], strides = [1, 1]} : vector<8x512xf32> to vector<8x256xf32>
    %c0_179 = arith.constant 0 : index
    %c0_180 = arith.constant 0 : index
    %284 = vector.load %arg12[%c0_179, %c0_180] : memref<2x256xf32, #tpu.memory_space<vmem>>, vector<1x256xf32>
    %285 = vector.broadcast %284 : vector<1x256xf32> to vector<8x256xf32>
    %286 = arith.addf %283, %285 : vector<8x256xf32>
    %287 = vector.extract_strided_slice %282 {offsets = [6, 256], sizes = [2, 256], strides = [1, 1]} : vector<8x512xf32> to vector<2x256xf32>
    %c1_181 = arith.constant 1 : index
    %c0_182 = arith.constant 0 : index
    %288 = vector.load %arg12[%c1_181, %c0_182] : memref<2x256xf32, #tpu.memory_space<vmem>>, vector<1x256xf32>
    %289 = vector.broadcast %288 : vector<1x256xf32> to vector<2x256xf32>
    %290 = arith.addf %287, %289 : vector<2x256xf32>
    %291 = vector.extract_strided_slice %286 {offsets = [0, 0], sizes = [2, 256], strides = [1, 1]} : vector<8x256xf32> to vector<2x256xf32>
    %c0_183 = arith.constant 0 : index
    %c0_184 = arith.constant 0 : index
    %292 = vector.load %arg19[%c0_183, %c0_184] : memref<16x256xf32, #tpu.memory_space<vmem>>, vector<2x256xf32>
    tpu.vector_store %arg19[%c0_183, %c0_184], %291 {strides = array<i32>} : memref<16x256xf32, #tpu.memory_space<vmem>>, vector<2x256xf32>,
    %c2_185 = arith.constant 2 : index
    %c0_186 = arith.constant 0 : index
    %293 = vector.load %arg19[%c2_185, %c0_186] : memref<16x256xf32, #tpu.memory_space<vmem>>, vector<2x256xf32>
    tpu.vector_store %arg19[%c2_185, %c0_186], %290 {strides = array<i32>} : memref<16x256xf32, #tpu.memory_space<vmem>>, vector<2x256xf32>,
    %c0_187 = arith.constant 0 : index
    %c0_188 = arith.constant 0 : index
    %294 = vector.load %arg19[%c0_187, %c0_188] : memref<16x256xf32, #tpu.memory_space<vmem>>, vector<4x256xf32>
    %295 = vector.extract_strided_slice %294 {offsets = [0, 0], sizes = [4, 192], strides = [1, 1]} : vector<4x256xf32> to vector<4x192xf32>
    %296 = arith.negf %295 : vector<4x192xf32>
    %297 = math.exp %296 : vector<4x192xf32>
    %cst_189 = arith.constant 1.000000e+00 : f32
    %298 = vector.broadcast %cst_189 : f32 to vector<4x192xf32>
    %299 = arith.addf %298, %297 : vector<4x192xf32>
    %300 = arith.divf %298, %299 : vector<4x192xf32>
    %301 = vector.extract_strided_slice %300 {offsets = [0, 0], sizes = [4, 64], strides = [1, 1]} : vector<4x192xf32> to vector<4x64xf32>
    %302 = vector.extract_strided_slice %300 {offsets = [0, 128], sizes = [4, 64], strides = [1, 1]} : vector<4x192xf32> to vector<4x64xf32>
    %303 = vector.extract_strided_slice %294 {offsets = [0, 192], sizes = [4, 64], strides = [1, 1]} : vector<4x256xf32> to vector<4x64xf32>
    %304 = math.tanh %303 : vector<4x64xf32>
    %305 = arith.mulf %301, %304 : vector<4x64xf32>
    %306 = math.tanh %305 : vector<4x64xf32>
    %307 = arith.mulf %302, %306 : vector<4x64xf32>
    %308 = vector.extract_strided_slice %307 {offsets = [0, 0], sizes = [2, 64], strides = [1, 1]} : vector<4x64xf32> to vector<2x64xf32>
    %309 = vector.extract_strided_slice %305 {offsets = [0, 0], sizes = [2, 64], strides = [1, 1]} : vector<4x64xf32> to vector<2x64xf32>
    %310 = vector.extract_strided_slice %307 {offsets = [2, 0], sizes = [2, 64], strides = [1, 1]} : vector<4x64xf32> to vector<2x64xf32>
    %c0_190 = arith.constant 0 : index
    %c0_191 = arith.constant 0 : index
    %311 = vector.load %arg11[%c0_190, %c0_191] : memref<64x256xf32, #tpu.memory_space<vmem>>, vector<64x256xf32>
    %312 = vector.extract_strided_slice %286 {offsets = [2, 0], sizes = [2, 256], strides = [1, 1]} : vector<8x256xf32> to vector<2x256xf32>
    %cst_192 = arith.constant dense<0.000000e+00> : vector<2x256xf32>
    %313 = tpu.matmul %308, %311, %cst_192 {dimension_numbers = #tpu.dot_dimension_numbers<[1], [0], [0], [1], [0, 0, 1, 1], [], []>} : vector<2x64xf32>, vector<64x256xf32>, vector<2x256xf32> -> vector<2x256xf32>
    %314 = arith.addf %312, %313 : vector<2x256xf32>
    %315 = vector.extract_strided_slice %314 {offsets = [0, 0], sizes = [2, 192], strides = [1, 1]} : vector<2x256xf32> to vector<2x192xf32>
    %316 = arith.negf %315 : vector<2x192xf32>
    %317 = math.exp %316 : vector<2x192xf32>
    %cst_193 = arith.constant 1.000000e+00 : f32
    %318 = vector.broadcast %cst_193 : f32 to vector<2x192xf32>
    %319 = arith.addf %318, %317 : vector<2x192xf32>
    %320 = arith.divf %318, %319 : vector<2x192xf32>
    %321 = vector.extract_strided_slice %320 {offsets = [0, 0], sizes = [2, 64], strides = [1, 1]} : vector<2x192xf32> to vector<2x64xf32>
    %322 = vector.extract_strided_slice %320 {offsets = [0, 64], sizes = [2, 64], strides = [1, 1]} : vector<2x192xf32> to vector<2x64xf32>
    %323 = vector.extract_strided_slice %320 {offsets = [0, 128], sizes = [2, 64], strides = [1, 1]} : vector<2x192xf32> to vector<2x64xf32>
    %324 = vector.extract_strided_slice %314 {offsets = [0, 192], sizes = [2, 64], strides = [1, 1]} : vector<2x256xf32> to vector<2x64xf32>
    %325 = math.tanh %324 : vector<2x64xf32>
    %326 = arith.mulf %322, %309 : vector<2x64xf32>
    %327 = arith.mulf %321, %325 : vector<2x64xf32>
    %328 = arith.addf %326, %327 : vector<2x64xf32>
    %329 = math.tanh %328 : vector<2x64xf32>
    %330 = arith.mulf %323, %329 : vector<2x64xf32>
    %331 = vector.extract_strided_slice %286 {offsets = [4, 0], sizes = [2, 256], strides = [1, 1]} : vector<8x256xf32> to vector<2x256xf32>
    %cst_194 = arith.constant dense<0.000000e+00> : vector<2x256xf32>
    %332 = tpu.matmul %330, %311, %cst_194 {dimension_numbers = #tpu.dot_dimension_numbers<[1], [0], [0], [1], [0, 0, 1, 1], [], []>} : vector<2x64xf32>, vector<64x256xf32>, vector<2x256xf32> -> vector<2x256xf32>
    %333 = arith.addf %331, %332 : vector<2x256xf32>
    %334 = vector.extract_strided_slice %333 {offsets = [0, 0], sizes = [2, 192], strides = [1, 1]} : vector<2x256xf32> to vector<2x192xf32>
    %335 = arith.negf %334 : vector<2x192xf32>
    %336 = math.exp %335 : vector<2x192xf32>
    %cst_195 = arith.constant 1.000000e+00 : f32
    %337 = vector.broadcast %cst_195 : f32 to vector<2x192xf32>
    %338 = arith.addf %337, %336 : vector<2x192xf32>
    %339 = arith.divf %337, %338 : vector<2x192xf32>
    %340 = vector.extract_strided_slice %339 {offsets = [0, 0], sizes = [2, 64], strides = [1, 1]} : vector<2x192xf32> to vector<2x64xf32>
    %341 = vector.extract_strided_slice %339 {offsets = [0, 64], sizes = [2, 64], strides = [1, 1]} : vector<2x192xf32> to vector<2x64xf32>
    %342 = vector.extract_strided_slice %339 {offsets = [0, 128], sizes = [2, 64], strides = [1, 1]} : vector<2x192xf32> to vector<2x64xf32>
    %343 = vector.extract_strided_slice %333 {offsets = [0, 192], sizes = [2, 64], strides = [1, 1]} : vector<2x256xf32> to vector<2x64xf32>
    %344 = math.tanh %343 : vector<2x64xf32>
    %345 = arith.mulf %341, %328 : vector<2x64xf32>
    %346 = arith.mulf %340, %344 : vector<2x64xf32>
    %347 = arith.addf %345, %346 : vector<2x64xf32>
    %348 = math.tanh %347 : vector<2x64xf32>
    %349 = arith.mulf %342, %348 : vector<2x64xf32>
    %350 = vector.extract_strided_slice %286 {offsets = [6, 0], sizes = [2, 256], strides = [1, 1]} : vector<8x256xf32> to vector<2x256xf32>
    %cst_196 = arith.constant dense<0.000000e+00> : vector<2x256xf32>
    %351 = tpu.matmul %349, %311, %cst_196 {dimension_numbers = #tpu.dot_dimension_numbers<[1], [0], [0], [1], [0, 0, 1, 1], [], []>} : vector<2x64xf32>, vector<64x256xf32>, vector<2x256xf32> -> vector<2x256xf32>
    %352 = arith.addf %350, %351 : vector<2x256xf32>
    %353 = vector.extract_strided_slice %352 {offsets = [0, 0], sizes = [2, 192], strides = [1, 1]} : vector<2x256xf32> to vector<2x192xf32>
    %354 = arith.negf %353 : vector<2x192xf32>
    %355 = math.exp %354 : vector<2x192xf32>
    %cst_197 = arith.constant 1.000000e+00 : f32
    %356 = vector.broadcast %cst_197 : f32 to vector<2x192xf32>
    %357 = arith.addf %356, %355 : vector<2x192xf32>
    %358 = arith.divf %356, %357 : vector<2x192xf32>
    %359 = vector.extract_strided_slice %358 {offsets = [0, 0], sizes = [2, 64], strides = [1, 1]} : vector<2x192xf32> to vector<2x64xf32>
    %360 = vector.extract_strided_slice %358 {offsets = [0, 64], sizes = [2, 64], strides = [1, 1]} : vector<2x192xf32> to vector<2x64xf32>
    %361 = vector.extract_strided_slice %358 {offsets = [0, 128], sizes = [2, 64], strides = [1, 1]} : vector<2x192xf32> to vector<2x64xf32>
    %362 = vector.extract_strided_slice %352 {offsets = [0, 192], sizes = [2, 64], strides = [1, 1]} : vector<2x256xf32> to vector<2x64xf32>
    %363 = math.tanh %362 : vector<2x64xf32>
    %364 = arith.mulf %360, %347 : vector<2x64xf32>
    %365 = arith.mulf %359, %363 : vector<2x64xf32>
    %366 = arith.addf %364, %365 : vector<2x64xf32>
    %367 = math.tanh %366 : vector<2x64xf32>
    %368 = arith.mulf %361, %367 : vector<2x64xf32>
    %c0_198 = arith.constant 0 : index
    %c0_199 = arith.constant 0 : index
    %369 = vector.load %arg16[%c0_198, %c0_199] : memref<7x64xf32, #tpu.memory_space<vmem>>, vector<7x64xf32>
    %c0_200 = arith.constant 0 : index
    %c0_201 = arith.constant 0 : index
    %370 = vector.load %arg13[%c0_200, %c0_201] : memref<128x64xf32, #tpu.memory_space<vmem>>, vector<64x64xf32>
    %cst_202 = arith.constant dense<0.000000e+00> : vector<2x64xf32>
    %371 = tpu.matmul %368, %370, %cst_202 {dimension_numbers = #tpu.dot_dimension_numbers<[1], [0], [0], [1], [0, 0, 1, 1], [], []>} : vector<2x64xf32>, vector<64x64xf32>, vector<2x64xf32> -> vector<2x64xf32>
    %c64_203 = arith.constant 64 : index
    %c0_204 = arith.constant 0 : index
    %372 = vector.load %arg13[%c64_203, %c0_204] : memref<128x64xf32, #tpu.memory_space<vmem>>, vector<64x64xf32>
    %cst_205 = arith.constant dense<0.000000e+00> : vector<2x64xf32>
    %373 = tpu.matmul %310, %372, %cst_205 {dimension_numbers = #tpu.dot_dimension_numbers<[1], [0], [0], [1], [0, 0, 1, 1], [], []>} : vector<2x64xf32>, vector<64x64xf32>, vector<2x64xf32> -> vector<2x64xf32>
    %374 = arith.addf %371, %373 : vector<2x64xf32>
    %375 = vector.extract_strided_slice %369 {offsets = [0, 0], sizes = [1, 64], strides = [1, 1]} : vector<7x64xf32> to vector<1x64xf32>
    %376 = vector.broadcast %375 : vector<1x64xf32> to vector<2x64xf32>
    %377 = arith.addf %374, %376 : vector<2x64xf32>
    %378 = vector.extract_strided_slice %369 {offsets = [1, 0], sizes = [1, 64], strides = [1, 1]} : vector<7x64xf32> to vector<1x64xf32>
    %379 = vector.extract_strided_slice %369 {offsets = [2, 0], sizes = [1, 64], strides = [1, 1]} : vector<7x64xf32> to vector<1x64xf32>
    %cst_206 = arith.constant dense<0.000000e+00> : vector<2xf32>
    %380 = vector.multi_reduction <add>, %377, %cst_206 [1] : vector<2x64xf32> to vector<2xf32>
    %381 = vector.shape_cast %380 : vector<2xf32> to vector<2x1xf32>
    %cst_207 = arith.constant 6.400000e+01 : f32
    %382 = vector.broadcast %cst_207 : f32 to vector<2x1xf32>
    %383 = arith.divf %381, %382 : vector<2x1xf32>
    %384 = vector.broadcast %383 : vector<2x1xf32> to vector<2x64xf32>
    %385 = arith.subf %377, %384 : vector<2x64xf32>
    %386 = arith.mulf %385, %385 : vector<2x64xf32>
    %cst_208 = arith.constant dense<0.000000e+00> : vector<2xf32>
    %387 = vector.multi_reduction <add>, %386, %cst_208 [1] : vector<2x64xf32> to vector<2xf32>
    %388 = vector.shape_cast %387 : vector<2xf32> to vector<2x1xf32>
    %cst_209 = arith.constant 6.400000e+01 : f32
    %389 = vector.broadcast %cst_209 : f32 to vector<2x1xf32>
    %390 = arith.divf %388, %389 : vector<2x1xf32>
    %391 = vector.broadcast %383 : vector<2x1xf32> to vector<2x64xf32>
    %392 = arith.subf %377, %391 : vector<2x64xf32>
    %cst_210 = arith.constant 9.99999974E-6 : f32
    %393 = vector.broadcast %cst_210 : f32 to vector<2x1xf32>
    %394 = arith.addf %390, %393 : vector<2x1xf32>
    %395 = math.rsqrt %394 : vector<2x1xf32>
    %396 = vector.broadcast %395 : vector<2x1xf32> to vector<2x64xf32>
    %397 = arith.mulf %392, %396 : vector<2x64xf32>
    %398 = vector.broadcast %378 : vector<1x64xf32> to vector<2x64xf32>
    %399 = arith.mulf %397, %398 : vector<2x64xf32>
    %400 = vector.broadcast %379 : vector<1x64xf32> to vector<2x64xf32>
    %401 = arith.addf %399, %400 : vector<2x64xf32>
    %cst_211 = arith.constant 0.000000e+00 : f32
    %402 = vector.broadcast %cst_211 : f32 to vector<2x64xf32>
    %403 = arith.cmpf ogt, %401, %402 : vector<2x64xf32>
    %cst_212 = arith.constant 0.000000e+00 : f32
    %404 = vector.broadcast %cst_212 : f32 to vector<2x64xf32>
    %405 = arith.minimumf %401, %404 : vector<2x64xf32>
    %406 = math.exp %405 : vector<2x64xf32>
    %cst_213 = arith.constant 1.000000e+00 : f32
    %407 = vector.broadcast %cst_213 : f32 to vector<2x64xf32>
    %408 = arith.subf %406, %407 : vector<2x64xf32>
    %409 = arith.select %403, %401, %408 : vector<2x64xi1>, vector<2x64xf32>
    %c0_214 = arith.constant 0 : index
    %c0_215 = arith.constant 0 : index
    %410 = vector.load %arg14[%c0_214, %c0_215] : memref<64x32xf32, #tpu.memory_space<vmem>>, vector<64x32xf32>
    %cst_216 = arith.constant dense<0.000000e+00> : vector<2x32xf32>
    %411 = tpu.matmul %409, %410, %cst_216 {dimension_numbers = #tpu.dot_dimension_numbers<[1], [0], [0], [1], [0, 0, 1, 1], [], []>} : vector<2x64xf32>, vector<64x32xf32>, vector<2x32xf32> -> vector<2x32xf32>
    %412 = vector.extract_strided_slice %369 {offsets = [3, 0], sizes = [1, 32], strides = [1, 1]} : vector<7x64xf32> to vector<1x32xf32>
    %413 = vector.broadcast %412 : vector<1x32xf32> to vector<2x32xf32>
    %414 = arith.addf %411, %413 : vector<2x32xf32>
    %415 = vector.extract_strided_slice %369 {offsets = [4, 0], sizes = [1, 32], strides = [1, 1]} : vector<7x64xf32> to vector<1x32xf32>
    %416 = vector.extract_strided_slice %369 {offsets = [5, 0], sizes = [1, 32], strides = [1, 1]} : vector<7x64xf32> to vector<1x32xf32>
    %cst_217 = arith.constant dense<0.000000e+00> : vector<2xf32>
    %417 = vector.multi_reduction <add>, %414, %cst_217 [1] : vector<2x32xf32> to vector<2xf32>
    %418 = vector.shape_cast %417 : vector<2xf32> to vector<2x1xf32>
    %cst_218 = arith.constant 3.200000e+01 : f32
    %419 = vector.broadcast %cst_218 : f32 to vector<2x1xf32>
    %420 = arith.divf %418, %419 : vector<2x1xf32>
    %421 = vector.broadcast %420 : vector<2x1xf32> to vector<2x32xf32>
    %422 = arith.subf %414, %421 : vector<2x32xf32>
    %423 = arith.mulf %422, %422 : vector<2x32xf32>
    %cst_219 = arith.constant dense<0.000000e+00> : vector<2xf32>
    %424 = vector.multi_reduction <add>, %423, %cst_219 [1] : vector<2x32xf32> to vector<2xf32>
    %425 = vector.shape_cast %424 : vector<2xf32> to vector<2x1xf32>
    %cst_220 = arith.constant 3.200000e+01 : f32
    %426 = vector.broadcast %cst_220 : f32 to vector<2x1xf32>
    %427 = arith.divf %425, %426 : vector<2x1xf32>
    %428 = vector.broadcast %420 : vector<2x1xf32> to vector<2x32xf32>
    %429 = arith.subf %414, %428 : vector<2x32xf32>
    %cst_221 = arith.constant 9.99999974E-6 : f32
    %430 = vector.broadcast %cst_221 : f32 to vector<2x1xf32>
    %431 = arith.addf %427, %430 : vector<2x1xf32>
    %432 = math.rsqrt %431 : vector<2x1xf32>
    %433 = vector.broadcast %432 : vector<2x1xf32> to vector<2x32xf32>
    %434 = arith.mulf %429, %433 : vector<2x32xf32>
    %435 = vector.broadcast %415 : vector<1x32xf32> to vector<2x32xf32>
    %436 = arith.mulf %434, %435 : vector<2x32xf32>
    %437 = vector.broadcast %416 : vector<1x32xf32> to vector<2x32xf32>
    %438 = arith.addf %436, %437 : vector<2x32xf32>
    %cst_222 = arith.constant 0.000000e+00 : f32
    %439 = vector.broadcast %cst_222 : f32 to vector<2x32xf32>
    %440 = arith.cmpf ogt, %438, %439 : vector<2x32xf32>
    %cst_223 = arith.constant 0.000000e+00 : f32
    %441 = vector.broadcast %cst_223 : f32 to vector<2x32xf32>
    %442 = arith.minimumf %438, %441 : vector<2x32xf32>
    %443 = math.exp %442 : vector<2x32xf32>
    %cst_224 = arith.constant 1.000000e+00 : f32
    %444 = vector.broadcast %cst_224 : f32 to vector<2x32xf32>
    %445 = arith.subf %443, %444 : vector<2x32xf32>
    %446 = arith.select %440, %438, %445 : vector<2x32xi1>, vector<2x32xf32>
    %c0_225 = arith.constant 0 : index
    %c0_226 = arith.constant 0 : index
    %447 = vector.load %arg15[%c0_225, %c0_226] : memref<32x8xf32, #tpu.memory_space<vmem>>, vector<32x8xf32>
    %cst_227 = arith.constant dense<0.000000e+00> : vector<2x8xf32>
    %448 = tpu.matmul %446, %447, %cst_227 {dimension_numbers = #tpu.dot_dimension_numbers<[1], [0], [0], [1], [0, 0, 1, 1], [], []>} : vector<2x32xf32>, vector<32x8xf32>, vector<2x8xf32> -> vector<2x8xf32>
    %449 = vector.extract_strided_slice %369 {offsets = [6, 0], sizes = [1, 8], strides = [1, 1]} : vector<7x64xf32> to vector<1x8xf32>
    %450 = vector.broadcast %449 : vector<1x8xf32> to vector<2x8xf32>
    %451 = arith.addf %448, %450 : vector<2x8xf32>
    %c0_228 = arith.constant 0 : index
    %c0_229 = arith.constant 0 : index
    %452 = vector.load %arg17[%c0_228, %c0_229] : memref<2x8xf32, #tpu.memory_space<vmem>>, vector<2x8xf32>
    tpu.vector_store %arg17[%c0_228, %c0_229], %451 {strides = array<i32>} : memref<2x8xf32, #tpu.memory_space<vmem>>, vector<2x8xf32>,
    return
  }
}

</mosaic_0001>

<bundles_post_ra>
// kernel: forward.1
= control target key start
LH: loop header
LB: loop body
LE: loop exit
PB: predicated region body
PF: predicated region fallthrough
CT: control target
= control target key end

     0   :  { %s8248_s0 = inlined_call_operand.vmem [shape: f32[128,8], index: 0, kind: input, shape index: {}]   ;;  %s8249_s1 = inlined_call_operand.vmem [shape: f32[3,8,32], index: 1, kind: input, shape index: {}]   ;;  %s8250_s2 = inlined_call_operand.vmem [shape: f32[3,32,64], index: 2, kind: input, shape index: {}]   ;;  %s8251_s3 = inlined_call_operand.vmem [shape: f32[3,64,128], index: 3, kind: input, shape index: {}]   ;;  %s8252_s4 = inlined_call_operand.vmem [shape: f32[3,128,256], index: 4, kind: input, shape index: {}]   ;;  %s8253_s5 = inlined_call_operand.vmem [shape: f32[4,2,256], index: 5, kind: input, shape index: {}]   ;;  %s8254_s6 = inlined_call_operand.vmem [shape: f32[4,64,128], index: 6, kind: input, shape index: {}]   ;;  %s8255_s7 = inlined_call_operand.vmem [shape: f32[256,512], index: 7, kind: input, shape index: {}]   ;;  %s8256_s8 = inlined_call_operand.vmem [shape: f32[64,512], index: 8, kind: input, shape index: {}]   ;;  %s8257_s9 = inlined_call_operand.vmem [shape: f32[2,256], index: 9, kind: input, shape index: {}]   ;;  %s8258_s10 = inlined_call_operand.vmem [shape: f32[128,512], index: 10, kind: input, shape index: {}]   ;;  %s8259_s11 = inlined_call_operand.vmem [shape: f32[64,256], index: 11, kind: input, shape index: {}]   ;;  %s8260_s12 = inlined_call_operand.vmem [shape: f32[2,256], index: 12, kind: input, shape index: {}]   ;;  %s8261_s13 = inlined_call_operand.vmem [shape: f32[128,64], index: 13, kind: input, shape index: {}]   ;;  %s8262_s14 = inlined_call_operand.vmem [shape: f32[64,32], index: 14, kind: input, shape index: {}]   ;;  %s8263_s15 = inlined_call_operand.vmem [shape: f32[32,8], index: 15, kind: input, shape index: {}]   ;;  %s8264_s16 = inlined_call_operand.vmem [shape: f32[7,64], index: 16, kind: input, shape index: {}]   ;;  %s8265_s17 = inlined_call_operand.hbm [shape: f32[2,8], index: 17, kind: output, shape index: {}]  }
   0x1   :  { %8269 = sst [smem:[#allocation8_spill]] %s8248_s0 }
   0x2   :  { %8270 = sst [smem:[#allocation9_spill]] %s8249_s1 }
   0x3   :  { %8271 = sst [smem:[#allocation10_spill]] %s8260_s12 }
   0x4   :  { %s8272_s26 = sld [smem:[#allocation9_spill]]  ;;  %s8273_s12 = sld [smem:[#allocation8_spill]]  ;;  %vm76_vm0 = vcmask 64512   ;;  %vm73_vm1 = vcmask 58368   ;;  %v6245_v6 = vmov 0.0   ;;  %vm975_vm2 = vcmask 254976  }
   0x5   :  { %74 = vst.msk [vmem:[#allocation2] sm:$0x3] %vm73_vm1, %v6245_v6  ;;  %75 = vst.msk [vmem:[#allocation2 + $0x82] sm:$0x3] %vm73_vm1, %v6245_v6 }
   0xa   :  { %v4576_v0 = vld [vmem:[%s8272_s26 + $0x8] sm:$0xff]  ;;  %v57_v1 = vld [vmem:[%s8273_s12] sm:$0xff]  ;;  %v4609_v3 = vld [vmem:[%s8272_s26 + $0x10] sm:$0xff] }
   0xb   :  { %v58_v2 = vld [vmem:[%s8273_s12 + $0x8] sm:$0xff]  ;;  %5055 = vmatprep.subr.mxu0 %v4576_v0  ;;  %77 = vst.msk [vmem:[#allocation2 + $0x2] sm:$0xff] %vm76_vm0, %v57_v1  ;;  %5057 = vmatprep.mubr.msk.f32.mxu0 %vm76_vm0, %v57_v1  ;;  %v59_v4 = vld [vmem:[%s8273_s12 + $0x10] sm:$0xff]  ;;  %v60_v5 = vld [vmem:[%s8273_s12 + $0x18] sm:$0xff] }
   0xc   :  { %78 = vst.msk [vmem:[#allocation2 + $0xa] sm:$0xff] %vm76_vm0, %v58_v2  ;;  %5056 = vmatpush3.msra.mxu0 %v4576_v0  ;;  %79 = vst.msk [vmem:[#allocation2 + $0x12] sm:$0xff] %vm76_vm0, %v59_v4  ;;  %v61_v7 = vld [vmem:[%s8273_s12 + $0x20] sm:$0xff]  ;;  %v62_v8 = vld [vmem:[%s8273_s12 + $0x28] sm:$0xff] }
   0xd   :  { %80 = vst.msk [vmem:[#allocation2 + $0x1a] sm:$0xff] %vm76_vm0, %v60_v5  ;;  %v63_v9 = vld [vmem:[%s8273_s12 + $0x30] sm:$0xff]  ;;  %5058 = vmatmul.mubr.msk.f32.vlgmr.msra.gmra.mrb[0].mxu0 %vm76_vm0, %v58_v2  ;;  %5081 = vmatprep.subr.mxu0 %v4609_v3  ;;  %81 = vst.msk [vmem:[#allocation2 + $0x22] sm:$0xff] %vm76_vm0, %v61_v7  ;;  %v64_v10 = vld [vmem:[%s8273_s12 + $0x38] sm:$0xff] }
   0xe   :  { %82 = vst.msk [vmem:[#allocation2 + $0x2a] sm:$0xff] %vm76_vm0, %v62_v8  ;;  %83 = vst.msk [vmem:[#allocation2 + $0x32] sm:$0xff] %vm76_vm0, %v63_v9  ;;  %v65_v11 = vld [vmem:[%s8273_s12 + $0x40] sm:$0xff]  ;;  %v66_v12 = vld [vmem:[%s8273_s12 + $0x48] sm:$0xff]  ;;  %5082 = vmatpush3.msra.mxu0 %v4609_v3  ;;  %5060 = vmatprep.mubr.msk.f32.mxu0 %vm76_vm0, %v59_v4 }
   0xf   :  { %84 = vst.msk [vmem:[#allocation2 + $0x3a] sm:$0xff] %vm76_vm0, %v64_v10  ;;  %85 = vst.msk [vmem:[#allocation2 + $0x42] sm:$0xff] %vm76_vm0, %v65_v11  ;;  %v67_v13 = vld [vmem:[%s8273_s12 + $0x50] sm:$0xff]  ;;  %v68_v14 = vld [vmem:[%s8273_s12 + $0x58] sm:$0xff] }
  0x10   :  { %86 = vst.msk [vmem:[#allocation2 + $0x4a] sm:$0xff] %vm76_vm0, %v66_v12  ;;  %v69_v15 = vld [vmem:[%s8273_s12 + $0x60] sm:$0xff]  ;;  %87 = vst.msk [vmem:[#allocation2 + $0x52] sm:$0xff] %vm76_vm0, %v67_v13  ;;  %v70_v16 = vld [vmem:[%s8273_s12 + $0x68] sm:$0xff] }
  0x11   :  { %88 = vst.msk [vmem:[#allocation2 + $0x5a] sm:$0xff] %vm76_vm0, %v68_v14  ;;  %89 = vst.msk [vmem:[#allocation2 + $0x62] sm:$0xff] %vm76_vm0, %v69_v15  ;;  %v71_v17 = vld [vmem:[%s8273_s12 + $0x70] sm:$0xff]  ;;  %v72_v18 = vld [vmem:[%s8273_s12 + $0x78] sm:$0xff] }
  0x12   :  { %90 = vst.msk [vmem:[#allocation2 + $0x6a] sm:$0xff] %vm76_vm0, %v70_v16  ;;  %91 = vst.msk [vmem:[#allocation2 + $0x72] sm:$0xff] %vm76_vm0, %v71_v17  ;;  %v127_v19 = vld [vmem:[%s8272_s26] sm:$0xff] }
  0x13   :  { %92 = vst.msk [vmem:[#allocation2 + $0x7a] sm:$0xff] %vm76_vm0, %v72_v18 }
  0x14   :  { %22 = vsyncpa [#allocation6], 0  ;;  %5061 = vmatmul.mubr.msk.f32.gmra.mrb[2].mxu0 %vm76_vm0, %v60_v5  ;;  %5029 = vmatprep.subr.mxu1 %v127_v19  ;;  %v93_v20 = vld [vmem:[#allocation2] sm:$0xff]  ;;  %v94_v21 = vld [vmem:[#allocation2 + $0x8] sm:$0xff]  ;;  %v726_v1 = vlaneseq  ;;  %s6246_s29 = smov 64   ;;  %s8274_s30 = sld [smem:[#allocation10_spill]] }
  0x15   :  { %5063 = vmatprep.mubr.msk.f32.mxu0 %vm76_vm0, %v61_v7  ;;  %5030 = vmatpush3.msra.mxu1 %v127_v19  ;;  %v95_v22 = vld [vmem:[#allocation2 + $0x10] sm:$0xff]  ;;  %976 = vst.msk [vmem:[#allocation2] sm:$0x3] %vm975_vm2, %v6245_v6  ;;  %v96_v23 = vld [vmem:[#allocation2 + $0x18] sm:$0xff]  ;;  %v97_v24 = vld [vmem:[#allocation2 + $0x20] sm:$0xff] }
  0x16   :  { %5031 = vmatprep.mubr.msk.f32.mxu1 %vm76_vm0, %v93_v20  ;;  %v116_v25 = vld [vmem:[#allocation2 + $0x3c] sm:$0xff]  ;;  %v98_v27 = vld [vmem:[#allocation2 + $0x28] sm:$0xff]  ;;  %v99_v28 = vld [vmem:[#allocation2 + $0x30] sm:$0xff]  ;;  %v6484_v4 = vshrl.u32 %v726_v1, 7 }
  0x17   :  { %5032 = vmatmul.mubr.msk.f32.vlgmr.msra.gmra.mrb[0].mxu1 %vm76_vm0, %v94_v21  ;;  %v101_v26 = vld [vmem:[#allocation2 + $0x40] sm:$0xff]  ;;  %v100_v29 = vld [vmem:[#allocation2 + $0x38] sm:$0xff]  ;;  %v102_v30 = vld [vmem:[#allocation2 + $0x48] sm:$0xff] }
  0x18   :  { %5064 = vmatmul.mubr.msk.f32.gmra.mrb[4].mxu0 %vm76_vm0, %v62_v8  ;;  %5034 = vmatprep.mubr.msk.f32.mxu1 %vm76_vm0, %v95_v22  ;;  %977 = vst.msk [vmem:[#allocation2 + $0x42] sm:$0x3] %vm975_vm2, %v6245_v6  ;;  %v103_v31 = vld [vmem:[#allocation2 + $0x50] sm:$0xff]  ;;  %v104_v32 = vld [vmem:[#allocation2 + $0x58] sm:$0xff]  ;;  %v105_v33 = vld [vmem:[#allocation2 + $0x60] sm:$0xff]  ;;  %v6489_v8 = vsub.s32 0, %v6484_v4 }
  0x19   :  { %5066 = vmatprep.mubr.msk.f32.mxu0 %vm76_vm0, %v63_v9  ;;  %v109_v34 = vld [vmem:[#allocation2 + $0x4] sm:$0xff]  ;;  %v110_v36 = vld [vmem:[#allocation2 + $0xc] sm:$0xff]  ;;  %v111_v38 = vld [vmem:[#allocation2 + $0x14] sm:$0xff] }
  0x1a   :  { %v106_v35 = vld [vmem:[#allocation2 + $0x68] sm:$0xff]  ;;  %v107_v37 = vld [vmem:[#allocation2 + $0x70] sm:$0xff]  ;;  %v108_v39 = vld [vmem:[#allocation2 + $0x78] sm:$0xff] }
  0x1b   :  { %5035 = vmatmul.mubr.msk.f32.gmra.mrb[2].mxu1 %vm76_vm0, %v96_v23  ;;  %v112_v40 = vld [vmem:[#allocation2 + $0x1c] sm:$0xff]  ;;  %v113_v41 = vld [vmem:[#allocation2 + $0x24] sm:$0xff]  ;;  %v114_v42 = vld [vmem:[#allocation2 + $0x2c] sm:$0xff] }
  0x1c   :  { %5067 = vmatmul.mubr.msk.f32.gmra.mrb[6].mxu0 %vm76_vm0, %v64_v10  ;;  %5037 = vmatprep.mubr.msk.f32.mxu1 %vm76_vm0, %v97_v24  ;;  %v115_v43 = vld [vmem:[#allocation2 + $0x34] sm:$0xff]  ;;  %v117_v44 = vld [vmem:[#allocation2 + $0x44] sm:$0xff]  ;;  %v118_v45 = vld [vmem:[#allocation2 + $0x4c] sm:$0xff] }
  0x1d   :  { %5069 = vmatprep.mubr.msk.f32.mxu0 %vm76_vm0, %v65_v11  ;;  %v119_v46 = vld [vmem:[#allocation2 + $0x54] sm:$0xff]  ;;  %v120_v47 = vld [vmem:[#allocation2 + $0x5c] sm:$0xff]  ;;  %v121_v48 = vld [vmem:[#allocation2 + $0x64] sm:$0xff] }
  0x1e   :  { %v122_v49 = vld [vmem:[#allocation2 + $0x6c] sm:$0xff]  ;;  %v123_v50 = vld [vmem:[#allocation2 + $0x74] sm:$0xff]  ;;  %v124_v51 = vld [vmem:[#allocation2 + $0x7c] sm:$0xff] }
  0x1f   :  { %5038 = vmatmul.mubr.msk.f32.gmra.mrb[4].mxu1 %vm76_vm0, %v98_v27  ;;  %v862_v52 = vld [vmem:[%s8254_s6] sm:$0xff]  ;;  %v1009_v54 = vld [vmem:[%s8250_s2 + $0x8] sm:$0xff]  ;;  %v1010_v55 = vld [vmem:[%s8250_s2 + $0x10] sm:$0xff] }
  0x20   :  { %5070 = vmatmul.mubr.msk.f32.gmra.mrb[8].mxu0 %vm76_vm0, %v66_v12  ;;  %5040 = vmatprep.mubr.msk.f32.mxu1 %vm76_vm0, %v99_v28  ;;  %v1008_v53 = vld [vmem:[%s8250_s2] sm:$0xff]  ;;  %v1011_v57 = vld [vmem:[%s8250_s2 + $0x18] sm:$0xff]  ;;  %v6499_v12 = vsub.s32 1, %v6484_v4 }
  0x21   :  { %5072 = vmatprep.mubr.msk.f32.mxu0 %vm76_vm0, %v67_v13  ;;  %v5410_v56 = vpack.c.bf16 %v1009_v54, %v1008_v53  ;;  %v5414_v58 = vpack.c.bf16 %v1011_v57, %v1010_v55  ;;  %v725_v10 = vld [vmem:[%s8253_s5] sm:$0xf] }
  0x22   :  { %v6502_v13 = vrot.slane %v725_v10, %v6489_v8 }
  0x23   :  { %5041 = vmatmul.mubr.msk.f32.gmra.mrb[6].mxu1 %vm76_vm0, %v100_v29  ;;  %5411 = vmatprep.subr.bf16.mxu1 %v5410_v56 }
  0x24   :  { %5073 = vmatmul.mubr.msk.f32.gmra.mrb[10].mxu0 %vm76_vm0, %v68_v14  ;;  %5043 = vmatprep.mubr.msk.f32.mxu1 %vm76_vm0, %v101_v26 }
  0x25   :  { %5075 = vmatprep.mubr.msk.f32.mxu0 %vm76_vm0, %v69_v15  ;;  %5413 = vmatpush3.bf16.msra.mxu1 %v5410_v56 }
  0x26   :  { %5415 = vmatprep.subr.bf16.mxu1 %v5414_v58 }
  0x27   :  { %5044 = vmatmul.mubr.msk.f32.gmra.mrb[8].mxu1 %vm76_vm0, %v102_v30 }
  0x28   :  { %5076 = vmatmul.mubr.msk.f32.gmra.mrb[12].mxu0 %vm76_vm0, %v70_v16  ;;  %5046 = vmatprep.mubr.msk.f32.mxu1 %vm76_vm0, %v103_v31 }
  0x29   :  { %5078 = vmatprep.mubr.msk.f32.mxu0 %vm76_vm0, %v71_v17  ;;  %5417 = vmatpush3.bf16.msra.mxu1 %v5414_v58 }
  0x2b   :  { %5047 = vmatmul.mubr.msk.f32.gmra.mrb[10].mxu1 %vm76_vm0, %v104_v32 }
  0x2c   :  { %5079 = vmatmul.mubr.msk.f32.gmra.mrb[14].mxu0 %vm76_vm0, %v72_v18  ;;  %5049 = vmatprep.mubr.msk.f32.mxu1 %vm76_vm0, %v105_v33  ;;  %v6509_v18 = vrot.slane %v725_v10, %v6499_v12 }
  0x2d   :  { %5083 = vmatprep.mubr.msk.f32.mxu0 %vm76_vm0, %v109_v34 }
  0x2f   :  { %5050 = vmatmul.mubr.msk.f32.gmra.mrb[12].mxu1 %vm76_vm0, %v106_v35 }
  0x30   :  { %5084 = vmatmul.mubr.msk.f32.vlgmr.msra.gmra.mrb[0].mxu0 %vm76_vm0, %v110_v36  ;;  %5052 = vmatprep.mubr.msk.f32.mxu1 %vm76_vm0, %v107_v37 }
  0x31   :  { %5086 = vmatprep.mubr.msk.f32.mxu0 %vm76_vm0, %v111_v38 }
  0x33   :  { %5053 = vmatmul.mubr.msk.f32.gmra.mrb[14].mxu1 %vm76_vm0, %v108_v39 }
  0x34   :  { %5087 = vmatmul.mubr.msk.f32.gmra.mrb[2].mxu0 %vm76_vm0, %v112_v40 }
  0x35   :  { %5089 = vmatprep.mubr.msk.f32.mxu0 %vm76_vm0, %v113_v41 }
  0x38   :  { %5090 = vmatmul.mubr.msk.f32.gmra.mrb[4].mxu0 %vm76_vm0, %v114_v42 }
  0x39   :  { %5092 = vmatprep.mubr.msk.f32.mxu0 %vm76_vm0, %v115_v43 }
  0x3c   :  { %5093 = vmatmul.mubr.msk.f32.gmra.mrb[6].mxu0 %vm76_vm0, %v116_v25 }
  0x3d   :  { %5095 = vmatprep.mubr.msk.f32.mxu0 %vm76_vm0, %v117_v44 }
  0x40   :  { %5096 = vmatmul.mubr.msk.f32.gmra.mrb[8].mxu0 %vm76_vm0, %v118_v45 }
  0x41   :  { %5098 = vmatprep.mubr.msk.f32.mxu0 %vm76_vm0, %v119_v46 }
  0x44   :  { %5099 = vmatmul.mubr.msk.f32.gmra.mrb[10].mxu0 %vm76_vm0, %v120_v47 }
  0x45   :  { %5101 = vmatprep.mubr.msk.f32.mxu0 %vm76_vm0, %v121_v48 }
  0x48   :  { %5102 = vmatmul.mubr.msk.f32.gmra.mrb[12].mxu0 %vm76_vm0, %v122_v49 }
  0x49   :  { %5104 = vmatprep.mubr.msk.f32.mxu0 %vm76_vm0, %v123_v50 }
  0x4c   :  { %5105 = vmatmul.mubr.msk.f32.gmra.mrb[14].mxu0 %vm76_vm0, %v124_v51 }
  0x4d   :  { %5139 = vmatprep.mubr.f32.mxu0 %v862_v52 }
  0xea   :  { %v5033_v59 = vpop.f32.mrb[0].mxu1 }
  0xeb   :  { %v242_v60 = vpop.f32.mrb[1].mxu1 }
  0xee   :  { %v5036_v61 = vpop.f32.mrb[2].mxu1 }
  0xef   :  { %v252_v62 = vpop.f32.mrb[3].mxu1 }
  0xf2   :  { %v5039_v63 = vpop.f32.mrb[4].mxu1 }
  0xf3   :  { %v262_v0 = vpop.f32.mrb[5].mxu1 }
  0xf6   :  { %v5042_v2 = vpop.f32.mrb[6].mxu1 }
  0xf7   :  { %v272_v3 = vpop.f32.mrb[7].mxu1 }
  0xfa   :  { %v5045_v5 = vpop.f32.mrb[8].mxu1 }
  0xfb   :  { %v6486_v7 = vpop.f32.mrb[9].mxu1 }
  0xfe   :  { %v6491_v9 = vpop.f32.mrb[10].mxu1 }
  0xff   :  { %v6496_v11 = vpop.f32.mrb[11].mxu1 }
 0x102   :  { %v6504_v14 = vpop.f32.mrb[12].mxu1 }
 0x103   :  { %v5085_v15 = vpop.f32.mrb[0].mxu0  ;;  %v6506_v16 = vpop.f32.mrb[13].mxu1 }
 0x104   :  { %v5984_v17 = vadd.f32 %v5085_v15, %v5033_v59  ;;  %v630_v19 = vpop.f32.mrb[1].mxu0 }
 0x105   :  { %v5985_v20 = vadd.f32 %v630_v19, %v242_v60 }
 0x106   :  { %v731_v21 = vmul.f32 %v5984_v17, %v6502_v13  ;;  %v6512_v22 = vpop.f32.mrb[14].mxu1 }
 0x107   :  { %v730_v23 = vmul.f32 %v5985_v20, %v6502_v13  ;;  %v5088_v24 = vpop.f32.mrb[2].mxu0  ;;  %v6515_v25 = vpop.f32.mrb[15].mxu1 }
 0x108   :  { %v6518_v26 = vadd.f32 %v6509_v18, %v731_v21  ;;  %v5986_v27 = vadd.f32 %v5088_v24, %v5036_v61  ;;  %v640_v28 = vpop.f32.mrb[3].mxu0 }
 0x109   :  { %v6521_v29 = vadd.f32 %v6509_v18, %v730_v23  ;;  %v5987_v30 = vadd.f32 %v640_v28, %v252_v62 }
 0x10a   :  { %v783_v31 = vmin.f32 %v6518_v26, 0.0  ;;  %v733_v32 = vmul.f32 %v5986_v27, %v6502_v13  ;;  %vm767_vm3 = vcmp.gt.f32.partialorder %v6518_v26, 0.0 }
 0x10b   :  { %v782_v33 = vmin.f32 %v6521_v29, 0.0  ;;  %v732_v34 = vmul.f32 %v5987_v30, %v6502_v13  ;;  %v5091_v35 = vpop.f32.mrb[4].mxu0  ;;  %vm766_vm4 = vcmp.gt.f32.partialorder %v6521_v29, 0.0 }
 0x10c   :  { %v800_v36 = vmul.f32 1.442695, %v783_v31  ;;  %v6528_v37 = vadd.f32 %v6509_v18, %v733_v32  ;;  %v5988_v38 = vadd.f32 %v5091_v35, %v5039_v63  ;;  %v650_v39 = vpop.f32.mrb[5].mxu0 }
 0x10d   :  { %v798_v40 = vmul.f32 1.442695, %v782_v33  ;;  %v6531_v41 = vadd.f32 %v6509_v18, %v732_v34  ;;  %v5989_v42 = vadd.f32 %v650_v39, %v262_v0 }
 0x10e   :  { %6053 = vpow2.f32 %v800_v36  ;;  %v785_v43 = vmin.f32 %v6528_v37, 0.0  ;;  %v735_v44 = vmul.f32 %v5988_v38, %v6502_v13  ;;  %vm769_vm6 = vcmp.gt.f32.partialorder %v6528_v37, 0.0 }
 0x10f   :  { %6055 = vpow2.f32 %v798_v40  ;;  %v784_v45 = vmin.f32 %v6531_v41, 0.0  ;;  %v734_v46 = vmul.f32 %v5989_v42, %v6502_v13  ;;  %v5094_v47 = vpop.f32.mrb[6].mxu0  ;;  %vm768_vm5 = vcmp.gt.f32.partialorder %v6531_v41, 0.0 }
 0x110   :  { %v804_v48 = vmul.f32 1.442695, %v785_v43  ;;  %v6538_v49 = vadd.f32 %v6509_v18, %v735_v44  ;;  %v5990_v50 = vadd.f32 %v5094_v47, %v5042_v2  ;;  %v660_v51 = vpop.f32.mrb[7].mxu0 }
 0x111   :  { %v802_v52 = vmul.f32 1.442695, %v784_v45  ;;  %v6541_v53 = vadd.f32 %v6509_v18, %v734_v46  ;;  %v5991_v54 = vadd.f32 %v660_v51, %v272_v3 }
 0x112   :  { %6057 = vpow2.f32 %v804_v48  ;;  %v787_v55 = vmin.f32 %v6538_v49, 0.0  ;;  %v737_v56 = vmul.f32 %v5990_v50, %v6502_v13  ;;  %vm771_vm8 = vcmp.gt.f32.partialorder %v6538_v49, 0.0 }
 0x113   :  { %6059 = vpow2.f32 %v802_v52  ;;  %v786_v57 = vmin.f32 %v6541_v53, 0.0  ;;  %v736_v58 = vmul.f32 %v5991_v54, %v6502_v13  ;;  %v5097_v59 = vpop.f32.mrb[8].mxu0  ;;  %vm770_vm7 = vcmp.gt.f32.partialorder %v6541_v53, 0.0 }
 0x114   :  { %v808_v60 = vmul.f32 1.442695, %v787_v55  ;;  %v6548_v61 = vadd.f32 %v6509_v18, %v737_v56  ;;  %v5992_v62 = vadd.f32 %v5097_v59, %v5045_v5  ;;  %v670_v63 = vpop.f32.mrb[9].mxu0 }
 0x115   :  { %v806_v0 = vmul.f32 1.442695, %v786_v57  ;;  %v6551_v1 = vadd.f32 %v6509_v18, %v736_v58  ;;  %v5993_v2 = vadd.f32 %v670_v63, %v6486_v7 }
 0x116   :  { %6061 = vpow2.f32 %v808_v60  ;;  %v789_v3 = vmin.f32 %v6548_v61, 0.0  ;;  %v739_v10 = vmul.f32 %v5992_v62, %v6502_v13  ;;  %vm773_vm9 = vcmp.gt.f32.partialorder %v6548_v61, 0.0 }
 0x117   :  { %6063 = vpow2.f32 %v806_v0  ;;  %v788_v15 = vmin.f32 %v6551_v1, 0.0  ;;  %v738_v17 = vmul.f32 %v5993_v2, %v6502_v13  ;;  %v5100_v5 = vpop.f32.mrb[10].mxu0  ;;  %vm772_vm10 = vcmp.gt.f32.partialorder %v6551_v1, 0.0 }
 0x118   :  { %v6054_v19 = vpop.eup %6053  ;;  %v812_v20 = vmul.f32 1.442695, %v789_v3  ;;  %v6561_v21 = vadd.f32 %v6509_v18, %v739_v10  ;;  %v5994_v7 = vadd.f32 %v5100_v5, %v6491_v9  ;;  %v680_v23 = vpop.f32.mrb[11].mxu0 }
 0x119   :  { %v6056_v24 = vpop.eup %6055  ;;  %v810_v27 = vmul.f32 1.442695, %v788_v15  ;;  %v6567_v28 = vadd.f32 %v6509_v18, %v738_v17  ;;  %v5995_v30 = vadd.f32 %v680_v23, %v6496_v11  ;;  %v4627_v31 = vadd.f32 -1.0, %v6054_v19 }
 0x11a   :  { %6065 = vpow2.f32 %v812_v20  ;;  %v791_v32 = vmin.f32 %v6561_v21, 0.0  ;;  %v741_v33 = vmul.f32 %v5994_v7, %v6502_v13  ;;  %v4626_v34 = vadd.f32 -1.0, %v6056_v24 }
 0x11b   :  { %6067 = vpow2.f32 %v810_v27  ;;  %v790_v9 = vmin.f32 %v6567_v28, 0.0  ;;  %v740_v35 = vmul.f32 %v5995_v30, %v6502_v13  ;;  %v5103_v36 = vpop.f32.mrb[12].mxu0  ;;  %v847_v38 = vsel %vm767_vm3, %v6518_v26, %v4627_v31 }
 0x11c   :  { %v6058_v39 = vpop.eup %6057  ;;  %v816_v40 = vmul.f32 1.442695, %v791_v32  ;;  %v6578_v11 = vadd.f32 %v6509_v18, %v741_v33  ;;  %v5996_v42 = vadd.f32 %v5103_v36, %v6504_v14  ;;  %v690_v43 = vpop.f32.mrb[13].mxu0  ;;  %v846_v44 = vsel %vm766_vm4, %v6521_v29, %v4626_v34 }
 0x11d   :  { %v6060_v45 = vpop.eup %6059  ;;  %v814_v46 = vmul.f32 1.442695, %v790_v9  ;;  %v6586_v47 = vadd.f32 %v6509_v18, %v740_v35  ;;  %v5997_v26 = vadd.f32 %v690_v43, %v6506_v16  ;;  %v5378_v48 = vpack.c.bf16 %v847_v38, %v846_v44 }
 0x11e   :  { %6069 = vpow2.f32 %v816_v40  ;;  %v793_v14 = vmin.f32 %v6578_v11, 0.0  ;;  %v743_v50 = vmul.f32 %v5996_v42, %v6502_v13  ;;  %v4628_v51 = vadd.f32 -1.0, %v6060_v45 }
 0x11f   :  { %6071 = vpow2.f32 %v814_v46  ;;  %v792_v29 = vmin.f32 %v6586_v47, 0.0  ;;  %v742_v52 = vmul.f32 %v5997_v26, %v6502_v13  ;;  %v5106_v54 = vpop.f32.mrb[14].mxu0  ;;  %5379 = vmatprep.subr.bf16.mxu0 %v5378_v48  ;;  %v4629_v55 = vadd.f32 -1.0, %v6058_v39 }
 0x120   :  { %v6062_v16 = vpop.eup %6061  ;;  %v820_v56 = vmul.f32 1.442695, %v793_v14  ;;  %v6596_v57 = vadd.f32 %v6509_v18, %v743_v50  ;;  %v5998_v58 = vadd.f32 %v5106_v54, %v6512_v22  ;;  %v700_v59 = vpop.f32.mrb[15].mxu0  ;;  %5381 = vmatpush3.bf16.msra.mxu0 %v5378_v48  ;;  %v848_v60 = vsel %vm768_vm5, %v6531_v41, %v4628_v51 }
 0x121   :  { %v6064_v62 = vpop.eup %6063  ;;  %v818_v63 = vmul.f32 1.442695, %v792_v29  ;;  %v6603_v0 = vadd.f32 %v6509_v18, %v742_v52  ;;  %v5999_v2 = vadd.f32 %v700_v59, %v6515_v25  ;;  %v849_v3 = vsel %vm769_vm6, %v6528_v37, %v4629_v55 }
 0x122   :  { %6073 = vpow2.f32 %v820_v56  ;;  %v795_v22 = vmin.f32 %v6596_v57, 0.0  ;;  %v745_v10 = vmul.f32 %v5998_v58, %v6502_v13  ;;  %v5382_v15 = vpack.c.bf16 %v849_v3, %v848_v60  ;;  %v864_v60 = vld [vmem:[%s8254_s6 + $0x10] sm:$0xff]  ;;  %v869_v3 = vld [vmem:[%s8254_s6 + $0x38] sm:$0xff] }
 0x123   :  { %6075 = vpow2.f32 %v818_v63  ;;  %v794_v41 = vmin.f32 %v6603_v0, 0.0  ;;  %v744_v17 = vmul.f32 %v5999_v2, %v6502_v13  ;;  %v4630_v5 = vadd.f32 -1.0, %v6064_v62  ;;  %v865_v62 = vld [vmem:[%s8254_s6 + $0x18] sm:$0xff]  ;;  %v866_v63 = vld [vmem:[%s8254_s6 + $0x20] sm:$0xff]  ;;  %v868_v2 = vld [vmem:[%s8254_s6 + $0x30] sm:$0xff] }
 0x124   :  { %v6066_v19 = vpop.eup %6065  ;;  %v824_v20 = vmul.f32 1.442695, %v795_v22  ;;  %v6614_v25 = vadd.f32 %v6509_v18, %v745_v10  ;;  %5383 = vmatprep.subr.bf16.mxu0 %v5382_v15  ;;  %v4631_v7 = vadd.f32 -1.0, %v6062_v16  ;;  %vm775_vm11 = vcmp.gt.f32.partialorder %v6561_v21, 0.0  ;;  %v4642_v22 = vld [vmem:[%s8250_s2 + $0x20] sm:$0xff]  ;;  %v4643_v10 = vld [vmem:[%s8250_s2 + $0x28] sm:$0xff] }
 0x125   :  { %v6068_v37 = vpop.eup %6067  ;;  %v822_v23 = vmul.f32 1.442695, %v794_v41  ;;  %v764_v24 = vadd.f32 %v6509_v18, %v744_v17  ;;  %5385 = vmatpush3.bf16.msra.mxu0 %v5382_v15  ;;  %v850_v27 = vsel %vm770_vm7, %v6541_v53, %v4630_v5  ;;  %v4633_v13 = vadd.f32 -1.0, %v6066_v19 }
 0x126   :  { %6077 = vpow2.f32 %v824_v20  ;;  %v797_v30 = vmin.f32 %v6614_v25, 0.0  ;;  %v851_v31 = vsel %vm771_vm8, %v6538_v49, %v4631_v7  ;;  %v4632_v32 = vadd.f32 -1.0, %v6068_v37  ;;  %v4644_v20 = vld [vmem:[%s8250_s2 + $0x30] sm:$0xff] }
 0x127   :  { %6079 = vpow2.f32 %v822_v23  ;;  %v796_v33 = vmin.f32 %v764_v24, 0.0  ;;  %v5386_v34 = vpack.c.bf16 %v851_v31, %v850_v27  ;;  %v853_v18 = vsel %vm773_vm9, %v6548_v61, %v4633_v13  ;;  %v4662_v13 = vld [vmem:[%s8250_s2 + $0x40] sm:$0xff] }
 0x128   :  { %v6070_v9 = vpop.eup %6069  ;;  %v828_v35 = vmul.f32 1.442695, %v797_v30  ;;  %v852_v53 = vsel %vm772_vm10, %v6551_v1, %v4632_v32  ;;  %vm774_vm12 = vcmp.gt.f32.partialorder %v6567_v28, 0.0  ;;  %vm777_vm13 = vcmp.gt.f32.partialorder %v6578_v11, 0.0  ;;  %v4663_v30 = vld [vmem:[%s8250_s2 + $0x48] sm:$0xff] }
 0x129   :  { %v6072_v36 = vpop.eup %6071  ;;  %v826_v38 = vmul.f32 1.442695, %v796_v33  ;;  %5387 = vmatprep.subr.bf16.mxu0 %v5386_v34  ;;  %v5390_v39 = vpack.c.bf16 %v853_v18, %v852_v53  ;;  %v4635_v40 = vadd.f32 -1.0, %v6070_v9  ;;  %vm776_vm14 = vcmp.gt.f32.partialorder %v6586_v47, 0.0 }
 0x12a   :  { %6081 = vpow2.f32 %v828_v35  ;;  %5389 = vmatpush3.bf16.msra.mxu0 %v5386_v34  ;;  %v4634_v49 = vadd.f32 -1.0, %v6072_v36  ;;  %vm779_vm15 = vcmp.gt.f32.partialorder %v6596_v57, 0.0  ;;  %vm778_vm0 = vcmp.gt.f32.partialorder %v6603_v0, 0.0 }
 0x12b   :  { %6083 = vpow2.f32 %v826_v38  ;;  %5391 = vmatprep.subr.bf16.mxu0 %v5390_v39  ;;  %v855_v61 = vsel %vm775_vm11, %v6561_v21, %v4635_v40  ;;  %vm781_vm3 = vcmp.gt.f32.partialorder %v6614_v25, 0.0  ;;  %vm780_vm4 = vcmp.gt.f32.partialorder %v764_v24, 0.0  ;;  %v4665_v40 = vld [vmem:[%s8250_s2 + $0x58] sm:$0xff] }
 0x12c   :  { %v6074_v42 = vpop.eup %6073  ;;  %v854_v43 = vsel %vm774_vm12, %v6567_v28, %v4634_v49  ;;  %v5418_v15 = vpack.c.bf16 %v4643_v10, %v4642_v22  ;;  %vm978_vm5 = vcmask 261120   ;;  %vm1589_vm6 = vcmask 517120  }
 0x12d   :  { %v6076_v1 = vpop.eup %6075  ;;  %v5394_v44 = vpack.c.bf16 %v855_v61, %v854_v43  ;;  %v4637_v45 = vadd.f32 -1.0, %v6074_v42  ;;  %v5426_v18 = vpack.c.bf16 %v4663_v30, %v4662_v13  ;;  %vm1491_vm7 = vcmask 523264  }
 0x12e   :  { %5393 = vmatpush3.bf16.msra.mxu0 %v5390_v39  ;;  %v4636_v46 = vadd.f32 -1.0, %v6076_v1  ;;  %5419 = vmatprep.subr.bf16.mxu1 %v5418_v15  ;;  %v4664_v39 = vld [vmem:[%s8250_s2 + $0x50] sm:$0xff] }
 0x12f   :  { %5395 = vmatprep.subr.bf16.mxu0 %v5394_v44  ;;  %v857_v26 = vsel %vm777_vm13, %v6578_v11, %v4637_v45  ;;  %v5430_v49 = vpack.c.bf16 %v4665_v40, %v4664_v39 }
 0x130   :  { %v6078_v48 = vpop.eup %6077  ;;  %v856_v14 = vsel %vm776_vm14, %v6586_v47, %v4636_v46 }
 0x131   :  { %v6080_v50 = vpop.eup %6079  ;;  %v5398_v21 = vpack.c.bf16 %v857_v26, %v856_v14  ;;  %v4639_v51 = vadd.f32 -1.0, %v6078_v48  ;;  %v4683_v26 = vld [vmem:[%s8254_s6 + $0x40] sm:$0xff]  ;;  %v1614_v14 = vld [vmem:[%s8251_s3 + $0x8] sm:$0xff] }
 0x132   :  { %5397 = vmatpush3.bf16.msra.mxu0 %v5394_v44  ;;  %v4638_v28 = vadd.f32 -1.0, %v6080_v50  ;;  %v1613_v48 = vld [vmem:[%s8251_s3] sm:$0xff]  ;;  %v1615_v50 = vld [vmem:[%s8251_s3 + $0x10] sm:$0xff] }
 0x133   :  { %5399 = vmatprep.subr.bf16.mxu0 %v5398_v21  ;;  %v859_v29 = vsel %vm779_vm15, %v6596_v57, %v4639_v51  ;;  %v863_v57 = vld [vmem:[%s8254_s6 + $0x8] sm:$0xff]  ;;  %v1616_v51 = vld [vmem:[%s8251_s3 + $0x18] sm:$0xff] }
 0x134   :  { %v6082_v52 = vpop.eup %6081  ;;  %v858_v54 = vsel %vm778_vm0, %v6603_v0, %v4638_v28  ;;  %v867_v0 = vld [vmem:[%s8254_s6 + $0x28] sm:$0xff]  ;;  %v5454_v28 = vpack.c.bf16 %v1616_v51, %v1615_v50 }
 0x135   :  { %v6084_v55 = vpop.eup %6083  ;;  %v5402_v11 = vpack.c.bf16 %v859_v29, %v858_v54  ;;  %v4641_v16 = vadd.f32 -1.0, %v6082_v52  ;;  %v4674_v29 = vld [vmem:[%s8253_s5 + $0x4] sm:$0xf] }
 0x136   :  { %5401 = vmatpush3.bf16.msra.mxu0 %v5398_v21  ;;  %v4640_v47 = vadd.f32 -1.0, %v6084_v55  ;;  %v5450_v21 = vpack.c.bf16 %v1614_v14, %v1613_v48  ;;  %v1417_v52 = vrot.slane %v4674_v29, %v6489_v8  ;;  %v1429_v54 = vrot.slane %v4674_v29, %v6499_v12 }
 0x137   :  { %5403 = vmatprep.subr.bf16.mxu0 %v5402_v11  ;;  %v861_v56 = vsel %vm781_vm3, %v6614_v25, %v4641_v16  ;;  %v4645_v25 = vld [vmem:[%s8250_s2 + $0x38] sm:$0xff] }
 0x138   :  { %v860_v58 = vsel %vm780_vm4, %v764_v24, %v4640_v47  ;;  %v5422_v27 = vpack.c.bf16 %v4645_v25, %v4644_v20 }
 0x139   :  { %v5406_v59 = vpack.c.bf16 %v861_v56, %v860_v58 }
 0x13a   :  { %5405 = vmatpush3.bf16.msra.mxu0 %v5402_v11 }
 0x13b   :  { %5407 = vmatprep.subr.bf16.mxu0 %v5406_v59 }
 0x13e   :  { %5409 = vmatpush3.bf16.msra.mxu0 %v5406_v59 }
 0x13f   :  { %5451 = vmatprep.subr.bf16.mxu0 %v5450_v21 }
 0x141   :  { %5140 = vmatmul.mubr.f32.vlgmr.msra.gmra.mrb[16].mxu0 %v863_v57 }
 0x142   :  { %5142 = vmatprep.mubr.f32.mxu0 %v864_v60  ;;  %5453 = vmatpush3.bf16.msra.mxu0 %v5450_v21 }
 0x143   :  { %5455 = vmatprep.subr.bf16.mxu0 %v5454_v28 }
 0x145   :  { %5143 = vmatmul.mubr.f32.gmra.mrb[18].mxu0 %v865_v62 }
 0x146   :  { %5145 = vmatprep.mubr.f32.mxu0 %v866_v63  ;;  %5457 = vmatpush3.bf16.msra.mxu0 %v5454_v28 }
 0x149   :  { %5146 = vmatmul.mubr.f32.gmra.mrb[20].mxu0 %v867_v0 }
 0x14a   :  { %5148 = vmatprep.mubr.f32.mxu0 %v868_v2 }
 0x14d   :  { %5149 = vmatmul.mubr.f32.gmra.mrb[22].mxu0 %v869_v3 }
 0x214   :  { %v5141_v41 = vpop.f32.mrb[16].mxu0 }
 0x215   :  { %980 = vst.msk [vmem:[#allocation2 + $0xa] sm:$0xff] %vm978_vm5, %v5141_v41  ;;  %v936_v17 = vpop.f32.mrb[17].mxu0 }
 0x216   :  { %979 = vst.msk [vmem:[#allocation2 + $0x2] sm:$0xff] %vm978_vm5, %v936_v17 }
 0x218   :  { %v5144_v5 = vpop.f32.mrb[18].mxu0 }
 0x219   :  { %982 = vst.msk [vmem:[#allocation2 + $0x1a] sm:$0xff] %vm978_vm5, %v5144_v5  ;;  %v946_v19 = vpop.f32.mrb[19].mxu0 }
 0x21a   :  { %981 = vst.msk [vmem:[#allocation2 + $0x12] sm:$0xff] %vm978_vm5, %v946_v19 }
 0x21c   :  { %v5147_v7 = vpop.f32.mrb[20].mxu0 }
 0x21d   :  { %984 = vst.msk [vmem:[#allocation2 + $0x2a] sm:$0xff] %vm978_vm5, %v5147_v7  ;;  %v956_v37 = vpop.f32.mrb[21].mxu0  ;;  %v987_v23 = vld [vmem:[#allocation2] sm:$0xff]  ;;  %v988_v24 = vld [vmem:[#allocation2 + $0x8] sm:$0xff] }
 0x21e   :  { %983 = vst.msk [vmem:[#allocation2 + $0x22] sm:$0xff] %vm978_vm5, %v956_v37  ;;  %5159 = vmatprep.mubr.msk.f32.mxu1 %vm978_vm5, %v987_v23  ;;  %v995_v61 = vld [vmem:[#allocation2 + $0x4] sm:$0xff] }
 0x21f   :  { %1590 = vst.msk [vmem:[#allocation2] sm:$0x3] %vm1589_vm6, %v6245_v6  ;;  %5160 = vmatmul.mubr.msk.f32.vlgmr.msra.gmra.mrb[16].mxu1 %vm978_vm5, %v988_v24 }
 0x220   :  { %v5150_v31 = vpop.f32.mrb[22].mxu0  ;;  %5421 = vmatpush3.bf16.msra.mxu1 %v5418_v15 }
 0x221   :  { %986 = vst.msk [vmem:[#allocation2 + $0x3a] sm:$0xff] %vm978_vm5, %v5150_v31  ;;  %v966_v32 = vpop.f32.mrb[23].mxu0  ;;  %v989_v33 = vld [vmem:[#allocation2 + $0x10] sm:$0xff]  ;;  %v990_v34 = vld [vmem:[#allocation2 + $0x18] sm:$0xff]  ;;  %5423 = vmatprep.subr.bf16.mxu1 %v5422_v27 }
 0x222   :  { %985 = vst.msk [vmem:[#allocation2 + $0x32] sm:$0xff] %vm978_vm5, %v966_v32  ;;  %5162 = vmatprep.mubr.msk.f32.mxu1 %vm978_vm5, %v989_v33  ;;  %v996_v42 = vld [vmem:[#allocation2 + $0xc] sm:$0xff]  ;;  %v997_v43 = vld [vmem:[#allocation2 + $0x14] sm:$0xff] }
 0x223   :  { %5163 = vmatmul.mubr.msk.f32.gmra.mrb[18].mxu1 %vm978_vm5, %v990_v34 }
 0x224   :  { %5425 = vmatpush3.bf16.msra.mxu1 %v5422_v27 }
 0x225   :  { %v991_v9 = vld [vmem:[#allocation2 + $0x20] sm:$0xff]  ;;  %v992_v35 = vld [vmem:[#allocation2 + $0x28] sm:$0xff]  ;;  %5427 = vmatprep.subr.bf16.mxu1 %v5426_v18 }
 0x226   :  { %v998_v53 = vld [vmem:[#allocation2 + $0x1c] sm:$0xff]  ;;  %5165 = vmatprep.mubr.msk.f32.mxu1 %vm978_vm5, %v991_v9  ;;  %v999_v1 = vld [vmem:[#allocation2 + $0x24] sm:$0xff] }
 0x227   :  { %1591 = vst.msk [vmem:[#allocation2 + $0x22] sm:$0x3] %vm1589_vm6, %v6245_v6  ;;  %5166 = vmatmul.mubr.msk.f32.gmra.mrb[20].mxu1 %vm978_vm5, %v992_v35 }
 0x228   :  { %v1002_v46 = vld [vmem:[#allocation2 + $0x3c] sm:$0xff] }
 0x229   :  { %v993_v36 = vld [vmem:[#allocation2 + $0x30] sm:$0xff]  ;;  %v994_v38 = vld [vmem:[#allocation2 + $0x38] sm:$0xff] }
 0x22a   :  { %5168 = vmatprep.mubr.msk.f32.mxu1 %vm978_vm5, %v993_v36  ;;  %v1000_v44 = vld [vmem:[#allocation2 + $0x2c] sm:$0xff]  ;;  %v1001_v45 = vld [vmem:[#allocation2 + $0x34] sm:$0xff] }
 0x22b   :  { %5169 = vmatmul.mubr.msk.f32.gmra.mrb[22].mxu1 %vm978_vm5, %v994_v38 }
 0x22c   :  { %5179 = vmatprep.mubr.msk.f32.mxu1 %vm978_vm5, %v936_v17 }
 0x22f   :  { %5180 = vmatmul.mubr.msk.f32.vlgmr.msra.gmra.mrb[16].mxu1 %vm978_vm5, %v5141_v41 }
 0x230   :  { %5182 = vmatprep.mubr.msk.f32.mxu1 %vm978_vm5, %v946_v19  ;;  %5429 = vmatpush3.bf16.msra.mxu1 %v5426_v18 }
 0x231   :  { %5431 = vmatprep.subr.bf16.mxu1 %v5430_v49 }
 0x233   :  { %5183 = vmatmul.mubr.msk.f32.gmra.mrb[18].mxu1 %vm978_vm5, %v5144_v5 }
 0x234   :  { %5185 = vmatprep.mubr.msk.f32.mxu1 %vm978_vm5, %v956_v37  ;;  %5433 = vmatpush3.bf16.msra.mxu1 %v5430_v49 }
 0x237   :  { %5186 = vmatmul.mubr.msk.f32.gmra.mrb[20].mxu1 %vm978_vm5, %v5147_v7 }
 0x238   :  { %5188 = vmatprep.mubr.msk.f32.mxu1 %vm978_vm5, %v966_v32 }
 0x23b   :  { %5189 = vmatmul.mubr.msk.f32.gmra.mrb[22].mxu1 %vm978_vm5, %v5150_v31 }
 0x23c   :  { %5199 = vmatprep.mubr.msk.f32.mxu1 %vm978_vm5, %v995_v61 }
 0x23f   :  { %5200 = vmatmul.mubr.msk.f32.vlgmr.msra.gmra.mrb[16].mxu1 %vm978_vm5, %v996_v42 }
 0x240   :  { %5202 = vmatprep.mubr.msk.f32.mxu1 %vm978_vm5, %v997_v43 }
 0x243   :  { %5203 = vmatmul.mubr.msk.f32.gmra.mrb[18].mxu1 %vm978_vm5, %v998_v53 }
 0x244   :  { %5205 = vmatprep.mubr.msk.f32.mxu1 %vm978_vm5, %v999_v1 }
 0x247   :  { %5206 = vmatmul.mubr.msk.f32.gmra.mrb[20].mxu1 %vm978_vm5, %v1000_v44 }
 0x248   :  { %5208 = vmatprep.mubr.msk.f32.mxu1 %vm978_vm5, %v1001_v45 }
 0x24b   :  { %5209 = vmatmul.mubr.msk.f32.gmra.mrb[22].mxu1 %vm978_vm5, %v1002_v46 }
 0x24c   :  { %5227 = vmatprep.mubr.msk.f32.mxu1 %vm1491_vm7, %v4683_v26 }
 0x312   :  { %v5201_v55 = vpop.f32.mrb[16].mxu1 }
 0x313   :  { %v1419_v11 = vmul.f32 %v5201_v55, %v1417_v52  ;;  %v1365_v16 = vpop.f32.mrb[17].mxu1 }
 0x314   :  { %v1418_v47 = vmul.f32 %v1417_v52, %v1365_v16 }
 0x315   :  { %v1431_v56 = vadd.f32 %v1429_v54, %v1419_v11 }
 0x316   :  { %v1430_v58 = vadd.f32 %v1429_v54, %v1418_v47  ;;  %v5204_v59 = vpop.f32.mrb[18].mxu1 }
 0x317   :  { %v1447_v57 = vmin.f32 %v1431_v56, 0.0  ;;  %v1421_v60 = vmul.f32 %v5204_v59, %v1417_v52  ;;  %v1375_v62 = vpop.f32.mrb[19].mxu1  ;;  %vm1439_vm8 = vcmp.gt.f32.partialorder %v1431_v56, 0.0 }
 0x318   :  { %v1446_v63 = vmin.f32 %v1430_v58, 0.0  ;;  %v1420_v0 = vmul.f32 %v1417_v52, %v1375_v62  ;;  %vm1438_vm9 = vcmp.gt.f32.partialorder %v1430_v58, 0.0  ;;  %v4685_v62 = vld [vmem:[%s8254_s6 + $0x50] sm:$0xff] }
 0x319   :  { %v1456_v2 = vmul.f32 1.442695, %v1447_v57  ;;  %v1433_v3 = vadd.f32 %v1429_v54, %v1421_v60  ;;  %v4684_v60 = vld [vmem:[%s8254_s6 + $0x48] sm:$0xff] }
 0x31a   :  { %v1454_v22 = vmul.f32 1.442695, %v1446_v63  ;;  %v1432_v10 = vadd.f32 %v1429_v54, %v1420_v0  ;;  %v5207_v15 = vpop.f32.mrb[20].mxu1  ;;  %v4686_v63 = vld [vmem:[%s8254_s6 + $0x58] sm:$0xff]  ;;  %v1617_v0 = vld [vmem:[%s8251_s3 + $0x20] sm:$0xff] }
 0x31b   :  { %6085 = vpow2.f32 %v1456_v2  ;;  %v1449_v41 = vmin.f32 %v1433_v3, 0.0  ;;  %v1423_v17 = vmul.f32 %v5207_v15, %v1417_v52  ;;  %v1385_v5 = vpop.f32.mrb[21].mxu1  ;;  %vm1441_vm10 = vcmp.gt.f32.partialorder %v1433_v3, 0.0  ;;  %v1618_v2 = vld [vmem:[%s8251_s3 + $0x28] sm:$0xff] }
 0x31c   :  { %6087 = vpow2.f32 %v1454_v22  ;;  %v1448_v19 = vmin.f32 %v1432_v10, 0.0  ;;  %v1422_v20 = vmul.f32 %v1417_v52, %v1385_v5  ;;  %vm1440_vm11 = vcmp.gt.f32.partialorder %v1432_v10, 0.0  ;;  %v1619_v22 = vld [vmem:[%s8251_s3 + $0x30] sm:$0xff] }
 0x31d   :  { %v1460_v25 = vmul.f32 1.442695, %v1449_v41  ;;  %v1435_v7 = vadd.f32 %v1429_v54, %v1423_v17  ;;  %v4691_v41 = vld [vmem:[%s8251_s3 + $0x40] sm:$0xff]  ;;  %v4692_v17 = vld [vmem:[%s8251_s3 + $0x48] sm:$0xff] }
 0x31e   :  { %v1458_v37 = vmul.f32 1.442695, %v1448_v19  ;;  %v1434_v23 = vadd.f32 %v1429_v54, %v1422_v20  ;;  %v5210_v24 = vpop.f32.mrb[22].mxu1  ;;  %v5466_v5 = vpack.c.bf16 %v4692_v17, %v4691_v41  ;;  %v2109_v41 = vld [vmem:[%s8252_s4 + $0x88] sm:$0xff]  ;;  %v2111_v17 = vld [vmem:[%s8252_s4 + $0x98] sm:$0xff] }
 0x31f   :  { %6089 = vpow2.f32 %v1460_v25  ;;  %v1451_v27 = vmin.f32 %v1435_v7, 0.0  ;;  %v1425_v13 = vmul.f32 %v5210_v24, %v1417_v52  ;;  %v1395_v30 = vpop.f32.mrb[23].mxu1  ;;  %vm1443_vm12 = vcmp.gt.f32.partialorder %v1435_v7, 0.0 }
 0x320   :  { %6091 = vpow2.f32 %v1458_v37  ;;  %v1450_v31 = vmin.f32 %v1434_v23, 0.0  ;;  %v1424_v32 = vmul.f32 %v1417_v52, %v1395_v30  ;;  %vm1442_vm13 = vcmp.gt.f32.partialorder %v1434_v23, 0.0  ;;  %v4693_v37 = vld [vmem:[%s8251_s3 + $0x50] sm:$0xff]  ;;  %v4695_v30 = vld [vmem:[%s8251_s3 + $0x60] sm:$0xff] }
 0x321   :  { %v1464_v33 = vmul.f32 1.442695, %v1451_v27  ;;  %v1437_v34 = vadd.f32 %v1429_v54, %v1425_v13 }
 0x322   :  { %v1462_v18 = vmul.f32 1.442695, %v1450_v31  ;;  %v1436_v9 = vadd.f32 %v1429_v54, %v1424_v32  ;;  %v4696_v31 = vld [vmem:[%s8251_s3 + $0x68] sm:$0xff] }
 0x323   :  { %6093 = vpow2.f32 %v1464_v33  ;;  %v1453_v35 = vmin.f32 %v1437_v34, 0.0  ;;  %vm1445_vm14 = vcmp.gt.f32.partialorder %v1437_v34, 0.0 }
 0x324   :  { %6095 = vpow2.f32 %v1462_v18  ;;  %v1452_v53 = vmin.f32 %v1436_v9, 0.0  ;;  %vm1444_vm15 = vcmp.gt.f32.partialorder %v1436_v9, 0.0 }
 0x325   :  { %v6086_v36 = vpop.eup %6085  ;;  %v1468_v38 = vmul.f32 1.442695, %v1453_v35  ;;  %v4698_v35 = vld [vmem:[%s8251_s3 + $0x78] sm:$0xff] }
 0x326   :  { %v6088_v39 = vpop.eup %6087  ;;  %v1466_v40 = vmul.f32 1.442695, %v1452_v53  ;;  %v4676_v49 = vadd.f32 -1.0, %v6086_v36  ;;  %v4707_v36 = vld [vmem:[%s8251_s3 + $0x80] sm:$0xff] }
 0x327   :  { %6097 = vpow2.f32 %v1468_v38  ;;  %v4675_v61 = vadd.f32 -1.0, %v6088_v39  ;;  %v4708_v38 = vld [vmem:[%s8251_s3 + $0x88] sm:$0xff] }
 0x328   :  { %6099 = vpow2.f32 %v1466_v40  ;;  %v1479_v42 = vsel %vm1439_vm8, %v1431_v56, %v4676_v49  ;;  %v5482_v39 = vpack.c.bf16 %v4708_v38, %v4707_v36  ;;  %v4709_v40 = vld [vmem:[%s8251_s3 + $0x90] sm:$0xff]  ;;  %v4710_v49 = vld [vmem:[%s8251_s3 + $0x98] sm:$0xff] }
 0x329   :  { %v6090_v43 = vpop.eup %6089  ;;  %v1478_v1 = vsel %vm1438_vm9, %v1430_v58, %v4675_v61  ;;  %v5486_v61 = vpack.c.bf16 %v4710_v49, %v4709_v40 }
 0x32a   :  { %v6092_v44 = vpop.eup %6091  ;;  %v5434_v45 = vpack.c.bf16 %v1479_v42, %v1478_v1  ;;  %v4678_v46 = vadd.f32 -1.0, %v6090_v43  ;;  %v4711_v42 = vld [vmem:[%s8251_s3 + $0xa0] sm:$0xff]  ;;  %v4712_v43 = vld [vmem:[%s8251_s3 + $0xa8] sm:$0xff] }
 0x32b   :  { %v4677_v26 = vadd.f32 -1.0, %v6092_v44  ;;  %v5490_v1 = vpack.c.bf16 %v4712_v43, %v4711_v42  ;;  %v4713_v44 = vld [vmem:[%s8251_s3 + $0xb0] sm:$0xff] }
 0x32c   :  { %5435 = vmatprep.subr.bf16.mxu1 %v5434_v45  ;;  %v1481_v48 = vsel %vm1441_vm10, %v1433_v3, %v4678_v46  ;;  %v5458_v3 = vpack.c.bf16 %v1618_v2, %v1617_v0  ;;  %v2105_v0 = vld [vmem:[%s8252_s4 + $0x68] sm:$0xff]  ;;  %v2107_v2 = vld [vmem:[%s8252_s4 + $0x78] sm:$0xff] }
 0x32d   :  { %v6094_v14 = vpop.eup %6093  ;;  %5437 = vmatpush3.bf16.msra.mxu1 %v5434_v45  ;;  %v1480_v50 = vsel %vm1440_vm11, %v1432_v10, %v4677_v26  ;;  %v1620_v10 = vld [vmem:[%s8251_s3 + $0x38] sm:$0xff] }
 0x32e   :  { %v6096_v21 = vpop.eup %6095  ;;  %v5438_v51 = vpack.c.bf16 %v1481_v48, %v1480_v50  ;;  %v4680_v28 = vadd.f32 -1.0, %v6094_v14  ;;  %5459 = vmatprep.subr.bf16.mxu0 %v5458_v3  ;;  %v5462_v15 = vpack.c.bf16 %v1620_v10, %v1619_v22  ;;  %v4714_v45 = vld [vmem:[%s8251_s3 + $0xb8] sm:$0xff]  ;;  %v4724_v50 = vld [vmem:[%s8254_s6 + $0x80] sm:$0xff]  ;;  %v5518_v22 = vpack.c.bf16 %v2107_v2, %v2105_v0  ;;  %v2118_v2 = vld [vmem:[%s8252_s4 + $0xd0] sm:$0xff] }
 0x32f   :  { %v4679_v29 = vadd.f32 -1.0, %v6096_v21  ;;  %5461 = vmatpush3.bf16.msra.mxu0 %v5458_v3  ;;  %v5494_v26 = vpack.c.bf16 %v4714_v45, %v4713_v44  ;;  %v2093_v21 = vld [vmem:[%s8252_s4 + $0x8] sm:$0xff]  ;;  %v2104_v10 = vld [vmem:[%s8252_s4 + $0x60] sm:$0xff] }
 0x330   :  { %5439 = vmatprep.subr.bf16.mxu1 %v5438_v51  ;;  %v1483_v52 = vsel %vm1443_vm12, %v1435_v7, %v4680_v28  ;;  %5463 = vmatprep.subr.bf16.mxu0 %v5462_v15  ;;  %v2092_v28 = vld [vmem:[%s8252_s4] sm:$0xff] }
 0x331   :  { %v6098_v54 = vpop.eup %6097  ;;  %5441 = vmatpush3.bf16.msra.mxu1 %v5438_v51  ;;  %v1482_v55 = vsel %vm1442_vm13, %v1434_v23, %v4679_v29  ;;  %v4694_v23 = vld [vmem:[%s8251_s3 + $0x58] sm:$0xff]  ;;  %vm2465_vm13 = vcmask 130048  }
 0x332   :  { %v6100_v11 = vpop.eup %6099  ;;  %v5442_v16 = vpack.c.bf16 %v1483_v52, %v1482_v55  ;;  %v4682_v47 = vadd.f32 -1.0, %v6098_v54  ;;  %v5470_v13 = vpack.c.bf16 %v4694_v23, %v4693_v37  ;;  %v2095_v51 = vld [vmem:[%s8252_s4 + $0x18] sm:$0xff]  ;;  %v2094_v52 = vld [vmem:[%s8252_s4 + $0x10] sm:$0xff]  ;;  %v2097_v54 = vld [vmem:[%s8252_s4 + $0x28] sm:$0xff] }
 0x333   :  { %v4681_v56 = vadd.f32 -1.0, %v6100_v11  ;;  %5465 = vmatpush3.bf16.msra.mxu0 %v5462_v15  ;;  %v5506_v29 = vpack.c.bf16 %v2095_v51, %v2093_v21  ;;  %v2099_v55 = vld [vmem:[%s8252_s4 + $0x38] sm:$0xff]  ;;  %v5508_v11 = vpack.c.bf16 %v2094_v52, %v2092_v28  ;;  %v2106_v15 = vld [vmem:[%s8252_s4 + $0x70] sm:$0xff] }
 0x334   :  { %5443 = vmatprep.subr.bf16.mxu1 %v5442_v16  ;;  %v1485_v58 = vsel %vm1445_vm14, %v1437_v34, %v4682_v47  ;;  %5467 = vmatprep.subr.bf16.mxu0 %v5466_v5  ;;  %v5474_v34 = vpack.c.bf16 %v4696_v31, %v4695_v30  ;;  %v2096_v47 = vld [vmem:[%s8252_s4 + $0x20] sm:$0xff]  ;;  %v2115_v37 = vld [vmem:[%s8252_s4 + $0xb8] sm:$0xff]  ;;  %v4719_v31 = vld [vmem:[%s8253_s5 + $0x8] sm:$0xf]  ;;  %vm2917_vm14 = vcmp.lt.s32.totalorder %v6484_v4, 2 }
 0x335   :  { %5445 = vmatpush3.bf16.msra.mxu1 %v5442_v16  ;;  %v1484_v59 = vsel %vm1444_vm15, %v1436_v9, %v4681_v56  ;;  %v4697_v9 = vld [vmem:[%s8251_s3 + $0x70] sm:$0xff]  ;;  %v5510_v16 = vpack.c.bf16 %v2099_v55, %v2097_v54  ;;  %vm3140_vm15 = vcmask 521220  }
 0x336   :  { %v5446_v57 = vpack.c.bf16 %v1485_v58, %v1484_v59  ;;  %v5478_v53 = vpack.c.bf16 %v4698_v35, %v4697_v9  ;;  %v2098_v56 = vld [vmem:[%s8252_s4 + $0x30] sm:$0xff]  ;;  %v2101_v58 = vld [vmem:[%s8252_s4 + $0x48] sm:$0xff]  ;;  %v2103_v59 = vld [vmem:[%s8252_s4 + $0x58] sm:$0xff] }
 0x338   :  { %5447 = vmatprep.subr.bf16.mxu1 %v5446_v57 }
 0x339   :  { %5449 = vmatpush3.bf16.msra.mxu1 %v5446_v57  ;;  %v5512_v57 = vpack.c.bf16 %v2098_v56, %v2096_v47 }
 0x33a   :  { %5507 = vmatprep.subr.bf16.mxu1 %v5506_v29 }
 0x33c   :  { %5228 = vmatmul.mubr.msk.f32.vlgmr.msra.gmra.mrb[24].mxu1 %vm1491_vm7, %v4684_v60  ;;  %v5514_v60 = vpack.c.bf16 %v2103_v59, %v2101_v58 }
 0x33d   :  { %5230 = vmatprep.mubr.msk.f32.mxu1 %vm1491_vm7, %v4685_v62  ;;  %5509 = vmatpush1.bf16.msra.mxu1 %v5508_v11  ;;  %v2100_v62 = vld [vmem:[%s8252_s4 + $0x40] sm:$0xff] }
 0x33e   :  { %5511 = vmatprep.subr.bf16.mxu1 %v5510_v16 }
 0x340   :  { %5231 = vmatmul.mubr.msk.f32.gmra.mrb[26].mxu1 %vm1491_vm7, %v4686_v63  ;;  %v2102_v63 = vld [vmem:[%s8252_s4 + $0x50] sm:$0xff] }
 0x341   :  { %2188 = vmatprep.mubr.f32.mxu1 %v6245_v6  ;;  %5513 = vmatpush1.bf16.msra.mxu1 %v5512_v57  ;;  %v5516_v3 = vpack.c.bf16 %v2102_v63, %v2100_v62  ;;  %v4725_v57 = vld [vmem:[%s8254_s6 + $0x88] sm:$0xff]  ;;  %v2119_v62 = vld [vmem:[%s8252_s4 + $0xd8] sm:$0xff]  ;;  %v2116_v63 = vld [vmem:[%s8252_s4 + $0xc0] sm:$0xff] }
 0x342   :  { %5515 = vmatprep.subr.bf16.mxu1 %v5514_v60  ;;  %v2117_v60 = vld [vmem:[%s8252_s4 + $0xc8] sm:$0xff] }
 0x343   :  { %v5530_v0 = vpack.c.bf16 %v2119_v62, %v2117_v60  ;;  %v4756_v62 = vld [vmem:[%s8252_s4 + $0x1e0] sm:$0xff] }
 0x345   :  { %5517 = vmatpush1.bf16.msra.mxu1 %v5516_v3  ;;  %v2121_v3 = vld [vmem:[%s8252_s4 + $0xe8] sm:$0xff] }
 0x346   :  { %5519 = vmatprep.subr.bf16.mxu1 %v5518_v22  ;;  %v2123_v22 = vld [vmem:[%s8252_s4 + $0xf8] sm:$0xff] }
 0x40f   :  { %v5229_v19 = vpop.f32.mrb[24].mxu1 }
 0x410   :  { %1593 = vst.msk [vmem:[#allocation2 + $0xa] sm:$0xff] %vm1491_vm7, %v5229_v19  ;;  %v1570_v20 = vpop.f32.mrb[25].mxu1 }
 0x411   :  { %1592 = vst.msk [vmem:[#allocation2 + $0x2] sm:$0xff] %vm1491_vm7, %v1570_v20 }
 0x413   :  { %v5232_v25 = vpop.f32.mrb[26].mxu1 }
 0x414   :  { %1595 = vst.msk [vmem:[#allocation2 + $0x1a] sm:$0xff] %vm1491_vm7, %v5232_v25  ;;  %v1580_v7 = vpop.f32.mrb[27].mxu1 }
 0x415   :  { %1594 = vst.msk [vmem:[#allocation2 + $0x12] sm:$0xff] %vm1491_vm7, %v1580_v7 }
 0x418   :  { %v1596_v24 = vld [vmem:[#allocation2] sm:$0xff]  ;;  %v1597_v27 = vld [vmem:[#allocation2 + $0x8] sm:$0xff] }
 0x419   :  { %5249 = vmatprep.mubr.msk.f32.mxu0 %vm1491_vm7, %v1596_v24  ;;  %2051 = vst [vmem:[#allocation2] sm:$0x3] %v6245_v6  ;;  %v1600_v46 = vld [vmem:[#allocation2 + $0x4] sm:$0xff] }
 0x41a   :  { %5250 = vmatmul.mubr.msk.f32.vlgmr.msra.gmra.mrb[24].mxu0 %vm1491_vm7, %v1597_v27  ;;  %v2112_v27 = vld [vmem:[%s8252_s4 + $0xa0] sm:$0xff] }
 0x41b   :  { %5469 = vmatpush3.bf16.msra.mxu0 %v5466_v5  ;;  %v1603_v14 = vld [vmem:[#allocation2 + $0x1c] sm:$0xff]  ;;  %v5520_v5 = vpack.c.bf16 %v2106_v15, %v2104_v10  ;;  %v5532_v10 = vpack.c.bf16 %v2118_v2, %v2116_v63  ;;  %v5534_v15 = vpack.c.bf16 %v2123_v22, %v2121_v3  ;;  %v4758_v63 = vld [vmem:[%s8252_s4 + $0x1f0] sm:$0xff] }
 0x41c   :  { %v1598_v32 = vld [vmem:[#allocation2 + $0x10] sm:$0xff]  ;;  %5471 = vmatprep.subr.bf16.mxu0 %v5470_v13  ;;  %v1599_v33 = vld [vmem:[#allocation2 + $0x18] sm:$0xff]  ;;  %v5568_v3 = vpack.c.bf16 %v4758_v63, %v4756_v62 }
 0x41d   :  { %v1601_v18 = vld [vmem:[#allocation2 + $0xc] sm:$0xff]  ;;  %5252 = vmatprep.mubr.msk.f32.mxu0 %vm1491_vm7, %v1598_v32  ;;  %v1602_v48 = vld [vmem:[#allocation2 + $0x14] sm:$0xff]  ;;  %5521 = vmatpush1.bf16.msra.mxu1 %v5520_v5  ;;  %v1930_v32 = vrot.slane %v4719_v31, %v6489_v8 }
 0x41e   :  { %2052 = vst [vmem:[#allocation2 + $0x12] sm:$0x3] %v6245_v6  ;;  %5253 = vmatmul.mubr.msk.f32.gmra.mrb[26].mxu0 %vm1491_vm7, %v1599_v33  ;;  %v1938_v33 = vrot.slane %v4719_v31, %v6499_v12  ;;  %v4729_v5 = vld [vmem:[%s8252_s4 + $0x108] sm:$0xff]  ;;  %v4763_v2 = vld [vmem:[%s8252_s4 + $0x218] sm:$0xff] }
 0x41f   :  { %5473 = vmatpush3.bf16.msra.mxu0 %v5470_v13  ;;  %5271 = vmatprep.mubr.msk.f32.mxu0 %vm1491_vm7, %v1570_v20  ;;  %v2108_v20 = vld [vmem:[%s8252_s4 + $0x80] sm:$0xff]  ;;  %v2114_v13 = vld [vmem:[%s8252_s4 + $0xb0] sm:$0xff]  ;;  %v2555_v62 = vld [vmem:[%s8255_s7 + $0x78] sm:$0xff] }
 0x420   :  { %5475 = vmatprep.subr.bf16.mxu0 %v5474_v34  ;;  %v5528_v30 = vpack.c.bf16 %v2114_v13, %v2112_v27  ;;  %v4733_v27 = vld [vmem:[%s8252_s4 + $0x128] sm:$0xff]  ;;  %v4735_v13 = vld [vmem:[%s8252_s4 + $0x138] sm:$0xff] }
 0x421   :  { %v5542_v31 = vpack.c.bf16 %v4735_v13, %v4733_v27 }
 0x423   :  { %5477 = vmatpush3.bf16.msra.mxu0 %v5474_v34 }
 0x424   :  { %5479 = vmatprep.subr.bf16.mxu0 %v5478_v53 }
 0x427   :  { %5481 = vmatpush3.bf16.msra.mxu0 %v5478_v53 }
 0x428   :  { %5483 = vmatprep.subr.bf16.mxu0 %v5482_v39 }
 0x42a   :  { %5272 = vmatmul.mubr.msk.f32.vlgmr.msra.gmra.mrb[24].mxu0 %vm1491_vm7, %v5229_v19  ;;  %v5522_v19 = vpack.c.bf16 %v2111_v17, %v2109_v41  ;;  %v2120_v41 = vld [vmem:[%s8252_s4 + $0xe0] sm:$0xff]  ;;  %v2122_v17 = vld [vmem:[%s8252_s4 + $0xf0] sm:$0xff] }
 0x42b   :  { %5274 = vmatprep.mubr.msk.f32.mxu0 %vm1491_vm7, %v1580_v7  ;;  %5485 = vmatpush3.bf16.msra.mxu0 %v5482_v39  ;;  %v2113_v7 = vld [vmem:[%s8252_s4 + $0xa8] sm:$0xff] }
 0x42c   :  { %5487 = vmatprep.subr.bf16.mxu0 %v5486_v61  ;;  %5523 = vmatprep.subr.bf16.mxu1 %v5522_v19  ;;  %v5526_v24 = vpack.c.bf16 %v2115_v37, %v2113_v7  ;;  %v4731_v19 = vld [vmem:[%s8252_s4 + $0x118] sm:$0xff] }
 0x42e   :  { %5275 = vmatmul.mubr.msk.f32.gmra.mrb[26].mxu0 %vm1491_vm7, %v5232_v25  ;;  %v2110_v25 = vld [vmem:[%s8252_s4 + $0x90] sm:$0xff] }
 0x42f   :  { %5489 = vmatpush3.bf16.msra.mxu0 %v5486_v61  ;;  %5293 = vmatprep.mubr.msk.f32.mxu0 %vm1491_vm7, %v1600_v46  ;;  %v5524_v23 = vpack.c.bf16 %v2110_v25, %v2108_v20  ;;  %v5536_v20 = vpack.c.bf16 %v2122_v17, %v2120_v41  ;;  %v5538_v25 = vpack.c.bf16 %v4731_v19, %v4729_v5  ;;  %v4765_v41 = vld [vmem:[%s8252_s4 + $0x228] sm:$0xff]  ;;  %v4767_v17 = vld [vmem:[%s8252_s4 + $0x238] sm:$0xff] }
 0x430   :  { %5491 = vmatprep.subr.bf16.mxu0 %v5490_v1  ;;  %v5574_v19 = vpack.c.bf16 %v4767_v17, %v4765_v41  ;;  %v2558_v41 = vld [vmem:[%s8255_s7 + $0x90] sm:$0xff] }
 0x431   :  { %5525 = vmatpush1.bf16.msra.mxu1 %v5524_v23  ;;  %v4728_v23 = vld [vmem:[%s8252_s4 + $0x100] sm:$0xff]  ;;  %v2562_v17 = vld [vmem:[%s8255_s7 + $0xb0] sm:$0xff] }
 0x432   :  { %5527 = vmatprep.subr.bf16.mxu1 %v5526_v24  ;;  %v4730_v24 = vld [vmem:[%s8252_s4 + $0x110] sm:$0xff] }
 0x433   :  { %5493 = vmatpush3.bf16.msra.mxu0 %v5490_v1 }
 0x434   :  { %5495 = vmatprep.subr.bf16.mxu0 %v5494_v26 }
 0x435   :  { %5529 = vmatpush1.bf16.msra.mxu1 %v5528_v30  ;;  %v5540_v30 = vpack.c.bf16 %v4730_v24, %v4728_v23  ;;  %v4769_v23 = vld [vmem:[%s8252_s4 + $0x248] sm:$0xff]  ;;  %v4771_v24 = vld [vmem:[%s8252_s4 + $0x258] sm:$0xff] }
 0x436   :  { %5531 = vmatprep.subr.bf16.mxu1 %v5530_v0  ;;  %v4761_v0 = vld [vmem:[%s8252_s4 + $0x208] sm:$0xff]  ;;  %v5578_v13 = vpack.c.bf16 %v4771_v24, %v4769_v23  ;;  %v2566_v23 = vld [vmem:[%s8255_s7 + $0xd0] sm:$0xff] }
 0x437   :  { %5497 = vmatpush3.bf16.msra.mxu0 %v5494_v26  ;;  %v5570_v22 = vpack.c.bf16 %v4763_v2, %v4761_v0  ;;  %v2550_v0 = vld [vmem:[%s8255_s7 + $0x50] sm:$0xff] }
 0x438   :  { %v2554_v2 = vld [vmem:[%s8255_s7 + $0x70] sm:$0xff] }
 0x439   :  { %5533 = vmatpush1.bf16.msra.mxu1 %v5532_v10  ;;  %v4760_v10 = vld [vmem:[%s8252_s4 + $0x200] sm:$0xff]  ;;  %v2570_v24 = vld [vmem:[%s8255_s7 + $0xf0] sm:$0xff] }
 0x43a   :  { %5294 = vmatmul.mubr.msk.f32.vlgmr.msra.gmra.mrb[24].mxu0 %vm1491_vm7, %v1601_v18  ;;  %5535 = vmatprep.subr.bf16.mxu1 %v5534_v15  ;;  %v4762_v15 = vld [vmem:[%s8252_s4 + $0x210] sm:$0xff] }
 0x43b   :  { %5296 = vmatprep.mubr.msk.f32.mxu0 %vm1491_vm7, %v1602_v48  ;;  %v5572_v5 = vpack.c.bf16 %v4762_v15, %v4760_v10  ;;  %v2563_v10 = vld [vmem:[%s8255_s7 + $0xb8] sm:$0xff] }
 0x43d   :  { %5537 = vmatpush1.bf16.msra.mxu1 %v5536_v20  ;;  %v4764_v20 = vld [vmem:[%s8252_s4 + $0x220] sm:$0xff] }
 0x43e   :  { %5297 = vmatmul.mubr.msk.f32.gmra.mrb[26].mxu0 %vm1491_vm7, %v1603_v14  ;;  %5539 = vmatprep.subr.bf16.mxu1 %v5538_v25  ;;  %v4766_v25 = vld [vmem:[%s8252_s4 + $0x230] sm:$0xff] }
 0x43f   :  { %5307 = vmatprep.mubr.msk.f32.mxu0 %vm978_vm5, %v4724_v50  ;;  %v5576_v27 = vpack.c.bf16 %v4766_v25, %v4764_v20  ;;  %v2571_v20 = vld [vmem:[%s8255_s7 + $0xf8] sm:$0xff] }
 0x50d   :  { %v5295_v34 = vpop.f32.mrb[24].mxu0 }
 0x50e   :  { %v1932_v18 = vmul.f32 %v5295_v34, %v1930_v32  ;;  %v1902_v9 = vpop.f32.mrb[25].mxu0 }
 0x50f   :  { %v1931_v35 = vmul.f32 %v1930_v32, %v1902_v9  ;;  %v4739_v9 = vld [vmem:[%s8252_s4 + $0x158] sm:$0xff] }
 0x510   :  { %v1940_v53 = vadd.f32 %v1938_v33, %v1932_v18  ;;  %v4737_v18 = vld [vmem:[%s8252_s4 + $0x148] sm:$0xff] }
 0x511   :  { %v1939_v36 = vadd.f32 %v1938_v33, %v1931_v35  ;;  %v5298_v38 = vpop.f32.mrb[26].mxu0 }
 0x512   :  { %v1948_v39 = vmin.f32 %v1940_v53, 0.0  ;;  %v1934_v40 = vmul.f32 %v5298_v38, %v1930_v32  ;;  %v1912_v49 = vpop.f32.mrb[27].mxu0  ;;  %vm1944_vm0 = vcmp.gt.f32.partialorder %v1940_v53, 0.0  ;;  %v4738_v38 = vld [vmem:[%s8252_s4 + $0x150] sm:$0xff] }
 0x513   :  { %v1947_v61 = vmin.f32 %v1939_v36, 0.0  ;;  %v1933_v42 = vmul.f32 %v1930_v32, %v1912_v49  ;;  %vm1943_vm3 = vcmp.gt.f32.partialorder %v1939_v36, 0.0  ;;  %v4732_v32 = vld [vmem:[%s8252_s4 + $0x120] sm:$0xff]  ;;  %v4743_v49 = vld [vmem:[%s8252_s4 + $0x178] sm:$0xff] }
 0x514   :  { %v1953_v43 = vmul.f32 1.442695, %v1948_v39  ;;  %v1942_v1 = vadd.f32 %v1938_v33, %v1934_v40  ;;  %v4741_v40 = vld [vmem:[%s8252_s4 + $0x168] sm:$0xff] }
 0x515   :  { %v1951_v44 = vmul.f32 1.442695, %v1947_v61  ;;  %v1941_v45 = vadd.f32 %v1938_v33, %v1933_v42  ;;  %v4734_v33 = vld [vmem:[%s8252_s4 + $0x130] sm:$0xff]  ;;  %v5550_v42 = vpack.c.bf16 %v4743_v49, %v4741_v40  ;;  %v4781_v40 = vld [vmem:[%s8252_s4 + $0x2a8] sm:$0xff]  ;;  %v4783_v49 = vld [vmem:[%s8252_s4 + $0x2b8] sm:$0xff] }
 0x516   :  { %6101 = vpow2.f32 %v1953_v43  ;;  %v1950_v46 = vmin.f32 %v1942_v1, 0.0  ;;  %vm1946_vm4 = vcmp.gt.f32.partialorder %v1942_v1, 0.0  ;;  %v5544_v35 = vpack.c.bf16 %v4734_v33, %v4732_v32  ;;  %v4740_v43 = vld [vmem:[%s8252_s4 + $0x160] sm:$0xff]  ;;  %v4773_v32 = vld [vmem:[%s8252_s4 + $0x268] sm:$0xff] }
 0x517   :  { %6103 = vpow2.f32 %v1951_v44  ;;  %v1949_v26 = vmin.f32 %v1941_v45, 0.0  ;;  %vm1945_vm8 = vcmp.gt.f32.partialorder %v1941_v45, 0.0  ;;  %v4745_v44 = vld [vmem:[%s8252_s4 + $0x188] sm:$0xff] }
 0x518   :  { %v1957_v48 = vmul.f32 1.442695, %v1950_v46 }
 0x519   :  { %v1955_v14 = vmul.f32 1.442695, %v1949_v26 }
 0x51a   :  { %6105 = vpow2.f32 %v1957_v48  ;;  %v4744_v48 = vld [vmem:[%s8252_s4 + $0x180] sm:$0xff] }
 0x51b   :  { %6107 = vpow2.f32 %v1955_v14  ;;  %v4746_v14 = vld [vmem:[%s8252_s4 + $0x190] sm:$0xff] }
 0x520   :  { %v6102_v50 = vpop.eup %6101 }
 0x521   :  { %v6104_v21 = vpop.eup %6103  ;;  %v4721_v51 = vadd.f32 -1.0, %v6102_v50  ;;  %v4749_v50 = vld [vmem:[%s8252_s4 + $0x1a8] sm:$0xff] }
 0x522   :  { %v4720_v28 = vadd.f32 -1.0, %v6104_v21  ;;  %v4751_v21 = vld [vmem:[%s8252_s4 + $0x1b8] sm:$0xff] }
 0x523   :  { %v1964_v29 = vsel %vm1944_vm0, %v1940_v53, %v4721_v51  ;;  %v5546_v53 = vpack.c.bf16 %v4739_v9, %v4737_v18  ;;  %v5556_v51 = vpack.c.bf16 %v4746_v14, %v4744_v48  ;;  %v4772_v18 = vld [vmem:[%s8252_s4 + $0x260] sm:$0xff]  ;;  %v4774_v9 = vld [vmem:[%s8252_s4 + $0x270] sm:$0xff]  ;;  %vm2945_vm0 = vcmask 1043970  }
 0x524   :  { %v6106_v52 = vpop.eup %6105  ;;  %v1963_v54 = vsel %vm1943_vm3, %v1939_v36, %v4720_v28  ;;  %v4736_v36 = vld [vmem:[%s8252_s4 + $0x140] sm:$0xff]  ;;  %v5558_v28 = vpack.c.bf16 %v4751_v21, %v4749_v50  ;;  %v4786_v14 = vld [vmem:[%s8252_s4 + $0x2d0] sm:$0xff]  ;;  %v4789_v50 = vld [vmem:[%s8252_s4 + $0x2e8] sm:$0xff]  ;;  %vm3146_vm3 = vcmask 1048070  }
 0x525   :  { %v6108_v55 = vpop.eup %6107  ;;  %v5498_v11 = vpack.c.bf16 %v1964_v29, %v1963_v54  ;;  %v4723_v16 = vadd.f32 -1.0, %v6106_v52  ;;  %v5548_v61 = vpack.c.bf16 %v4738_v38, %v4736_v36  ;;  %v4748_v29 = vld [vmem:[%s8252_s4 + $0x1a0] sm:$0xff]  ;;  %v4750_v52 = vld [vmem:[%s8252_s4 + $0x1b0] sm:$0xff]  ;;  %v4753_v54 = vld [vmem:[%s8252_s4 + $0x1c8] sm:$0xff] }
 0x526   :  { %v4722_v47 = vadd.f32 -1.0, %v6108_v55  ;;  %v4755_v55 = vld [vmem:[%s8252_s4 + $0x1d8] sm:$0xff]  ;;  %v4776_v38 = vld [vmem:[%s8252_s4 + $0x280] sm:$0xff] }
 0x527   :  { %5499 = vmatprep.subr.bf16.mxu0 %v5498_v11  ;;  %v1966_v56 = vsel %vm1946_vm4, %v1942_v1, %v4723_v16  ;;  %v4742_v1 = vld [vmem:[%s8252_s4 + $0x170] sm:$0xff]  ;;  %v5562_v16 = vpack.c.bf16 %v4755_v55, %v4753_v54  ;;  %v4784_v48 = vld [vmem:[%s8252_s4 + $0x2c0] sm:$0xff]  ;;  %v4791_v21 = vld [vmem:[%s8252_s4 + $0x2f8] sm:$0xff]  ;;  %vm6248_vm4 = vmmov 0  }
 0x528   :  { %5501 = vmatpush3.bf16.msra.mxu0 %v5498_v11  ;;  %v1965_v58 = vsel %vm1945_vm8, %v1941_v45, %v4722_v47  ;;  %v4747_v45 = vld [vmem:[%s8252_s4 + $0x198] sm:$0xff]  ;;  %v5552_v46 = vpack.c.bf16 %v4742_v1, %v4740_v43  ;;  %v5560_v11 = vpack.c.bf16 %v4750_v52, %v4748_v29  ;;  %v4752_v47 = vld [vmem:[%s8252_s4 + $0x1c0] sm:$0xff]  ;;  %v4782_v1 = vld [vmem:[%s8252_s4 + $0x2b0] sm:$0xff] }
 0x529   :  { %v5502_v59 = vpack.c.bf16 %v1966_v56, %v1965_v58  ;;  %v5554_v26 = vpack.c.bf16 %v4747_v45, %v4745_v44  ;;  %v4754_v56 = vld [vmem:[%s8252_s4 + $0x1d0] sm:$0xff]  ;;  %v4757_v58 = vld [vmem:[%s8252_s4 + $0x1e8] sm:$0xff]  ;;  %v4780_v43 = vld [vmem:[%s8252_s4 + $0x2a0] sm:$0xff] }
 0x52a   :  { %v4785_v44 = vld [vmem:[%s8252_s4 + $0x2c8] sm:$0xff]  ;;  %v4787_v45 = vld [vmem:[%s8252_s4 + $0x2d8] sm:$0xff]  ;;  %v4788_v29 = vld [vmem:[%s8252_s4 + $0x2e0] sm:$0xff] }
 0x52b   :  { %5503 = vmatprep.subr.bf16.mxu0 %v5502_v59  ;;  %v4790_v52 = vld [vmem:[%s8252_s4 + $0x2f0] sm:$0xff] }
 0x52c   :  { %5505 = vmatpush3.bf16.msra.mxu0 %v5502_v59  ;;  %v4759_v59 = vld [vmem:[%s8252_s4 + $0x1f8] sm:$0xff]  ;;  %v5600_v54 = vpack.c.bf16 %v4790_v52, %v4788_v29 }
 0x52d   :  { %v5566_v60 = vpack.c.bf16 %v4759_v59, %v4757_v58  ;;  %v2542_v58 = vld [vmem:[%s8255_s7 + $0x10] sm:$0xff]  ;;  %v2619_v29 = vld [vmem:[%s8255_s7 + $0x278] sm:$0xff] }
 0x52e   :  { %v2546_v59 = vld [vmem:[%s8255_s7 + $0x30] sm:$0xff] }
 0x52f   :  { %5308 = vmatmul.mubr.msk.f32.vlgmr.msra.gmra.mrb[28].mxu0 %vm978_vm5, %v4725_v57  ;;  %v5564_v57 = vpack.c.bf16 %v4754_v56, %v4752_v47  ;;  %v2547_v47 = vld [vmem:[%s8255_s7 + $0x38] sm:$0xff] }
 0x530   :  { %2533 = vmatprep.mubr.f32.mxu0 %v6245_v6 }
 0x602   :  { %v6954_v7 = vpop.f32.mrb[28].mxu0 }
 0x603   :  { %2054 = vst [vmem:[#allocation2 + $0xa] sm:$0xff] %v6954_v7  ;;  %v6957_v37 = vpop.f32.mrb[29].mxu0 }
 0x604   :  { %2053 = vst [vmem:[#allocation2 + $0x2] sm:$0xff] %v6957_v37 }
 0x60b   :  { %v2055_v34 = vld [vmem:[#allocation2] sm:$0xff]  ;;  %v2056_v39 = vld [vmem:[#allocation2 + $0x8] sm:$0xff] }
 0x60c   :  { %2189 = vmatmul.mubr.f32.vlgmr.msra.gmra.mrb[28].mxu1 %v2055_v34  ;;  %v2057_v55 = vld [vmem:[#allocation2 + $0x4] sm:$0xff] }
 0x60d   :  { %5541 = vmatpush1.bf16.msra.mxu1 %v5540_v30  ;;  %2194 = vmatprep.mubr.f32.mxu1 %v6245_v6  ;;  %v4768_v30 = vld [vmem:[%s8252_s4 + $0x240] sm:$0xff] }
 0x60e   :  { %5543 = vmatprep.subr.bf16.mxu1 %v5542_v31  ;;  %v4770_v31 = vld [vmem:[%s8252_s4 + $0x250] sm:$0xff] }
 0x60f   :  { %v5580_v33 = vpack.c.bf16 %v4770_v31, %v4768_v30  ;;  %v2579_v30 = vld [vmem:[%s8255_s7 + $0x138] sm:$0xff] }
 0x610   :  { %2195 = vmatmul.mubr.f32.gmra.mrb[30].mxu1 %v2056_v39  ;;  %v4778_v39 = vld [vmem:[%s8252_s4 + $0x290] sm:$0xff] }
 0x611   :  { %5545 = vmatpush1.bf16.msra.mxu1 %v5544_v35  ;;  %2265 = vmatprep.mubr.f32.mxu1 %v6245_v6  ;;  %v4777_v35 = vld [vmem:[%s8252_s4 + $0x288] sm:$0xff] }
 0x612   :  { %5547 = vmatprep.subr.bf16.mxu1 %v5546_v53  ;;  %v5584_v53 = vpack.c.bf16 %v4774_v9, %v4772_v18  ;;  %v2587_v18 = vld [vmem:[%s8255_s7 + $0x178] sm:$0xff] }
 0x615   :  { %5549 = vmatpush1.bf16.msra.mxu1 %v5548_v61  ;;  %v5588_v61 = vpack.c.bf16 %v4778_v39, %v4776_v38  ;;  %v2595_v38 = vld [vmem:[%s8255_s7 + $0x1b8] sm:$0xff] }
 0x616   :  { %5551 = vmatprep.subr.bf16.mxu1 %v5550_v42  ;;  %v5590_v42 = vpack.c.bf16 %v4783_v49, %v4781_v40  ;;  %v2590_v40 = vld [vmem:[%s8255_s7 + $0x190] sm:$0xff] }
 0x617   :  { %v2594_v49 = vld [vmem:[%s8255_s7 + $0x1b0] sm:$0xff] }
 0x619   :  { %5553 = vmatpush1.bf16.msra.mxu1 %v5552_v46  ;;  %v5592_v46 = vpack.c.bf16 %v4782_v1, %v4780_v43  ;;  %v2603_v43 = vld [vmem:[%s8255_s7 + $0x1f8] sm:$0xff] }
 0x61a   :  { %5555 = vmatprep.subr.bf16.mxu1 %v5554_v26  ;;  %v5594_v26 = vpack.c.bf16 %v4787_v45, %v4785_v44  ;;  %v2598_v44 = vld [vmem:[%s8255_s7 + $0x1d0] sm:$0xff] }
 0x61b   :  { %v2602_v45 = vld [vmem:[%s8255_s7 + $0x1f0] sm:$0xff] }
 0x61d   :  { %5557 = vmatpush1.bf16.msra.mxu1 %v5556_v51  ;;  %v5596_v51 = vpack.c.bf16 %v4786_v14, %v4784_v48  ;;  %v2611_v48 = vld [vmem:[%s8255_s7 + $0x238] sm:$0xff] }
 0x61e   :  { %5559 = vmatprep.subr.bf16.mxu1 %v5558_v28  ;;  %v5598_v28 = vpack.c.bf16 %v4791_v21, %v4789_v50  ;;  %v2606_v50 = vld [vmem:[%s8255_s7 + $0x210] sm:$0xff] }
 0x61f   :  { %v2610_v21 = vld [vmem:[%s8255_s7 + $0x230] sm:$0xff] }
 0x621   :  { %5561 = vmatpush1.bf16.msra.mxu1 %v5560_v11  ;;  %v2058_v11 = vld [vmem:[#allocation2 + $0xc] sm:$0xff] }
 0x622   :  { %5563 = vmatprep.subr.bf16.mxu1 %v5562_v16  ;;  %v2543_v16 = vld [vmem:[%s8255_s7 + $0x18] sm:$0xff] }
 0x623   :  { %v5670_v56 = vpack.c.bf16 %v2547_v47, %v2543_v16  ;;  %v2623_v16 = vld [vmem:[%s8255_s7 + $0x298] sm:$0xff] }
 0x624   :  { %v2627_v47 = vld [vmem:[%s8255_s7 + $0x2b8] sm:$0xff] }
 0x625   :  { %5565 = vmatpush1.bf16.msra.mxu1 %v5564_v57  ;;  %v5672_v57 = vpack.c.bf16 %v2546_v59, %v2542_v58  ;;  %v2622_v58 = vld [vmem:[%s8255_s7 + $0x290] sm:$0xff] }
 0x626   :  { %5567 = vmatprep.subr.bf16.mxu1 %v5566_v60  ;;  %v2551_v60 = vld [vmem:[%s8255_s7 + $0x58] sm:$0xff]  ;;  %v2626_v59 = vld [vmem:[%s8255_s7 + $0x2b0] sm:$0xff] }
 0x627   :  { %v5674_v63 = vpack.c.bf16 %v2555_v62, %v2551_v60  ;;  %v2631_v60 = vld [vmem:[%s8255_s7 + $0x2d8] sm:$0xff] }
 0x628   :  { %v2635_v62 = vld [vmem:[%s8255_s7 + $0x2f8] sm:$0xff] }
 0x629   :  { %5569 = vmatpush1.bf16.msra.mxu1 %v5568_v3  ;;  %v5676_v3 = vpack.c.bf16 %v2554_v2, %v2550_v0  ;;  %v2630_v0 = vld [vmem:[%s8255_s7 + $0x2d0] sm:$0xff] }
 0x62a   :  { %5571 = vmatprep.subr.bf16.mxu1 %v5570_v22  ;;  %v2559_v22 = vld [vmem:[%s8255_s7 + $0x98] sm:$0xff]  ;;  %v2634_v2 = vld [vmem:[%s8255_s7 + $0x2f0] sm:$0xff] }
 0x62b   :  { %v5678_v15 = vpack.c.bf16 %v2563_v10, %v2559_v22  ;;  %v2639_v22 = vld [vmem:[%s8255_s7 + $0x318] sm:$0xff] }
 0x62c   :  { %2266 = vmatmul.mubr.f32.vlgmr.msra.gmra.mrb[28].mxu1 %v6957_v37  ;;  %v4775_v37 = vld [vmem:[%s8252_s4 + $0x278] sm:$0xff] }
 0x62d   :  { %5573 = vmatpush1.bf16.msra.mxu1 %v5572_v5  ;;  %2271 = vmatprep.mubr.f32.mxu1 %v6245_v6  ;;  %v5582_v34 = vpack.c.bf16 %v4775_v37, %v4773_v32  ;;  %v5680_v5 = vpack.c.bf16 %v2562_v17, %v2558_v41  ;;  %v2574_v32 = vld [vmem:[%s8255_s7 + $0x110] sm:$0xff]  ;;  %v2643_v10 = vld [vmem:[%s8255_s7 + $0x338] sm:$0xff] }
 0x62e   :  { %5575 = vmatprep.subr.bf16.mxu1 %v5574_v19  ;;  %v2567_v19 = vld [vmem:[%s8255_s7 + $0xd8] sm:$0xff]  ;;  %v2578_v37 = vld [vmem:[%s8255_s7 + $0x130] sm:$0xff] }
 0x62f   :  { %v5682_v25 = vpack.c.bf16 %v2571_v20, %v2567_v19  ;;  %v2638_v41 = vld [vmem:[%s8255_s7 + $0x310] sm:$0xff]  ;;  %v2647_v19 = vld [vmem:[%s8255_s7 + $0x358] sm:$0xff] }
 0x630   :  { %2272 = vmatmul.mubr.f32.gmra.mrb[30].mxu1 %v6954_v7  ;;  %v4779_v7 = vld [vmem:[%s8252_s4 + $0x298] sm:$0xff]  ;;  %v2642_v17 = vld [vmem:[%s8255_s7 + $0x330] sm:$0xff] }
 0x631   :  { %5577 = vmatpush1.bf16.msra.mxu1 %v5576_v27  ;;  %2375 = vmatprep.mubr.f32.mxu1 %v6245_v6  ;;  %v5586_v36 = vpack.c.bf16 %v4779_v7, %v4777_v35  ;;  %v5684_v27 = vpack.c.bf16 %v2570_v24, %v2566_v23  ;;  %v2582_v35 = vld [vmem:[%s8255_s7 + $0x150] sm:$0xff]  ;;  %v2651_v20 = vld [vmem:[%s8255_s7 + $0x378] sm:$0xff] }
 0x632   :  { %5579 = vmatprep.subr.bf16.mxu1 %v5578_v13  ;;  %v2575_v13 = vld [vmem:[%s8255_s7 + $0x118] sm:$0xff]  ;;  %v2586_v7 = vld [vmem:[%s8255_s7 + $0x170] sm:$0xff] }
 0x633   :  { %v5686_v31 = vpack.c.bf16 %v2579_v30, %v2575_v13  ;;  %v2646_v23 = vld [vmem:[%s8255_s7 + $0x350] sm:$0xff]  ;;  %v2655_v13 = vld [vmem:[%s8255_s7 + $0x398] sm:$0xff] }
 0x634   :  { %v2650_v24 = vld [vmem:[%s8255_s7 + $0x370] sm:$0xff]  ;;  %v2659_v30 = vld [vmem:[%s8255_s7 + $0x3b8] sm:$0xff] }
 0x635   :  { %5581 = vmatpush1.bf16.msra.mxu1 %v5580_v33  ;;  %v5688_v33 = vpack.c.bf16 %v2578_v37, %v2574_v32  ;;  %v2654_v32 = vld [vmem:[%s8255_s7 + $0x390] sm:$0xff] }
 0x636   :  { %5583 = vmatprep.subr.bf16.mxu1 %v5582_v34  ;;  %v2583_v34 = vld [vmem:[%s8255_s7 + $0x158] sm:$0xff]  ;;  %v2658_v37 = vld [vmem:[%s8255_s7 + $0x3b0] sm:$0xff] }
 0x637   :  { %v5690_v9 = vpack.c.bf16 %v2587_v18, %v2583_v34  ;;  %v2663_v34 = vld [vmem:[%s8255_s7 + $0x3d8] sm:$0xff] }
 0x638   :  { %v2667_v18 = vld [vmem:[%s8255_s7 + $0x3f8] sm:$0xff] }
 0x639   :  { %5585 = vmatpush1.bf16.msra.mxu1 %v5584_v53  ;;  %v5692_v53 = vpack.c.bf16 %v2586_v7, %v2582_v35  ;;  %v4792_v35 = vld [vmem:[%s8253_s5 + $0xc] sm:$0xf]  ;;  %v2401_v7 = vsub.s32 2, %v6484_v4 }
 0x63a   :  { %5587 = vmatprep.subr.bf16.mxu1 %v5586_v36  ;;  %v2591_v36 = vld [vmem:[%s8255_s7 + $0x198] sm:$0xff] }
 0x63b   :  { %v5694_v39 = vpack.c.bf16 %v2595_v38, %v2591_v36  ;;  %v2398_v36 = vrot.slane %v4792_v35, %v6489_v8  ;;  %v2402_v38 = vrot.slane %v4792_v35, %v2401_v7 }
 0x63d   :  { %5589 = vmatpush1.bf16.msra.mxu1 %v5588_v61  ;;  %v5696_v61 = vpack.c.bf16 %v2594_v49, %v2590_v40  ;;  %v2408_v49 = vrot.slane %v2398_v36, %v6489_v8  ;;  %v2556_v36 = vld [vmem:[%s8255_s7 + $0x80] sm:$0xff] }
 0x63e   :  { %5591 = vmatprep.subr.bf16.mxu1 %v5590_v42  ;;  %v2599_v42 = vld [vmem:[%s8255_s7 + $0x1d8] sm:$0xff] }
 0x63f   :  { %v5698_v1 = vpack.c.bf16 %v2603_v43, %v2599_v42 }
 0x641   :  { %5593 = vmatpush1.bf16.msra.mxu1 %v5592_v46  ;;  %v5700_v46 = vpack.c.bf16 %v2602_v45, %v2598_v44 }
 0x642   :  { %5595 = vmatprep.subr.bf16.mxu1 %v5594_v26  ;;  %v2607_v26 = vld [vmem:[%s8255_s7 + $0x218] sm:$0xff] }
 0x643   :  { %v5702_v14 = vpack.c.bf16 %v2611_v48, %v2607_v26 }
 0x645   :  { %5597 = vmatpush1.bf16.msra.mxu1 %v5596_v51  ;;  %v5704_v51 = vpack.c.bf16 %v2610_v21, %v2606_v50 }
 0x646   :  { %5599 = vmatprep.subr.bf16.mxu1 %v5598_v28  ;;  %v2615_v28 = vld [vmem:[%s8255_s7 + $0x258] sm:$0xff] }
 0x647   :  { %v5706_v52 = vpack.c.bf16 %v2619_v29, %v2615_v28 }
 0x649   :  { %5601 = vmatpush1.bf16.msra.mxu1 %v5600_v54  ;;  %v2614_v54 = vld [vmem:[%s8255_s7 + $0x250] sm:$0xff] }
 0x64a   :  { %5671 = vmatprep.subr.bf16.mxu1 %v5670_v56  ;;  %v5710_v56 = vpack.c.bf16 %v2627_v47, %v2623_v16 }
 0x64c   :  { %2376 = vmatmul.mubr.f32.vlgmr.msra.gmra.mrb[28].mxu1 %v2057_v55  ;;  %v2618_v55 = vld [vmem:[%s8255_s7 + $0x270] sm:$0xff] }
 0x64d   :  { %2381 = vmatprep.mubr.f32.mxu1 %v6245_v6  ;;  %5673 = vmatpush1.bf16.msra.mxu1 %v5672_v57  ;;  %v5712_v57 = vpack.c.bf16 %v2626_v59, %v2622_v58 }
 0x64e   :  { %5675 = vmatprep.subr.bf16.mxu1 %v5674_v63  ;;  %v5714_v63 = vpack.c.bf16 %v2635_v62, %v2631_v60 }
 0x650   :  { %2382 = vmatmul.mubr.f32.gmra.mrb[30].mxu1 %v2058_v11  ;;  %v5708_v11 = vpack.c.bf16 %v2618_v55, %v2614_v54 }
 0x651   :  { %5677 = vmatpush1.bf16.msra.mxu1 %v5676_v3  ;;  %v5716_v3 = vpack.c.bf16 %v2634_v2, %v2630_v0 }
 0x652   :  { %5679 = vmatprep.subr.bf16.mxu1 %v5678_v15  ;;  %v5718_v15 = vpack.c.bf16 %v2643_v10, %v2639_v22  ;;  %v2541_v22 = vld [vmem:[%s8255_s7 + $0x8] sm:$0xff] }
 0x653   :  { %v2545_v10 = vld [vmem:[%s8255_s7 + $0x28] sm:$0xff] }
 0x655   :  { %5681 = vmatpush1.bf16.msra.mxu1 %v5680_v5  ;;  %v5720_v5 = vpack.c.bf16 %v2642_v17, %v2638_v41 }
 0x656   :  { %5683 = vmatprep.subr.bf16.mxu1 %v5682_v25  ;;  %v5722_v25 = vpack.c.bf16 %v2651_v20, %v2647_v19 }
 0x659   :  { %5685 = vmatpush1.bf16.msra.mxu1 %v5684_v27  ;;  %v5724_v27 = vpack.c.bf16 %v2650_v24, %v2646_v23  ;;  %v2540_v23 = vld [vmem:[%s8255_s7] sm:$0xff] }
 0x65a   :  { %5687 = vmatprep.subr.bf16.mxu1 %v5686_v31  ;;  %v5726_v31 = vpack.c.bf16 %v2659_v30, %v2655_v13  ;;  %v2544_v24 = vld [vmem:[%s8255_s7 + $0x20] sm:$0xff]  ;;  %v2553_v13 = vld [vmem:[%s8255_s7 + $0x68] sm:$0xff] }
 0x65b   :  { %v4797_v30 = vld [vmem:[%s8254_s6 + $0xc0] sm:$0xff] }
 0x65d   :  { %5689 = vmatpush1.bf16.msra.mxu1 %v5688_v33  ;;  %v5728_v33 = vpack.c.bf16 %v2658_v37, %v2654_v32  ;;  %v2548_v37 = vld [vmem:[%s8255_s7 + $0x40] sm:$0xff] }
 0x65e   :  { %5691 = vmatprep.subr.bf16.mxu1 %v5690_v9  ;;  %v5730_v9 = vpack.c.bf16 %v2667_v18, %v2663_v34  ;;  %v2557_v34 = vld [vmem:[%s8255_s7 + $0x88] sm:$0xff] }
 0x65f   :  { %v2561_v18 = vld [vmem:[%s8255_s7 + $0xa8] sm:$0xff] }
 0x661   :  { %5693 = vmatpush1.bf16.msra.mxu1 %v5692_v53  ;;  %v2423_v53 = vsub.s32 3, %v6484_v4 }
 0x662   :  { %5695 = vmatprep.subr.bf16.mxu1 %v5694_v39  ;;  %v2420_v39 = vrot.slane %v4792_v35, %v6499_v12 }
 0x663   :  { %v2424_v40 = vrot.slane %v4792_v35, %v2423_v53  ;;  %v5614_v35 = vpack.c.bf16 %v2561_v18, %v2557_v34  ;;  %v2628_v34 = vld [vmem:[%s8255_s7 + $0x2c0] sm:$0xff] }
 0x664   :  { %v2430_v42 = vrot.slane %v2420_v39, %v6499_v12  ;;  %v2565_v39 = vld [vmem:[%s8255_s7 + $0xc8] sm:$0xff]  ;;  %v2632_v18 = vld [vmem:[%s8255_s7 + $0x2e0] sm:$0xff] }
 0x665   :  { %5697 = vmatpush1.bf16.msra.mxu1 %v5696_v61  ;;  %v2412_v61 = vrot.slane %v2402_v38, %v6489_v8  ;;  %v2560_v38 = vld [vmem:[%s8255_s7 + $0xa0] sm:$0xff] }
 0x666   :  { %5699 = vmatprep.subr.bf16.mxu1 %v5698_v1  ;;  %v2434_v1 = vrot.slane %v2424_v40, %v6499_v12  ;;  %v2569_v40 = vld [vmem:[%s8255_s7 + $0xe8] sm:$0xff] }
 0x669   :  { %5701 = vmatpush1.bf16.msra.mxu1 %v5700_v46 }
 0x66a   :  { %5703 = vmatprep.subr.bf16.mxu1 %v5702_v14 }
 0x66d   :  { %5705 = vmatpush1.bf16.msra.mxu1 %v5704_v51 }
 0x66e   :  { %5707 = vmatprep.subr.bf16.mxu1 %v5706_v52 }
 0x671   :  { %5709 = vmatpush1.bf16.msra.mxu1 %v5708_v11 }
 0x672   :  { %5711 = vmatprep.subr.bf16.mxu1 %v5710_v56 }
 0x675   :  { %5713 = vmatpush1.bf16.msra.mxu1 %v5712_v57 }
 0x676   :  { %5715 = vmatprep.subr.bf16.mxu1 %v5714_v63 }
 0x679   :  { %5717 = vmatpush1.bf16.msra.mxu1 %v5716_v3 }
 0x67a   :  { %5719 = vmatprep.subr.bf16.mxu1 %v5718_v15 }
 0x67d   :  { %5721 = vmatpush1.bf16.msra.mxu1 %v5720_v5 }
 0x67e   :  { %5723 = vmatprep.subr.bf16.mxu1 %v5722_v25  ;;  %v5606_v25 = vpack.c.bf16 %v2545_v10, %v2541_v22  ;;  %v2604_v22 = vld [vmem:[%s8255_s7 + $0x200] sm:$0xff] }
 0x67f   :  { %v2608_v10 = vld [vmem:[%s8255_s7 + $0x220] sm:$0xff] }
 0x681   :  { %5725 = vmatpush1.bf16.msra.mxu1 %v5724_v27  ;;  %v2549_v27 = vld [vmem:[%s8255_s7 + $0x48] sm:$0xff] }
 0x682   :  { %5727 = vmatprep.subr.bf16.mxu1 %v5726_v31  ;;  %v5608_v31 = vpack.c.bf16 %v2544_v24, %v2540_v23  ;;  %v5610_v32 = vpack.c.bf16 %v2553_v13, %v2549_v27  ;;  %v2625_v23 = vld [vmem:[%s8255_s7 + $0x2a8] sm:$0xff]  ;;  %v2620_v13 = vld [vmem:[%s8255_s7 + $0x280] sm:$0xff] }
 0x685   :  { %5729 = vmatpush1.bf16.msra.mxu1 %v5728_v33  ;;  %v2552_v33 = vld [vmem:[%s8255_s7 + $0x60] sm:$0xff] }
 0x686   :  { %5731 = vmatprep.subr.bf16.mxu1 %v5730_v9  ;;  %v5612_v9 = vpack.c.bf16 %v2552_v33, %v2548_v37 }
 0x71f   :  { %v2377_v43 = vpop.f32.mrb[28].mxu1 }
 0x720   :  { %v2413_v44 = vmul.f32 %v2408_v49, %v2377_v43  ;;  %v2379_v45 = vpop.f32.mrb[29].mxu1  ;;  %v2568_v43 = vld [vmem:[%s8255_s7 + $0xe0] sm:$0xff] }
 0x721   :  { %v2414_v46 = vmul.f32 %v2412_v61, %v2379_v45 }
 0x722   :  { %v2435_v26 = vadd.f32 %v2430_v42, %v2413_v44  ;;  %v2577_v44 = vld [vmem:[%s8255_s7 + $0x128] sm:$0xff] }
 0x723   :  { %v2436_v48 = vadd.f32 %v2434_v1, %v2414_v46  ;;  %v2383_v14 = vpop.f32.mrb[30].mxu1 }
 0x724   :  { %v2443_v50 = vmin.f32 %v2435_v26, 0.0  ;;  %v2415_v21 = vmul.f32 %v2408_v49, %v2383_v14  ;;  %v2385_v51 = vpop.f32.mrb[31].mxu1  ;;  %vm2439_vm9 = vcmp.gt.f32.partialorder %v2435_v26, 0.0  ;;  %v5616_v49 = vpack.c.bf16 %v2560_v38, %v2556_v36  ;;  %v2581_v14 = vld [vmem:[%s8255_s7 + $0x148] sm:$0xff] }
 0x725   :  { %v2444_v28 = vmin.f32 %v2436_v48, 0.0  ;;  %v2416_v29 = vmul.f32 %v2412_v61, %v2385_v51  ;;  %vm2440_vm11 = vcmp.gt.f32.partialorder %v2436_v48, 0.0  ;;  %v5618_v61 = vpack.c.bf16 %v2569_v40, %v2565_v39  ;;  %v2636_v39 = vld [vmem:[%s8255_s7 + $0x300] sm:$0xff] }
 0x726   :  { %v2447_v52 = vmul.f32 1.442695, %v2443_v50  ;;  %v2437_v54 = vadd.f32 %v2430_v42, %v2415_v21  ;;  %v2564_v42 = vld [vmem:[%s8255_s7 + $0xc0] sm:$0xff]  ;;  %v2585_v50 = vld [vmem:[%s8255_s7 + $0x168] sm:$0xff]  ;;  %v5652_v36 = vpack.c.bf16 %v2632_v18, %v2628_v34 }
 0x727   :  { %v2449_v55 = vmul.f32 1.442695, %v2444_v28  ;;  %v2438_v11 = vadd.f32 %v2434_v1, %v2416_v29  ;;  %v2573_v1 = vld [vmem:[%s8255_s7 + $0x108] sm:$0xff]  ;;  %v5620_v45 = vpack.c.bf16 %v2568_v43, %v2564_v42  ;;  %v5626_v51 = vpack.c.bf16 %v2585_v50, %v2581_v14  ;;  %v2580_v28 = vld [vmem:[%s8255_s7 + $0x140] sm:$0xff] }
 0x728   :  { %6109 = vpow2.f32 %v2447_v52  ;;  %v2445_v16 = vmin.f32 %v2437_v54, 0.0  ;;  %vm2441_vm10 = vcmp.gt.f32.partialorder %v2437_v54, 0.0  ;;  %v5622_v46 = vpack.c.bf16 %v2577_v44, %v2573_v1  ;;  %v2584_v29 = vld [vmem:[%s8255_s7 + $0x160] sm:$0xff]  ;;  %v2589_v52 = vld [vmem:[%s8255_s7 + $0x188] sm:$0xff] }
 0x729   :  { %6111 = vpow2.f32 %v2449_v55  ;;  %v2446_v47 = vmin.f32 %v2438_v11, 0.0  ;;  %vm2442_vm12 = vcmp.gt.f32.partialorder %v2438_v11, 0.0  ;;  %v5628_v55 = vpack.c.bf16 %v2584_v29, %v2580_v28  ;;  %v2640_v40 = vld [vmem:[%s8255_s7 + $0x320] sm:$0xff] }
 0x72a   :  { %v2451_v56 = vmul.f32 1.442695, %v2445_v16  ;;  %v2588_v16 = vld [vmem:[%s8255_s7 + $0x180] sm:$0xff]  ;;  %v5656_v42 = vpack.c.bf16 %v2640_v40, %v2636_v39  ;;  %v2892_v40 = vld [vmem:[%s8256_s8 + $0x48] sm:$0xff] }
 0x72b   :  { %v2453_v58 = vmul.f32 1.442695, %v2446_v47  ;;  %v2592_v47 = vld [vmem:[%s8255_s7 + $0x1a0] sm:$0xff] }
 0x72c   :  { %6113 = vpow2.f32 %v2451_v56  ;;  %v2597_v56 = vld [vmem:[%s8255_s7 + $0x1c8] sm:$0xff]  ;;  %v2644_v1 = vld [vmem:[%s8255_s7 + $0x340] sm:$0xff] }
 0x72d   :  { %6115 = vpow2.f32 %v2453_v58  ;;  %v2601_v58 = vld [vmem:[%s8255_s7 + $0x1e8] sm:$0xff]  ;;  %v2648_v44 = vld [vmem:[%s8255_s7 + $0x360] sm:$0xff] }
 0x72e   :  { %v2652_v14 = vld [vmem:[%s8255_s7 + $0x380] sm:$0xff] }
 0x72f   :  { %v2656_v50 = vld [vmem:[%s8255_s7 + $0x3a0] sm:$0xff] }
 0x730   :  { %v5664_v28 = vpack.c.bf16 %v2656_v50, %v2652_v14  ;;  %v2908_v14 = vld [vmem:[%s8256_s8 + $0xc8] sm:$0xff] }
 0x731   :  { %v2912_v50 = vld [vmem:[%s8256_s8 + $0xe8] sm:$0xff] }
 0x732   :  { %v6110_v59 = vpop.eup %6109 }
 0x733   :  { %v6112_v57 = vpop.eup %6111  ;;  %v4793_v60 = vadd.f32 -1.0, %v6110_v59  ;;  %v5632_v59 = vpack.c.bf16 %v2592_v47, %v2588_v16  ;;  %v2666_v16 = vld [vmem:[%s8255_s7 + $0x3f0] sm:$0xff] }
 0x734   :  { %v4794_v63 = vadd.f32 -1.0, %v6112_v57  ;;  %v5634_v57 = vpack.c.bf16 %v2601_v58, %v2597_v56 }
 0x735   :  { %v2459_v15 = vsel %vm2439_vm9, %v2435_v26, %v4793_v60  ;;  %v2572_v26 = vld [vmem:[%s8255_s7 + $0x100] sm:$0xff] }
 0x736   :  { %v6114_v62 = vpop.eup %6113  ;;  %v2460_v17 = vsel %vm2440_vm11, %v2436_v48, %v4794_v63  ;;  %v2576_v48 = vld [vmem:[%s8255_s7 + $0x120] sm:$0xff]  ;;  %v2605_v63 = vld [vmem:[%s8255_s7 + $0x208] sm:$0xff] }
 0x737   :  { %v6116_v0 = vpop.eup %6115  ;;  %v4795_v2 = vadd.f32 -1.0, %v6114_v62  ;;  %v5624_v21 = vpack.c.bf16 %v2576_v48, %v2572_v26  ;;  %v2596_v60 = vld [vmem:[%s8255_s7 + $0x1c0] sm:$0xff]  ;;  %v5660_v26 = vpack.c.bf16 %v2648_v44, %v2644_v1  ;;  %v2900_v44 = vld [vmem:[%s8256_s8 + $0x88] sm:$0xff] }
 0x738   :  { %v4796_v3 = vadd.f32 -1.0, %v6116_v0  ;;  %v2600_v62 = vld [vmem:[%s8255_s7 + $0x1e0] sm:$0xff]  ;;  %v2609_v0 = vld [vmem:[%s8255_s7 + $0x228] sm:$0xff] }
 0x739   :  { %v2461_v41 = vsel %vm2441_vm10, %v2437_v54, %v4795_v2  ;;  %v2593_v54 = vld [vmem:[%s8255_s7 + $0x1a8] sm:$0xff]  ;;  %v5636_v2 = vpack.c.bf16 %v2600_v62, %v2596_v60  ;;  %v2883_v60 = vld [vmem:[%s8256_s8] sm:$0xff] }
 0x73a   :  { %v2462_v5 = vsel %vm2442_vm12, %v2438_v11, %v4796_v3  ;;  %v5604_v19 = vpack.c.bf16 %v2461_v41, %v2459_v15  ;;  %v5630_v11 = vpack.c.bf16 %v2593_v54, %v2589_v52  ;;  %v5638_v3 = vpack.c.bf16 %v2609_v0, %v2605_v63  ;;  %v2613_v15 = vld [vmem:[%s8255_s7 + $0x248] sm:$0xff]  ;;  %v2660_v52 = vld [vmem:[%s8255_s7 + $0x3c0] sm:$0xff] }
 0x73b   :  { %v5602_v20 = vpack.c.bf16 %v2462_v5, %v2460_v17  ;;  %v2617_v41 = vld [vmem:[%s8255_s7 + $0x268] sm:$0xff]  ;;  %v5640_v17 = vpack.c.bf16 %v2608_v10, %v2604_v22  ;;  %v2664_v54 = vld [vmem:[%s8255_s7 + $0x3e0] sm:$0xff] }
 0x73c   :  { %v5642_v5 = vpack.c.bf16 %v2617_v41, %v2613_v15  ;;  %v2887_v63 = vld [vmem:[%s8256_s8 + $0x20] sm:$0xff] }
 0x73d   :  { %5603 = vmatprep.subr.bf16.mxu0 %v5602_v20  ;;  %v2616_v20 = vld [vmem:[%s8255_s7 + $0x260] sm:$0xff]  ;;  %v7571_v0 = vpack.c.bf16 %v2887_v63, %v2883_v60 }
 0x73e   :  { %5605 = vmatpush1.bf16.msra.mxu0 %v5604_v19  ;;  %v2612_v19 = vld [vmem:[%s8255_s7 + $0x240] sm:$0xff] }
 0x73f   :  { %5607 = vmatprep.subr.bf16.mxu0 %v5606_v25  ;;  %v2621_v25 = vld [vmem:[%s8255_s7 + $0x288] sm:$0xff]  ;;  %v5644_v24 = vpack.c.bf16 %v2616_v20, %v2612_v19 }
 0x740   :  { %v5646_v27 = vpack.c.bf16 %v2625_v23, %v2621_v25 }
 0x741   :  { %4798 = vmatmul.mubr.msk.f32.vlgmr.msra.gmra.mrb[30].mxu0 %vm2465_vm13, %v4797_v30  ;;  %v2624_v30 = vld [vmem:[%s8255_s7 + $0x2a0] sm:$0xff] }
 0x742   :  { %5609 = vmatpush1.bf16.msra.mxu0 %v5608_v31  ;;  %v2629_v31 = vld [vmem:[%s8255_s7 + $0x2c8] sm:$0xff]  ;;  %v5648_v37 = vpack.c.bf16 %v2624_v30, %v2620_v13 }
 0x743   :  { %5611 = vmatprep.subr.bf16.mxu0 %v5610_v32  ;;  %v2633_v32 = vld [vmem:[%s8255_s7 + $0x2e8] sm:$0xff] }
 0x744   :  { %v5650_v33 = vpack.c.bf16 %v2633_v32, %v2629_v31 }
 0x746   :  { %5613 = vmatpush1.bf16.msra.mxu0 %v5612_v9  ;;  %v2637_v9 = vld [vmem:[%s8255_s7 + $0x308] sm:$0xff] }
 0x747   :  { %5615 = vmatprep.subr.bf16.mxu0 %v5614_v35  ;;  %v2641_v35 = vld [vmem:[%s8255_s7 + $0x328] sm:$0xff] }
 0x748   :  { %v5654_v38 = vpack.c.bf16 %v2641_v35, %v2637_v9 }
 0x74a   :  { %5617 = vmatpush1.bf16.msra.mxu0 %v5616_v49  ;;  %v2645_v49 = vld [vmem:[%s8255_s7 + $0x348] sm:$0xff] }
 0x74b   :  { %5619 = vmatprep.subr.bf16.mxu0 %v5618_v61  ;;  %v2649_v61 = vld [vmem:[%s8255_s7 + $0x368] sm:$0xff] }
 0x74c   :  { %v5658_v43 = vpack.c.bf16 %v2649_v61, %v2645_v49  ;;  %v2896_v49 = vld [vmem:[%s8256_s8 + $0x68] sm:$0xff]  ;;  %v2891_v61 = vld [vmem:[%s8256_s8 + $0x40] sm:$0xff] }
 0x74e   :  { %5621 = vmatpush1.bf16.msra.mxu0 %v5620_v45  ;;  %v2653_v45 = vld [vmem:[%s8255_s7 + $0x388] sm:$0xff] }
 0x74f   :  { %5623 = vmatprep.subr.bf16.mxu0 %v5622_v46  ;;  %v2657_v46 = vld [vmem:[%s8255_s7 + $0x3a8] sm:$0xff] }
 0x750   :  { %v5662_v48 = vpack.c.bf16 %v2657_v46, %v2653_v45  ;;  %v2904_v45 = vld [vmem:[%s8256_s8 + $0xa8] sm:$0xff]  ;;  %v2899_v46 = vld [vmem:[%s8256_s8 + $0x80] sm:$0xff] }
 0x752   :  { %5625 = vmatpush1.bf16.msra.mxu0 %v5624_v21  ;;  %v2661_v21 = vld [vmem:[%s8255_s7 + $0x3c8] sm:$0xff] }
 0x753   :  { %5627 = vmatprep.subr.bf16.mxu0 %v5626_v51  ;;  %v2665_v51 = vld [vmem:[%s8255_s7 + $0x3e8] sm:$0xff] }
 0x754   :  { %v5666_v29 = vpack.c.bf16 %v2665_v51, %v2661_v21  ;;  %v7630_v51 = vpack.c.bf16 %v2912_v50, %v2908_v14 }
 0x756   :  { %5629 = vmatpush1.bf16.msra.mxu0 %v5628_v55  ;;  %v2662_v55 = vld [vmem:[%s8255_s7 + $0x3d0] sm:$0xff] }
 0x757   :  { %5631 = vmatprep.subr.bf16.mxu0 %v5630_v11  ;;  %v5668_v11 = vpack.c.bf16 %v2664_v54, %v2660_v52  ;;  %v5732_v47 = vpack.c.bf16 %v2666_v16, %v2662_v55  ;;  %v2886_v52 = vld [vmem:[%s8256_s8 + $0x18] sm:$0xff] }
 0x758   :  { %v2890_v54 = vld [vmem:[%s8256_s8 + $0x38] sm:$0xff] }
 0x759   :  { %5733 = vmatpush1.bf16.msra.mxu1 %v5732_v47 }
 0x75a   :  { %5633 = vmatpush1.bf16.msra.mxu0 %v5632_v59  ;;  %v2884_v59 = vld [vmem:[%s8256_s8 + $0x8] sm:$0xff] }
 0x75b   :  { %5635 = vmatprep.subr.bf16.mxu0 %v5634_v57  ;;  %v2888_v57 = vld [vmem:[%s8256_s8 + $0x28] sm:$0xff] }
 0x75c   :  { %v7566_v62 = vpack.c.bf16 %v2888_v57, %v2884_v59 }
 0x75e   :  { %5637 = vmatpush1.bf16.msra.mxu0 %v5636_v2  ;;  %5799 = vmatprep.subr.bf16.mxu1 %v7566_v62  ;;  %v2810_v2 = vld [vmem:[%s8257_s9] ss:$2 sm:$0x3] }
 0x75f   :  { %5639 = vmatprep.subr.bf16.mxu0 %v5638_v3  ;;  %v4799_v3 = vld [vmem:[%s8257_s9 + $0x1] ss:$2 sm:$0x3]  ;;  %v2815_v22 = vrot.slane %v2810_v2, %v6489_v8  ;;  %v2819_v15 = vrot.slane %v2810_v2, %v6499_v12 }
 0x760   :  { %v2830_v10 = vrot.slane %v4799_v3, %v6489_v8  ;;  %v2834_v41 = vrot.slane %v4799_v3, %v6499_v12 }
 0x762   :  { %5641 = vmatpush1.bf16.msra.mxu0 %v5640_v17 }
 0x763   :  { %5643 = vmatprep.subr.bf16.mxu0 %v5642_v5 }
 0x766   :  { %5645 = vmatpush1.bf16.msra.mxu0 %v5644_v24 }
 0x767   :  { %5647 = vmatprep.subr.bf16.mxu0 %v5646_v27 }
 0x76a   :  { %5649 = vmatpush1.bf16.msra.mxu0 %v5648_v37 }
 0x76b   :  { %5651 = vmatprep.subr.bf16.mxu0 %v5650_v33 }
 0x76e   :  { %5653 = vmatpush1.bf16.msra.mxu0 %v5652_v36 }
 0x76f   :  { %5655 = vmatprep.subr.bf16.mxu0 %v5654_v38 }
 0x772   :  { %5657 = vmatpush1.bf16.msra.mxu0 %v5656_v42  ;;  %v7596_v42 = vpack.c.bf16 %v2896_v49, %v2892_v40 }
 0x773   :  { %5659 = vmatprep.subr.bf16.mxu0 %v5658_v43  ;;  %v2895_v43 = vld [vmem:[%s8256_s8 + $0x60] sm:$0xff] }
 0x774   :  { %v7601_v1 = vpack.c.bf16 %v2895_v43, %v2891_v61 }
 0x776   :  { %5661 = vmatpush1.bf16.msra.mxu0 %v5660_v26  ;;  %v7613_v26 = vpack.c.bf16 %v2904_v45, %v2900_v44 }
 0x777   :  { %5663 = vmatprep.subr.bf16.mxu0 %v5662_v48  ;;  %v2903_v48 = vld [vmem:[%s8256_s8 + $0xa0] sm:$0xff] }
 0x778   :  { %v7626_v21 = vpack.c.bf16 %v2903_v48, %v2899_v46 }
 0x77a   :  { %5665 = vmatpush1.bf16.msra.mxu0 %v5664_v28  ;;  %v2907_v28 = vld [vmem:[%s8256_s8 + $0xc0] sm:$0xff] }
 0x77b   :  { %5667 = vmatprep.subr.bf16.mxu0 %v5666_v29  ;;  %v2911_v29 = vld [vmem:[%s8256_s8 + $0xe0] sm:$0xff] }
 0x77c   :  { %v7646_v55 = vpack.c.bf16 %v2911_v29, %v2907_v28 }
 0x77e   :  { %5669 = vmatpush1.bf16.msra.mxu0 %v5668_v11  ;;  %v7650_v11 = vpack.c.bf16 %v2890_v54, %v2886_v52 }
 0x77f   :  { %5735 = vmatprep.subr.bf16.mxu0 %v7566_v62 }
 0x814   :  { %v2535_v56 = vpop.f32.mrb[30].mxu0 }
 0x815   :  { %v2537_v58 = vpop.f32.mrb[31].mxu0 }
 0x816   :  { %2732 = vmatprep.mubr.f32.mxu0 %v2537_v58  ;;  %2803 = vmatprep.mubr.f32.mxu1 %v2537_v58 }
 0x817   :  { %2733 = vmatmul.mubr.f32.vlgmr.msra.gmra.mrb[32].mxu0 %v2535_v56  ;;  %2804 = vmatmul.mubr.f32.vlgmr.msra.gmra.mrb[32].mxu1 %v2535_v56 }
 0x818   :  { %3015 = vmatprep.mubr.f32.mxu0 %v6245_v6  ;;  %3406 = vmatprep.mubr.f32.mxu1 %v6245_v6 }
 0x819   :  { %5737 = vmatpush1.bf16.msra.mxu0 %v7571_v0  ;;  %5801 = vmatpush1.bf16.msra.mxu1 %v7571_v0 }
 0x81a   :  { %5739 = vmatprep.subr.bf16.mxu0 %v7596_v42  ;;  %5803 = vmatprep.subr.bf16.mxu1 %v7596_v42 }
 0x81d   :  { %5741 = vmatpush1.bf16.msra.mxu0 %v7601_v1  ;;  %5805 = vmatpush1.bf16.msra.mxu1 %v7601_v1 }
 0x81e   :  { %5743 = vmatprep.subr.bf16.mxu0 %v7613_v26  ;;  %5807 = vmatprep.subr.bf16.mxu1 %v7613_v26 }
 0x821   :  { %5745 = vmatpush1.bf16.msra.mxu0 %v7626_v21  ;;  %5809 = vmatpush1.bf16.msra.mxu1 %v7626_v21 }
 0x822   :  { %5747 = vmatprep.subr.bf16.mxu0 %v7630_v51  ;;  %5811 = vmatprep.subr.bf16.mxu1 %v7630_v51 }
 0x825   :  { %5749 = vmatpush1.bf16.msra.mxu0 %v7646_v55  ;;  %5813 = vmatpush1.bf16.msra.mxu1 %v7646_v55 }
 0x826   :  { %5751 = vmatprep.subr.bf16.mxu0 %v7650_v11 }
 0x8ea   :  { %v2734_v17 = vpop.f32.mrb[32].mxu0  ;;  %v2805_v5 = vpop.f32.mrb[32].mxu1 }
 0x8eb   :  { %v2822_v19 = vadd.f32 %v2815_v22, %v2734_v17  ;;  %v2837_v20 = vadd.f32 %v2830_v10, %v2805_v5  ;;  %v2736_v25 = vpop.f32.mrb[33].mxu0  ;;  %v2807_v23 = vpop.f32.mrb[33].mxu1  ;;  %v2894_v17 = vld [vmem:[%s8256_s8 + $0x58] sm:$0xff] }
 0x8ec   :  { %v2823_v24 = vadd.f32 %v2819_v15, %v2736_v25  ;;  %v2838_v27 = vadd.f32 %v2834_v41, %v2807_v23  ;;  %v2885_v15 = vld [vmem:[%s8256_s8 + $0x10] sm:$0xff]  ;;  %v2898_v5 = vld [vmem:[%s8256_s8 + $0x78] sm:$0xff] }
 0x8ed   :  { %2839 = vst [vmem:[#allocation3] sm:$0x3] %v2822_v19  ;;  %v2851_v13 = vrot.slane %v2822_v19, 6  ;;  %v2863_v30 = vrot.slane %v2822_v19, 4  ;;  %v2871_v31 = vrot.slane %v2822_v19, 2  ;;  %v2843_v32 = vrot.slane %v2837_v20, 4 }
 0x8ee   :  { %2869 = vst [vmem:[#allocation3 + $0x10] sm:$0xc] %v2837_v20  ;;  %v2857_v37 = vrot.slane %v2837_v20, 6  ;;  %v2877_v33 = vrot.slane %v2837_v20, 2  ;;  %2840 = vst [vmem:[#allocation3 + $0x8] sm:$0x3] %v2823_v24 }
 0x8ef   :  { %v2852_v34 = vrot.slane %v2823_v24, 6  ;;  %v2864_v18 = vrot.slane %v2823_v24, 4  ;;  %2870 = vst [vmem:[#allocation3 + $0x18] sm:$0xc] %v2838_v27  ;;  %2855 = vst [vmem:[#allocation3] sm:$0x30] %v2851_v13 }
 0x8f0   :  { %2867 = vst [vmem:[#allocation3 + $0x10] sm:$0x3] %v2863_v30  ;;  %2875 = vst [vmem:[#allocation3 + $0x10] sm:$0x30] %v2871_v31  ;;  %v2872_v9 = vrot.slane %v2823_v24, 2  ;;  %v2844_v35 = vrot.slane %v2838_v27, 4  ;;  %v7674_v24 = vpack.c.bf16 %v2898_v5, %v2894_v17 }
 0x8f1   :  { %2847 = vst [vmem:[#allocation3] sm:$0xc] %v2843_v32  ;;  %v2858_v36 = vrot.slane %v2838_v27, 6  ;;  %v2878_v38 = vrot.slane %v2838_v27, 2  ;;  %2861 = vst [vmem:[#allocation3] sm:$0xc0] %v2857_v37 }
 0x8f2   :  { %2881 = vst [vmem:[#allocation3 + $0x10] sm:$0xc0] %v2877_v33  ;;  %2856 = vst [vmem:[#allocation3 + $0x8] sm:$0x30] %v2852_v34  ;;  %v2889_v41 = vld [vmem:[%s8256_s8 + $0x30] sm:$0xff]  ;;  %v2902_v30 = vld [vmem:[%s8256_s8 + $0x98] sm:$0xff] }
 0x8f3   :  { %2868 = vst [vmem:[#allocation3 + $0x18] sm:$0x3] %v2864_v18  ;;  %2876 = vst [vmem:[#allocation3 + $0x18] sm:$0x30] %v2872_v9  ;;  %v7670_v25 = vpack.c.bf16 %v2889_v41, %v2885_v15  ;;  %v2893_v27 = vld [vmem:[%s8256_s8 + $0x50] sm:$0xff]  ;;  %v2906_v31 = vld [vmem:[%s8256_s8 + $0xb8] sm:$0xff] }
 0x8f4   :  { %2848 = vst [vmem:[#allocation3 + $0x8] sm:$0xc] %v2844_v35  ;;  %2862 = vst [vmem:[#allocation3 + $0x8] sm:$0xc0] %v2858_v36  ;;  %v2897_v13 = vld [vmem:[%s8256_s8 + $0x70] sm:$0xff]  ;;  %v7697_v37 = vpack.c.bf16 %v2906_v31, %v2902_v30  ;;  %v2910_v18 = vld [vmem:[%s8256_s8 + $0xd8] sm:$0xff] }
 0x8f5   :  { %2882 = vst [vmem:[#allocation3 + $0x18] sm:$0xc0] %v2878_v38  ;;  %v7693_v32 = vpack.c.bf16 %v2897_v13, %v2893_v27  ;;  %v2901_v33 = vld [vmem:[%s8256_s8 + $0x90] sm:$0xff]  ;;  %v2914_v9 = vld [vmem:[%s8256_s8 + $0xf8] sm:$0xff] }
 0x8f6   :  { %v2905_v34 = vld [vmem:[%s8256_s8 + $0xb0] sm:$0xff]  ;;  %v7715_v36 = vpack.c.bf16 %v2914_v9, %v2910_v18 }
 0x8f7   :  { %v7712_v35 = vpack.c.bf16 %v2905_v34, %v2901_v33  ;;  %v2909_v38 = vld [vmem:[%s8256_s8 + $0xd0] sm:$0xff] }
 0x8f8   :  { %v2918_v47 = vld [vmem:[#allocation3] sm:$0xf]  ;;  %v2947_v48 = vld [vmem:[#allocation3] sm:$0xf0] }
 0x8f9   :  { %v4800_v56 = vmul.f32 -1.442695, %v2918_v47 }
 0x8fa   :  { %v3149_v17 = vld [vmem:[#allocation3 + $0x18] sm:$0xf] }
 0x8fb   :  { %v2919_v39 = vld [vmem:[#allocation3 + $0x8] sm:$0xf]  ;;  %v2948_v44 = vld [vmem:[#allocation3 + $0x8] sm:$0xf0] }
 0x8fc   :  { %6117 = vtanh.f32 %v2919_v39  ;;  %v4801_v58 = vmul.f32 -1.442695, %v2919_v39  ;;  %v2913_v39 = vld [vmem:[%s8256_s8 + $0xf0] sm:$0xff] }
 0x8fd   :  { %6119 = vpow2.f32 %v4800_v56  ;;  %v7724_v40 = vpack.c.bf16 %v2913_v39, %v2909_v38 }
 0x8fe   :  { %6121 = vpow2.f32 %v4801_v58 }
 0x906   :  { %v6118_v16 = vpop.eup %6117 }
 0x907   :  { %2934 = vrot.lane.b32.xlu0 %v6118_v16, %s6246_s29  ;;  %v6120_v59 = vpop.eup %6119 }
 0x908   :  { %v2926_v57 = vadd.f32 1.0, %v6120_v59  ;;  %v6122_v60 = vpop.eup %6121 }
 0x909   :  { %v2927_v63 = vadd.f32 1.0, %v6122_v60 }
 0x90a   :  { %6123 = vrcp.f32 %v2926_v57 }
 0x90b   :  { %6125 = vrcp.f32 %v2927_v63 }
 0x914   :  { %v6124_v2 = vpop.eup %6123 }
 0x915   :  { %v6126_v19 = vpop.eup %6125 }
 0x979   :  { %v2935_v3 = vpop.permute.xlu0 %2934 }
 0x97a   :  { %v2937_v22 = vmul.f32 %v6124_v2, %v2935_v3 }
 0x97c   :  { %6127 = vtanh.f32 %v2937_v22  ;;  %v3119_v10 = vrot.slane %v2937_v22, 4 }
 0x97e   :  { %3120 = vrot.lane.b32.xlu1 %v3119_v10, %s6246_s29 }
 0x986   :  { %v6128_v20 = vpop.eup %6127 }
 0x987   :  { %v7672_v23 = vmul.f32 %v6128_v20, %v6126_v19 }
 0x989   :  { %4802 = vmatmul.mubr.msk.f32.vlgmr.msra.gmra.mrb[34].mxu0 %vm1491_vm7, %v7672_v23  ;;  %2940 = vst.msk [vmem:[#allocation4] sm:$0x3] %vm1589_vm6, %v7672_v23 }
 0x98a   :  { %5753 = vmatpush1.bf16.msra.mxu0 %v7670_v25  ;;  %3086 = vmatprep.mubr.f32.mxu0 %v6245_v6 }
 0x98b   :  { %5755 = vmatprep.subr.bf16.mxu0 %v7674_v24 }
 0x98e   :  { %5757 = vmatpush1.bf16.msra.mxu0 %v7693_v32 }
 0x98f   :  { %5759 = vmatprep.subr.bf16.mxu0 %v7697_v37 }
 0x992   :  { %5761 = vmatpush1.bf16.msra.mxu0 %v7712_v35 }
 0x993   :  { %5763 = vmatprep.subr.bf16.mxu0 %v7715_v36 }
 0x996   :  { %5765 = vmatpush1.bf16.msra.mxu0 %v7724_v40 }
 0x997   :  { %5767 = vmatprep.subr.bf16.mxu0 %v7566_v62 }
 0x999   :  { %4803 = vmatmul.mubr.msk.f32.vlgmr.msra.gmra.mrb[36].mxu0 %vm1491_vm7, %v7672_v23 }
 0x99a   :  { %5769 = vmatpush1.bf16.msra.mxu0 %v7571_v0  ;;  %3217 = vmatprep.mubr.f32.mxu0 %v6245_v6 }
 0x99b   :  { %5771 = vmatprep.subr.bf16.mxu0 %v7596_v42 }
 0x99e   :  { %5773 = vmatpush1.bf16.msra.mxu0 %v7601_v1 }
 0x99f   :  { %5775 = vmatprep.subr.bf16.mxu0 %v7613_v26 }
 0x9a2   :  { %5777 = vmatpush1.bf16.msra.mxu0 %v7626_v21 }
 0x9a3   :  { %5779 = vmatprep.subr.bf16.mxu0 %v7630_v51 }
 0x9a6   :  { %5781 = vmatpush1.bf16.msra.mxu0 %v7646_v55 }
 0x9a7   :  { %5783 = vmatprep.subr.bf16.mxu0 %v7650_v11 }
 0x9f0   :  { %v3121_v54 = vpop.permute.xlu1 %3120 }
 0xa5c   :  { %v3017_v62 = vpop.f32.mrb[34].mxu0 }
 0xa5d   :  { %v3019_v49 = vpop.f32.mrb[35].mxu0 }
 0xa6c   :  { %v3088_v0 = vpop.f32.mrb[36].mxu0 }
 0xa6d   :  { %v3095_v61 = vsel %vm2917_vm14, %v3017_v62, %v3088_v0  ;;  %v3090_v42 = vpop.f32.mrb[37].mxu0 }
 0xa6e   :  { %v3096_v43 = vsel %vm2917_vm14, %v3019_v49, %v3090_v42  ;;  %v3099_v26 = vrot.slane %v3095_v61, 4 }
 0xa6f   :  { %v3100_v1 = vrot.slane %v3096_v43, 4 }
 0xa70   :  { %v3103_v14 = vadd.f32 %v3099_v26, %v2947_v48 }
 0xa71   :  { %v3104_v45 = vadd.f32 %v3100_v1, %v2948_v44 }
 0xa72   :  { %v4804_v50 = vmul.f32 -1.442695, %v3103_v14 }
 0xa73   :  { %6129 = vtanh.f32 %v3104_v45  ;;  %v4805_v58 = vmul.f32 -1.442695, %v3104_v45 }
 0xa74   :  { %6131 = vpow2.f32 %v4804_v50  ;;  %v3338_v50 = vld [vmem:[#allocation3 + $0x10] sm:$0xf0] }
 0xa7d   :  { %v6130_v46 = vpop.eup %6129 }
 0xa7e   :  { %3125 = vrot.lane.b32.xlu0 %v6130_v46, %s6246_s29  ;;  %v6132_v21 = vpop.eup %6131  ;;  %v3339_v46 = vld [vmem:[#allocation3 + $0x18] sm:$0xf0] }
 0xa7f   :  { %v3111_v51 = vadd.f32 1.0, %v6132_v21 }
 0xa81   :  { %6133 = vrcp.f32 %v3111_v51 }
 0xa8b   :  { %v6134_v28 = vpop.eup %6133 }
 0xa8c   :  { %v3123_v55 = vmul.f32 %v6134_v28, %v3121_v54 }
 0xaf0   :  { %v3126_v29 = vpop.permute.xlu0 %3125 }
 0xaf1   :  { %v3128_v52 = vmul.f32 %v6134_v28, %v3126_v29 }
 0xaf3   :  { %3130 = vrot.lane.b32.xlu1 %v3128_v52, %s6246_s29 }
 0xb65   :  { %v3131_v16 = vpop.permute.xlu1 %3130 }
 0xb66   :  { %v3133_v47 = vadd.f32 %v3131_v16, %v3123_v55 }
 0xb68   :  { %6135 = vtanh.f32 %v3133_v47  ;;  %v3313_v33 = vrot.slane %v3133_v47, 4 }
 0xb69   :  { %6137 = vpow2.f32 %v4805_v58 }
 0xb72   :  { %v6136_v56 = vpop.eup %6135 }
 0xb73   :  { %3136 = vrot.lane.b32.xlu0 %v6136_v56, %s6246_s29  ;;  %v6138_v59 = vpop.eup %6137 }
 0xb74   :  { %v3112_v57 = vadd.f32 1.0, %v6138_v59 }
 0xb76   :  { %6139 = vrcp.f32 %v3112_v57  ;;  %v3535_v57 = vld [vmem:[%s8258_s10 + $0x8] sm:$0xff] }
 0xb80   :  { %v6140_v60 = vpop.eup %6139 }
 0xbe5   :  { %v3137_v63 = vpop.permute.xlu0 %3136 }
 0xbe6   :  { %v7748_v2 = vmul.f32 %v6140_v60, %v3137_v63  ;;  %v3537_v60 = vld [vmem:[%s8258_s10 + $0x18] sm:$0xff] }
 0xbe8   :  { %v3150_v3 = vrot.slane %v7748_v2, 4  ;;  %3141 = vst.msk [vmem:[#allocation4 - $0x2] sm:$0x30] %vm3140_vm15, %v7748_v2 }
 0xbea   :  { %4806 = vmatmul.mubr.msk.f32.vlgmr.msra.gmra.mrb[38].mxu0 %vm1491_vm7, %v3150_v3 }
 0xbeb   :  { %5785 = vmatpush1.bf16.msra.mxu0 %v7670_v25  ;;  %3288 = vmatprep.mubr.f32.mxu0 %v6245_v6 }
 0xbec   :  { %5787 = vmatprep.subr.bf16.mxu0 %v7674_v24 }
 0xbef   :  { %5789 = vmatpush1.bf16.msra.mxu0 %v7693_v32 }
 0xbf0   :  { %5791 = vmatprep.subr.bf16.mxu0 %v7697_v37 }
 0xbf3   :  { %5793 = vmatpush1.bf16.msra.mxu0 %v7712_v35 }
 0xbf4   :  { %5795 = vmatprep.subr.bf16.mxu0 %v7715_v36 }
 0xbf7   :  { %5797 = vmatpush1.bf16.msra.mxu0 %v7724_v40 }
 0xbf8   :  { %5815 = vmatprep.subr.bf16.mxu0 %v7650_v11 }
 0xbfa   :  { %4807 = vmatmul.mubr.msk.f32.vlgmr.msra.gmra.mrb[40].mxu0 %vm1491_vm7, %v3150_v3  ;;  %v3541_v3 = vld [vmem:[%s8258_s10 + $0x38] sm:$0xff] }
 0xbfb   :  { %5817 = vmatpush1.bf16.msra.mxu0 %v7670_v25  ;;  %3477 = vmatprep.mubr.f32.mxu0 %v6245_v6  ;;  %v3148_v25 = vld [vmem:[#allocation3 + $0x10] sm:$0xf] }
 0xbfc   :  { %5819 = vmatprep.subr.bf16.mxu0 %v7674_v24 }
 0xbff   :  { %5821 = vmatpush1.bf16.msra.mxu0 %v7693_v32 }
 0xc00   :  { %5823 = vmatprep.subr.bf16.mxu0 %v7697_v37 }
 0xc03   :  { %5825 = vmatpush1.bf16.msra.mxu0 %v7712_v35 }
 0xc04   :  { %5827 = vmatprep.subr.bf16.mxu0 %v7715_v36 }
 0xc07   :  { %5829 = vmatpush1.bf16.msra.mxu0 %v7724_v40 }
 0xcbd   :  { %v3219_v22 = vpop.f32.mrb[38].mxu0 }
 0xcbe   :  { %v3221_v11 = vpop.f32.mrb[39].mxu0 }
 0xccd   :  { %v3290_v10 = vpop.f32.mrb[40].mxu0 }
 0xcce   :  { %v3295_v15 = vsel %vm2917_vm14, %v3219_v22, %v3290_v10  ;;  %v3292_v41 = vpop.f32.mrb[41].mxu0  ;;  %v3534_v22 = vld [vmem:[%s8258_s10] sm:$0xff] }
 0xccf   :  { %v3296_v5 = vsel %vm2917_vm14, %v3221_v11, %v3292_v41  ;;  %v3297_v24 = vadd.f32 %v3295_v15, %v3148_v25  ;;  %v3538_v11 = vld [vmem:[%s8258_s10 + $0x20] sm:$0xff]  ;;  %v5862_v15 = vpack.c.bf16 %v3541_v3, %v3537_v60  ;;  %v3547_v25 = vld [vmem:[%s8258_s10 + $0x68] sm:$0xff]  ;;  %v3568_v60 = vld [vmem:[%s8258_s10 + $0x110] sm:$0xff] }
 0xcd0   :  { %v3298_v19 = vadd.f32 %v3296_v5, %v3149_v17  ;;  %v5832_v41 = vpack.c.bf16 %v3538_v11, %v3534_v22  ;;  %v3536_v17 = vld [vmem:[%s8258_s10 + $0x10] sm:$0xff]  ;;  %v3575_v3 = vld [vmem:[%s8258_s10 + $0x148] sm:$0xff]  ;;  %v3577_v11 = vld [vmem:[%s8258_s10 + $0x158] sm:$0xff] }
 0xcd1   :  { %v4808_v27 = vmul.f32 -1.442695, %v3297_v24  ;;  %v3540_v5 = vld [vmem:[%s8258_s10 + $0x30] sm:$0xff]  ;;  %v3545_v24 = vld [vmem:[%s8258_s10 + $0x58] sm:$0xff]  ;;  %5863 = vmatprep.subr.bf16.mxu0 %v5862_v15  ;;  %v3579_v22 = vld [vmem:[%s8258_s10 + $0x168] sm:$0xff] }
 0xcd2   :  { %6141 = vtanh.f32 %v3298_v19  ;;  %v4809_v36 = vmul.f32 -1.442695, %v3298_v19  ;;  %v3543_v19 = vld [vmem:[%s8258_s10 + $0x48] sm:$0xff] }
 0xcd3   :  { %6143 = vpow2.f32 %v4808_v27  ;;  %v3549_v27 = vld [vmem:[%s8258_s10 + $0x78] sm:$0xff] }
 0xcdc   :  { %v6142_v20 = vpop.eup %6141 }
 0xcdd   :  { %3317 = vrot.lane.b32.xlu1 %v6142_v20, %s6246_s29  ;;  %v6144_v13 = vpop.eup %6143  ;;  %v5864_v20 = vpack.c.bf16 %v3540_v5, %v3536_v17  ;;  %v5850_v17 = vpack.c.bf16 %v3579_v22, %v3575_v3  ;;  %v3574_v5 = vld [vmem:[%s8258_s10 + $0x140] sm:$0xff] }
 0xcde   :  { %v3305_v30 = vadd.f32 1.0, %v6144_v13  ;;  %v5834_v13 = vpack.c.bf16 %v3547_v25, %v3543_v19  ;;  %v3578_v19 = vld [vmem:[%s8258_s10 + $0x160] sm:$0xff]  ;;  %v3576_v25 = vld [vmem:[%s8258_s10 + $0x150] sm:$0xff] }
 0xce0   :  { %6145 = vrcp.f32 %v3305_v30  ;;  %v5866_v30 = vpack.c.bf16 %v3549_v27, %v3545_v24  ;;  %v3580_v24 = vld [vmem:[%s8258_s10 + $0x170] sm:$0xff]  ;;  %v5852_v27 = vpack.c.bf16 %v3578_v19, %v3574_v5 }
 0xcea   :  { %v6146_v31 = vpop.eup %6145 }
 0xceb   :  { %v3315_v34 = vmul.f32 %v6146_v31, %v3313_v33 }
 0xd4f   :  { %v3318_v32 = vpop.permute.xlu1 %3317 }
 0xd50   :  { %v3320_v37 = vmul.f32 %v6146_v31, %v3318_v32  ;;  %v3542_v31 = vld [vmem:[%s8258_s10 + $0x40] sm:$0xff] }
 0xd51   :  { %v3546_v32 = vld [vmem:[%s8258_s10 + $0x60] sm:$0xff] }
 0xd52   :  { %3322 = vrot.lane.b32.xlu0 %v3320_v37, %s6246_s29  ;;  %v3544_v37 = vld [vmem:[%s8258_s10 + $0x50] sm:$0xff]  ;;  %v5836_v33 = vpack.c.bf16 %v3546_v32, %v3542_v31 }
 0xdc4   :  { %v3323_v18 = vpop.permute.xlu0 %3322 }
 0xdc5   :  { %v3325_v9 = vadd.f32 %v3323_v18, %v3315_v34  ;;  %v3548_v34 = vld [vmem:[%s8258_s10 + $0x70] sm:$0xff]  ;;  %v3551_v18 = vld [vmem:[%s8258_s10 + $0x88] sm:$0xff] }
 0xdc7   :  { %6147 = vtanh.f32 %v3325_v9  ;;  %v3508_v16 = vrot.slane %v3325_v9, 4  ;;  %v3555_v9 = vld [vmem:[%s8258_s10 + $0xa8] sm:$0xff] }
 0xdc8   :  { %6149 = vpow2.f32 %v4809_v36  ;;  %v5838_v36 = vpack.c.bf16 %v3555_v9, %v3551_v18  ;;  %v3582_v9 = vld [vmem:[%s8258_s10 + $0x180] sm:$0xff] }
 0xdd1   :  { %v6148_v35 = vpop.eup %6147 }
 0xdd2   :  { %3328 = vrot.lane.b32.xlu1 %v6148_v35, %s6246_s29  ;;  %v6150_v38 = vpop.eup %6149  ;;  %v5868_v35 = vpack.c.bf16 %v3548_v34, %v3544_v37  ;;  %v3583_v37 = vld [vmem:[%s8258_s10 + $0x188] sm:$0xff]  ;;  %v3585_v34 = vld [vmem:[%s8258_s10 + $0x198] sm:$0xff] }
 0xdd3   :  { %v3306_v39 = vadd.f32 1.0, %v6150_v38  ;;  %v3553_v38 = vld [vmem:[%s8258_s10 + $0x98] sm:$0xff] }
 0xdd5   :  { %6151 = vrcp.f32 %v3306_v39  ;;  %v3557_v39 = vld [vmem:[%s8258_s10 + $0xb8] sm:$0xff] }
 0xddf   :  { %v6152_v40 = vpop.eup %6151 }
 0xe44   :  { %v3329_v62 = vpop.permute.xlu1 %3328 }
 0xe45   :  { %v7779_v49 = vmul.f32 %v6152_v40, %v3329_v62  ;;  %v3550_v40 = vld [vmem:[%s8258_s10 + $0x80] sm:$0xff] }
 0xe47   :  { %4810 = vmatmul.mubr.msk.f32.vlgmr.msra.gmra.mrb[34].mxu1 %vm1491_vm7, %v7779_v49  ;;  %4811 = vmatmul.mubr.msk.f32.vlgmr.msra.gmra.mrb[42].mxu0 %vm1491_vm7, %v7779_v49 }
 0xe48   :  { %3662 = vmatprep.mubr.f32.mxu1 %v6245_v6  ;;  %3733 = vmatprep.mubr.f32.mxu0 %v6245_v6 }
 0xe49   :  { %5865 = vmatpush1.bf16.msra.mxu0 %v5864_v20 }
 0xe4a   :  { %5867 = vmatprep.subr.bf16.mxu0 %v5866_v30 }
 0xe4d   :  { %5869 = vmatpush1.bf16.msra.mxu0 %v5868_v35  ;;  %v3586_v35 = vld [vmem:[%s8258_s10 + $0x1a0] sm:$0xff] }
 0xf1a   :  { %v3408_v0 = vpop.f32.mrb[34].mxu1  ;;  %v3479_v61 = vpop.f32.mrb[42].mxu0 }
 0xf1b   :  { %v3484_v42 = vsel %vm2917_vm14, %v3408_v0, %v3479_v61  ;;  %v3410_v43 = vpop.f32.mrb[35].mxu1  ;;  %v3481_v1 = vpop.f32.mrb[43].mxu0  ;;  %v5870_v0 = vpack.c.bf16 %v3557_v39, %v3553_v38  ;;  %v3554_v61 = vld [vmem:[%s8258_s10 + $0xa0] sm:$0xff]  ;;  %v5856_v38 = vpack.c.bf16 %v3586_v35, %v3582_v9  ;;  %v3584_v39 = vld [vmem:[%s8258_s10 + $0x190] sm:$0xff]  ;;  %v3814_v35 = vld [vmem:[%s8259_s11 + $0x68] sm:$0xff] }
 0xf1c   :  { %v3485_v44 = vsel %vm2917_vm14, %v3410_v43, %v3481_v1  ;;  %v3488_v14 = vrot.slane %v3484_v42, 4  ;;  %v3552_v42 = vld [vmem:[%s8258_s10 + $0x90] sm:$0xff]  ;;  %v5840_v1 = vpack.c.bf16 %v3554_v61, %v3550_v40  ;;  %v3595_v61 = vld [vmem:[%s8258_s10 + $0x1e8] sm:$0xff] }
 0xf1d   :  { %v3489_v45 = vrot.slane %v3485_v44, 4  ;;  %v3556_v43 = vld [vmem:[%s8258_s10 + $0xb0] sm:$0xff]  ;;  %v3559_v44 = vld [vmem:[%s8258_s10 + $0xc8] sm:$0xff]  ;;  %5871 = vmatprep.subr.bf16.mxu0 %v5870_v0 }
 0xf1e   :  { %v3492_v21 = vadd.f32 %v3488_v14, %v3338_v50  ;;  %v3565_v50 = vld [vmem:[%s8258_s10 + $0xf8] sm:$0xff]  ;;  %v3588_v40 = vld [vmem:[%s8258_s10 + $0x1b0] sm:$0xff] }
 0xf1f   :  { %v7791_v26 = vadd.f32 %v3489_v45, %v3339_v46  ;;  %v3563_v45 = vld [vmem:[%s8258_s10 + $0xe8] sm:$0xff]  ;;  %v3561_v46 = vld [vmem:[%s8258_s10 + $0xd8] sm:$0xff]  ;;  %v5888_v0 = vpack.c.bf16 %v3588_v40, %v3584_v39  ;;  %v3811_v9 = vld [vmem:[%s8259_s11 + $0x50] sm:$0xff] }
 0xf20   :  { %v4812_v51 = vmul.f32 -1.442695, %v3492_v21  ;;  %v5842_v14 = vpack.c.bf16 %v3563_v45, %v3559_v44  ;;  %v3558_v21 = vld [vmem:[%s8258_s10 + $0xc0] sm:$0xff] }
 0xf21   :  { %6153 = vtanh.f32 %v7791_v26  ;;  %v4813_v30 = vmul.f32 -1.442695, %v7791_v26  ;;  %v3589_v26 = vld [vmem:[%s8258_s10 + $0x1b8] sm:$0xff]  ;;  %v3590_v45 = vld [vmem:[%s8258_s10 + $0x1c0] sm:$0xff] }
 0xf22   :  { %6155 = vpow2.f32 %v4812_v51  ;;  %v3562_v51 = vld [vmem:[%s8258_s10 + $0xe0] sm:$0xff] }
 0xf23   :  { %v3813_v40 = vld [vmem:[%s8259_s11 + $0x60] sm:$0xff] }
 0xf2b   :  { %v6154_v48 = vpop.eup %6153 }
 0xf2c   :  { %3512 = vrot.lane.b32.xlu0 %v6154_v48, %s6246_s29  ;;  %v6156_v28 = vpop.eup %6155  ;;  %v5872_v48 = vpack.c.bf16 %v3556_v43, %v3552_v42  ;;  %v3593_v42 = vld [vmem:[%s8258_s10 + $0x1d8] sm:$0xff] }
 0xf2d   :  { %v3500_v29 = vadd.f32 1.0, %v6156_v28  ;;  %v5874_v28 = vpack.c.bf16 %v3565_v50, %v3561_v46  ;;  %v3597_v43 = vld [vmem:[%s8258_s10 + $0x1f8] sm:$0xff]  ;;  %v3594_v46 = vld [vmem:[%s8258_s10 + $0x1e0] sm:$0xff]  ;;  %v3596_v50 = vld [vmem:[%s8258_s10 + $0x1f0] sm:$0xff] }
 0xf2e   :  { %5873 = vmatpush1.bf16.msra.mxu0 %v5872_v48  ;;  %v5890_v44 = vpack.c.bf16 %v3597_v43, %v3593_v42  ;;  %v3592_v48 = vld [vmem:[%s8258_s10 + $0x1d0] sm:$0xff] }
 0xf2f   :  { %6157 = vrcp.f32 %v3500_v29  ;;  %v3560_v29 = vld [vmem:[%s8258_s10 + $0xd0] sm:$0xff]  ;;  %5875 = vmatprep.subr.bf16.mxu0 %v5874_v28 }
 0xf39   :  { %v6158_v52 = vpop.eup %6157 }
 0xf3a   :  { %v3510_v47 = vmul.f32 %v6158_v52, %v3508_v16  ;;  %v3569_v16 = vld [vmem:[%s8258_s10 + $0x118] sm:$0xff] }
 0xf9e   :  { %v3513_v54 = vpop.permute.xlu0 %3512 }
 0xf9f   :  { %v3515_v55 = vmul.f32 %v6158_v52, %v3513_v54  ;;  %v3564_v52 = vld [vmem:[%s8258_s10 + $0xf0] sm:$0xff]  ;;  %v3567_v54 = vld [vmem:[%s8258_s10 + $0x108] sm:$0xff] }
 0xfa1   :  { %3517 = vrot.lane.b32.xlu1 %v3515_v55, %s6246_s29  ;;  %v3571_v55 = vld [vmem:[%s8258_s10 + $0x128] sm:$0xff] }
 0xfa5   :  { %2942 = vrot.lane.b32.xlu1 %v7672_v23, %s6246_s29  ;;  %v3539_v23 = vld [vmem:[%s8258_s10 + $0x28] sm:$0xff] }
 0xfa6   :  { %v5830_v63 = vpack.c.bf16 %v3539_v23, %v3535_v57  ;;  %v3566_v57 = vld [vmem:[%s8258_s10 + $0x100] sm:$0xff] }
 0xfa7   :  { %v3570_v23 = vld [vmem:[%s8258_s10 + $0x120] sm:$0xff] }
 0xfa8   :  { %5831 = vmatprep.subr.bf16.mxu1 %v5830_v63  ;;  %v3572_v63 = vld [vmem:[%s8258_s10 + $0x130] sm:$0xff]  ;;  %v5848_v15 = vpack.c.bf16 %v3570_v23, %v3566_v57 }
 0xfa9   :  { %3334 = vrot.lane.b32.xlu1 %v7779_v49, %s6246_s29  ;;  %5833 = vmatpush1.bf16.msra.mxu1 %v5832_v41  ;;  %v5880_v41 = vpack.c.bf16 %v3572_v63, %v3568_v60 }
 0xfaa   :  { %5835 = vmatprep.subr.bf16.mxu1 %v5834_v13  ;;  %v5884_v13 = vpack.c.bf16 %v3580_v24, %v3576_v25  ;;  %v3803_v25 = vld [vmem:[%s8259_s11 + $0x10] sm:$0xff]  ;;  %v3806_v24 = vld [vmem:[%s8259_s11 + $0x28] sm:$0xff] }
 0xfad   :  { %5837 = vmatpush1.bf16.msra.mxu1 %v5836_v33  ;;  %v3587_v33 = vld [vmem:[%s8258_s10 + $0x1a8] sm:$0xff] }
 0xfae   :  { %5839 = vmatprep.subr.bf16.mxu1 %v5838_v36  ;;  %v5854_v18 = vpack.c.bf16 %v3587_v33, %v3583_v37  ;;  %v5886_v36 = vpack.c.bf16 %v3589_v26, %v3585_v34  ;;  %v3810_v37 = vld [vmem:[%s8259_s11 + $0x48] sm:$0xff]  ;;  %v3812_v33 = vld [vmem:[%s8259_s11 + $0x58] sm:$0xff]  ;;  %v3809_v26 = vld [vmem:[%s8259_s11 + $0x40] sm:$0xff] }
 0xfb1   :  { %5841 = vmatpush1.bf16.msra.mxu1 %v5840_v1 }
 0xfb2   :  { %5843 = vmatprep.subr.bf16.mxu1 %v5842_v14  ;;  %v5860_v14 = vpack.c.bf16 %v3594_v46, %v3590_v45 }
0x1013   :  { %v3518_v56 = vpop.permute.xlu1 %3517 }
0x1014   :  { %v3520_v58 = vadd.f32 %v3518_v56, %v3510_v47  ;;  %v3573_v47 = vld [vmem:[%s8258_s10 + $0x138] sm:$0xff]  ;;  %v5844_v56 = vpack.c.bf16 %v3562_v51, %v3558_v21  ;;  %v5892_v21 = vpack.c.bf16 %v3596_v50, %v3592_v48 }
0x1016   :  { %6159 = vtanh.f32 %v3520_v58  ;;  %v5876_v58 = vpack.c.bf16 %v3564_v52, %v3560_v29  ;;  %5845 = vmatpush1.bf16.msra.mxu1 %v5844_v56 }
0x1017   :  { %v2943_v59 = vpop.permute.xlu1 %2942  ;;  %6161 = vpow2.f32 %v4813_v30  ;;  %v3805_v30 = vld [vmem:[%s8259_s11 + $0x20] sm:$0xff] }
0x1018   :  { %2946 = vst.msk [vmem:[#allocation4 + $0x4] sm:$0xc] %vm2945_vm0, %v2943_v59  ;;  %v5846_v59 = vpack.c.bf16 %v3571_v55, %v3567_v54  ;;  %5877 = vmatpush1.bf16.msra.mxu0 %v5876_v58  ;;  %v4814_v58 = vld [vmem:[%s8274_s30 + $0x1] ss:$2 sm:$0x3] }
0x1019   :  { %v3760_v57 = vrot.slane %v4814_v58, %v6489_v8  ;;  %v3764_v60 = vrot.slane %v4814_v58, %v6499_v12 }
0x101a   :  { %5847 = vmatprep.subr.bf16.mxu1 %v5846_v59 }
0x101b   :  { %v3335_v10 = vpop.permute.xlu1 %3334  ;;  %5849 = vmatpush1.bf16.msra.mxu1 %v5848_v15 }
0x101c   :  { %3337 = vst.msk [vmem:[#allocation4] sm:$0xc] %vm2945_vm0, %v3335_v10  ;;  %v3581_v10 = vld [vmem:[%s8258_s10 + $0x178] sm:$0xff]  ;;  %5851 = vmatprep.subr.bf16.mxu1 %v5850_v17 }
0x101d   :  { %v5882_v20 = vpack.c.bf16 %v3581_v10, %v3577_v11 }
0x101f   :  { %5853 = vmatpush1.bf16.msra.mxu1 %v5852_v27 }
0x1020   :  { %v6160_v62 = vpop.eup %6159  ;;  %5855 = vmatprep.subr.bf16.mxu1 %v5854_v18  ;;  %v5902_v18 = vpack.c.bf16 %v3812_v33, %v3810_v37  ;;  %v4177_v33 = vld [vmem:[%s8261_s13 + $0x50] sm:$0xff] }
0x1021   :  { %3523 = vrot.lane.b32.xlu0 %v6160_v62, %s6246_s29  ;;  %v6162_v31 = vpop.eup %6161  ;;  %v3591_v62 = vld [vmem:[%s8258_s10 + $0x1c8] sm:$0xff] }
0x1022   :  { %v3501_v32 = vadd.f32 1.0, %v6162_v31  ;;  %v5858_v1 = vpack.c.bf16 %v3595_v61, %v3591_v62  ;;  %v3807_v31 = vld [vmem:[%s8259_s11 + $0x30] sm:$0xff] }
0x1023   :  { %5857 = vmatpush1.bf16.msra.mxu1 %v5856_v38  ;;  %v5900_v34 = vpack.c.bf16 %v3807_v31, %v3805_v30  ;;  %v5904_v38 = vpack.c.bf16 %v3811_v9, %v3809_v26  ;;  %v3815_v62 = vld [vmem:[%s8259_s11 + $0x70] sm:$0xff]  ;;  %v4179_v26 = vld [vmem:[%s8261_s13 + $0x60] sm:$0xff]  ;;  %v4180_v9 = vld [vmem:[%s8261_s13 + $0x68] sm:$0xff] }
0x1024   :  { %6163 = vrcp.f32 %v3501_v32  ;;  %5859 = vmatprep.subr.bf16.mxu1 %v5858_v1  ;;  %v5908_v61 = vpack.c.bf16 %v3815_v62, %v3813_v40 }
0x1025   :  { %3143 = vrot.lane.b32.xlu0 %v7748_v2, %s6246_s29  ;;  %v5878_v2 = vpack.c.bf16 %v3573_v47, %v3569_v16  ;;  %v3802_v16 = vld [vmem:[%s8259_s11 + $0x8] sm:$0xff]  ;;  %v3804_v47 = vld [vmem:[%s8259_s11 + $0x18] sm:$0xff] }
0x1026   :  { %v5894_v56 = vpack.c.bf16 %v3804_v47, %v3802_v16 }
0x1027   :  { %5879 = vmatprep.subr.bf16.mxu0 %v5878_v2  ;;  %5861 = vmatpush1.bf16.msra.mxu1 %v5860_v14 }
0x1028   :  { %5881 = vmatpush1.bf16.msra.mxu0 %v5880_v41  ;;  %5895 = vmatprep.subr.bf16.mxu1 %v5894_v56 }
0x1029   :  { %5883 = vmatprep.subr.bf16.mxu0 %v5882_v20  ;;  %v3801_v20 = vld [vmem:[%s8259_s11] sm:$0xff] }
0x102a   :  { %v5896_v27 = vpack.c.bf16 %v3803_v25, %v3801_v20 }
0x102c   :  { %5885 = vmatpush1.bf16.msra.mxu0 %v5884_v13  ;;  %v3808_v13 = vld [vmem:[%s8259_s11 + $0x38] sm:$0xff] }
0x102d   :  { %5887 = vmatprep.subr.bf16.mxu0 %v5886_v36  ;;  %v5898_v32 = vpack.c.bf16 %v3808_v13, %v3806_v24  ;;  %v3816_v36 = vld [vmem:[%s8259_s11 + $0x78] sm:$0xff]  ;;  %v4175_v24 = vld [vmem:[%s8261_s13 + $0x40] sm:$0xff] }
0x102e   :  { %v6164_v51 = vpop.eup %6163  ;;  %v5906_v39 = vpack.c.bf16 %v3816_v36, %v3814_v35  ;;  %v5949_v35 = vpack.c.bf16 %v4180_v9, %v4179_v26  ;;  %v4181_v36 = vld [vmem:[%s8261_s13 + $0x70] sm:$0xff] }
0x1030   :  { %5889 = vmatpush1.bf16.msra.mxu0 %v5888_v0 }
0x1031   :  { %5891 = vmatprep.subr.bf16.mxu0 %v5890_v44 }
0x1034   :  { %5893 = vmatpush1.bf16.msra.mxu0 %v5892_v21 }
0x1035   :  { %5911 = vmatprep.subr.bf16.mxu0 %v5894_v56 }
0x1093   :  { %v3524_v28 = vpop.permute.xlu0 %3523 }
0x1094   :  { %v3526_v29 = vmul.f32 %v6164_v51, %v3524_v28 }
0x1096   :  { %3527 = vst.msk [vmem:[#allocation4 + $0x2] sm:$0x30] %vm3140_vm15, %v3526_v29  ;;  %3529 = vrot.lane.b32.xlu0 %v3526_v29, %s6246_s29 }
0x1097   :  { %v3144_v52 = vpop.permute.xlu0 %3143 }
0x1098   :  { %3147 = vst.msk [vmem:[#allocation4 - $0x2] sm:$0xc0] %vm3146_vm3, %v3144_v52 }
0x1099   :  { %3332 = vst.msk [vmem:[#allocation4 + $0x4] sm:$0x3] %vm1589_vm6, %v7779_v49  ;;  %v3740_v49 = vld [vmem:[%s8274_s30] ss:$2 sm:$0x3] }
0x109a   :  { %v3745_v59 = vrot.slane %v3740_v49, %v6489_v8  ;;  %v3749_v23 = vrot.slane %v3740_v49, %v6499_v12 }
0x1108   :  { %v3530_v54 = vpop.permute.xlu0 %3529 }
0x1109   :  { %3532 = vst.msk [vmem:[#allocation4 - $0x6] sm:$0xc0] %vm3146_vm3, %v3530_v54 }
0x1110   :  { %v3533_v55 = vld [vmem:[#allocation4] sm:$0xff] }
0x1111   :  { %3663 = vmatmul.mubr.f32.vlgmr.msra.gmra.mrb[36].mxu1 %v3533_v55  ;;  %3734 = vmatmul.mubr.f32.vlgmr.msra.gmra.mrb[44].mxu0 %v3533_v55 }
0x1112   :  { %3884 = vmatprep.mubr.f32.mxu1 %v6245_v6  ;;  %4002 = vmatprep.mubr.f32.mxu0 %v6245_v6 }
0x1113   :  { %5897 = vmatpush1.bf16.msra.mxu1 %v5896_v27  ;;  %5913 = vmatpush1.bf16.msra.mxu0 %v5896_v27 }
0x1114   :  { %5899 = vmatprep.subr.bf16.mxu1 %v5898_v32  ;;  %5915 = vmatprep.subr.bf16.mxu0 %v5898_v32 }
0x1117   :  { %5901 = vmatpush1.bf16.msra.mxu1 %v5900_v34  ;;  %5917 = vmatpush1.bf16.msra.mxu0 %v5900_v34 }
0x1118   :  { %5903 = vmatprep.subr.bf16.mxu1 %v5902_v18  ;;  %5919 = vmatprep.subr.bf16.mxu0 %v5902_v18 }
0x111b   :  { %5905 = vmatpush1.bf16.msra.mxu1 %v5904_v38  ;;  %5921 = vmatpush1.bf16.msra.mxu0 %v5904_v38 }
0x111c   :  { %5907 = vmatprep.subr.bf16.mxu1 %v5906_v39  ;;  %5923 = vmatprep.subr.bf16.mxu0 %v5906_v39 }
0x111f   :  { %5909 = vmatpush1.bf16.msra.mxu1 %v5908_v61  ;;  %5925 = vmatpush1.bf16.msra.mxu0 %v5908_v61 }
0x1120   :  { %5927 = vmatprep.subr.bf16.mxu1 %v5894_v56 }
0x11e4   :  { %v3664_v2 = vpop.f32.mrb[36].mxu1  ;;  %v3735_v63 = vpop.f32.mrb[44].mxu0 }
0x11e5   :  { %v8020_v3 = vadd.f32 %v3745_v59, %v3664_v2  ;;  %v3767_v22 = vadd.f32 %v3760_v57, %v3735_v63  ;;  %v3666_v11 = vpop.f32.mrb[37].mxu1  ;;  %v3737_v10 = vpop.f32.mrb[45].mxu0 }
0x11e6   :  { %v8022_v15 = vadd.f32 %v3749_v23, %v3666_v11  ;;  %v3768_v41 = vadd.f32 %v3764_v60, %v3737_v10 }
0x11e7   :  { %3769 = vst [vmem:[#allocation3] sm:$0x3] %v8020_v3  ;;  %v3773_v17 = vrot.slane %v3767_v22, 4 }
0x11e8   :  { %3770 = vst [vmem:[#allocation3 + $0x8] sm:$0x3] %v8022_v15  ;;  %v3774_v5 = vrot.slane %v3768_v41, 4 }
0x11e9   :  { %3777 = vst [vmem:[#allocation3] sm:$0xc] %v3773_v17  ;;  %v6247_v17 = vmov 0.0|0.0  }
0x11ea   :  { %3778 = vst [vmem:[#allocation3 + $0x8] sm:$0xc] %v3774_v5  ;;  %5942 = vmatprep.subr.bf16.mxu0 %v6247_v17 }
0x11f0   :  { %v3779_v42 = vld [vmem:[#allocation3] sm:$0xf] }
0x11f1   :  { %v3780_v19 = vld [vmem:[#allocation3 + $0x8] sm:$0xf]  ;;  %v4815_v43 = vmul.f32 -1.442695, %v3779_v42 }
0x11f2   :  { %6165 = vtanh.f32 %v3780_v19  ;;  %v4816_v1 = vmul.f32 -1.442695, %v3780_v19 }
0x11f3   :  { %6167 = vpow2.f32 %v4815_v43 }
0x11f4   :  { %6169 = vpow2.f32 %v4816_v1 }
0x11fc   :  { %v6166_v0 = vpop.eup %6165 }
0x11fd   :  { %3795 = vrot.lane.b32.xlu1 %v6166_v0, %s6246_s29  ;;  %v6168_v44 = vpop.eup %6167 }
0x11fe   :  { %v3787_v45 = vadd.f32 1.0, %v6168_v44  ;;  %v6170_v46 = vpop.eup %6169 }
0x11ff   :  { %v3788_v48 = vadd.f32 1.0, %v6170_v46 }
0x1200   :  { %6171 = vrcp.f32 %v3787_v45 }
0x1201   :  { %6173 = vrcp.f32 %v3788_v48 }
0x120a   :  { %v6172_v14 = vpop.eup %6171 }
0x120b   :  { %v6174_v28 = vpop.eup %6173 }
0x126f   :  { %v3796_v50 = vpop.permute.xlu1 %3795 }
0x1270   :  { %v3798_v21 = vmul.f32 %v6172_v14, %v3796_v50 }
0x1272   :  { %6175 = vtanh.f32 %v3798_v21  ;;  %v3913_v51 = vrot.slane %v3798_v21, 6 }
0x1274   :  { %3914 = vrot.lane.b32.xlu1 %v3913_v51, %s6246_s29 }
0x127c   :  { %v6176_v29 = vpop.eup %6175 }
0x127d   :  { %v8070_v52 = vmul.f32 %v6176_v29, %v6174_v28 }
0x127f   :  { %4817 = vmatmul.mubr.msk.f32.vlgmr.msra.gmra.mrb[38].mxu1 %vm1491_vm7, %v8070_v52  ;;  %v4183_v40 = vrot.slane %v8070_v52, 2 }
0x1280   :  { %5929 = vmatpush1.bf16.msra.mxu1 %v5896_v27  ;;  %4118 = vmatprep.mubr.f32.mxu1 %v6245_v6  ;;  %v4176_v27 = vld [vmem:[%s8261_s13 + $0x48] sm:$0xff] }
0x1281   :  { %5931 = vmatprep.subr.bf16.mxu1 %v5898_v32  ;;  %v5943_v32 = vpack.c.bf16 %v4176_v27, %v4175_v24 }
0x1284   :  { %5933 = vmatpush1.bf16.msra.mxu1 %v5900_v34  ;;  %v4178_v34 = vld [vmem:[%s8261_s13 + $0x58] sm:$0xff] }
0x1285   :  { %5935 = vmatprep.subr.bf16.mxu1 %v5902_v18  ;;  %v5946_v18 = vpack.c.bf16 %v4178_v34, %v4177_v33  ;;  %v4172_v33 = vld [vmem:[%s8261_s13 + $0x28] sm:$0xff] }
0x1288   :  { %5937 = vmatpush1.bf16.msra.mxu1 %v5904_v38  ;;  %v4182_v38 = vld [vmem:[%s8261_s13 + $0x78] sm:$0xff] }
0x1289   :  { %5939 = vmatprep.subr.bf16.mxu1 %v5906_v39  ;;  %v5952_v39 = vpack.c.bf16 %v4182_v38, %v4181_v36  ;;  %v4173_v36 = vld [vmem:[%s8261_s13 + $0x30] sm:$0xff]  ;;  %v4174_v38 = vld [vmem:[%s8261_s13 + $0x38] sm:$0xff] }
0x128c   :  { %5941 = vmatpush1.bf16.msra.mxu1 %v5908_v61 }
0x128d   :  { %5954 = vmatprep.subr.bf16.mxu1 %v6247_v17 }
0x12e6   :  { %v3915_v22 = vpop.permute.xlu1 %3914 }
0x1352   :  { %v3886_v54 = vpop.f32.mrb[38].mxu1 }
0x1353   :  { %v3888_v55 = vpop.f32.mrb[39].mxu1  ;;  %v3893_v49 = vrot.slane %v3886_v54, 6 }
0x1354   :  { %v3894_v16 = vrot.slane %v3888_v55, 6 }
0x1355   :  { %v3897_v58 = vadd.f32 %v3893_v49, %v8020_v3 }
0x1356   :  { %v3898_v47 = vadd.f32 %v3894_v16, %v8022_v15 }
0x1357   :  { %v4818_v59 = vmul.f32 -1.442695, %v3897_v58 }
0x1358   :  { %6177 = vtanh.f32 %v3898_v47  ;;  %v4819_v19 = vmul.f32 -1.442695, %v3898_v47 }
0x1359   :  { %6179 = vpow2.f32 %v4818_v59 }
0x1362   :  { %v6178_v56 = vpop.eup %6177 }
0x1363   :  { %3919 = vrot.lane.b32.xlu0 %v6178_v56, %s6246_s29  ;;  %v6180_v57 = vpop.eup %6179 }
0x1364   :  { %v3905_v23 = vadd.f32 1.0, %v6180_v57 }
0x1366   :  { %6181 = vrcp.f32 %v3905_v23 }
0x1370   :  { %v6182_v60 = vpop.eup %6181 }
0x1371   :  { %v3917_v11 = vmul.f32 %v6182_v60, %v3915_v22 }
0x13d5   :  { %v3920_v2 = vpop.permute.xlu0 %3919 }
0x13d6   :  { %v3922_v63 = vmul.f32 %v6182_v60, %v3920_v2 }
0x13d8   :  { %3924 = vrot.lane.b32.xlu0 %v3922_v63, %s6246_s29 }
0x144a   :  { %v3925_v10 = vpop.permute.xlu0 %3924 }
0x144b   :  { %v8079_v41 = vadd.f32 %v3925_v10, %v3917_v11 }
0x144d   :  { %6183 = vtanh.f32 %v8079_v41  ;;  %v4031_v29 = vrot.slane %v8079_v41, 6 }
0x144e   :  { %6185 = vpow2.f32 %v4819_v19 }
0x1457   :  { %v6184_v5 = vpop.eup %6183 }
0x1458   :  { %3930 = vrot.lane.b32.xlu1 %v6184_v5, %s6246_s29  ;;  %v6186_v20 = vpop.eup %6185 }
0x1459   :  { %v3906_v25 = vadd.f32 1.0, %v6186_v20 }
0x145b   :  { %6187 = vrcp.f32 %v3906_v25 }
0x1465   :  { %v6188_v13 = vpop.eup %6187 }
0x14ca   :  { %v3931_v30 = vpop.permute.xlu1 %3930 }
0x14cb   :  { %v3933_v31 = vmul.f32 %v6188_v13, %v3931_v30  ;;  %v4168_v13 = vld [vmem:[%s8261_s13 + $0x8] sm:$0xff] }
0x14cd   :  { %v3935_v37 = vrot.slane %v3933_v31, 2  ;;  %v4170_v31 = vld [vmem:[%s8261_s13 + $0x18] sm:$0xff] }
0x14cf   :  { %4820 = vmatmul.mubr.msk.f32.vlgmr.msra.gmra.mrb[46].mxu0 %vm1491_vm7, %v3935_v37  ;;  %v4171_v37 = vld [vmem:[%s8261_s13 + $0x20] sm:$0xff] }
0x14d0   :  { %5944 = vmatpush3.bf16.msra.mxu0 %v5943_v32  ;;  %5326 = vmatprep.mubr.msk.f32.mxu0 %vm6248_vm4, %v6245_v6  ;;  %v5961_v34 = vpack.c.bf16 %v4172_v33, %v4171_v37 }
0x14d1   :  { %5945 = vmatprep.subr.bf16.mxu0 %v6247_v17 }
0x14d4   :  { %5947 = vmatpush3.bf16.msra.mxu0 %v5946_v18 }
0x14d5   :  { %5948 = vmatprep.subr.bf16.mxu0 %v6247_v17 }
0x14d8   :  { %5950 = vmatpush3.bf16.msra.mxu0 %v5949_v35 }
0x14d9   :  { %5951 = vmatprep.subr.bf16.mxu0 %v6247_v17 }
0x14dc   :  { %5953 = vmatpush3.bf16.msra.mxu0 %v5952_v39  ;;  %v5964_v39 = vpack.c.bf16 %v4174_v38, %v4173_v36  ;;  %v4483_v38 = vld [vmem:[%s8263_s15 + $0x18] sm:$0xff] }
0x14dd   :  { %5966 = vmatprep.subr.bf16.mxu0 %v6247_v17 }
0x14df   :  { %5327 = vmatmul.mubr.msk.f32.vlgmr.msra.gmra.mrb[48].mxu0 %vm1491_vm7, %v4183_v40 }
0x14e0   :  { %5364 = vmatprep.mubr.msk.f32.mxu0 %vm6248_vm4, %v6245_v6 }
0x15a2   :  { %v4004_v62 = vpop.f32.mrb[46].mxu0 }
0x15a3   :  { %v4006_v0 = vpop.f32.mrb[47].mxu0  ;;  %v4011_v45 = vrot.slane %v4004_v62, 4 }
0x15a4   :  { %v4012_v61 = vrot.slane %v4006_v0, 4 }
0x15a5   :  { %v4015_v46 = vadd.f32 %v4011_v45, %v8020_v3 }
0x15a6   :  { %v4016_v42 = vadd.f32 %v4012_v61, %v8022_v15 }
0x15a7   :  { %v4821_v48 = vmul.f32 -1.442695, %v4015_v46  ;;  %v8170_v46 = vld [vmem:[%s8264_s16] sm:$0x7f] }
0x15a8   :  { %6189 = vtanh.f32 %v4016_v42  ;;  %v4822_v47 = vmul.f32 -1.442695, %v4016_v42 }
0x15a9   :  { %6191 = vpow2.f32 %v4821_v48  ;;  %v4333_v48 = vrot.slane %v8170_v46, %v6489_v8  ;;  %v4366_v8 = vld [vmem:[%s8262_s14 + $0x8] sm:$0xff] }
0x15b2   :  { %v6190_v43 = vpop.eup %6189  ;;  %v8121_v1 = vpop.f32.mrb[48].mxu0 }
0x15b3   :  { %v5328_v44 = vpop.f32.mrb[49].mxu0  ;;  %4035 = vrot.lane.b32.xlu0 %v6190_v43, %s6246_s29  ;;  %v6192_v14 = vpop.eup %6191 }
0x15b4   :  { %v4023_v50 = vadd.f32 1.0, %v6192_v14 }
0x15b6   :  { %6193 = vrcp.f32 %v4023_v50 }
0x15c0   :  { %v6194_v21 = vpop.eup %6193 }
0x15c1   :  { %v4033_v52 = vmul.f32 %v6194_v21, %v4031_v29 }
0x1625   :  { %v4036_v51 = vpop.permute.xlu0 %4035 }
0x1626   :  { %v4038_v28 = vmul.f32 %v6194_v21, %v4036_v51 }
0x1628   :  { %4040 = vrot.lane.b32.xlu1 %v4038_v28, %s6246_s29 }
0x169a   :  { %v4041_v54 = vpop.permute.xlu1 %4040 }
0x169b   :  { %v4043_v55 = vadd.f32 %v4041_v54, %v4033_v52 }
0x169d   :  { %6195 = vtanh.f32 %v4043_v55  ;;  %v4147_v18 = vrot.slane %v4043_v55, 6 }
0x169e   :  { %6197 = vpow2.f32 %v4822_v47 }
0x16a7   :  { %v6196_v16 = vpop.eup %6195 }
0x16a8   :  { %4046 = vrot.lane.b32.xlu0 %v6196_v16, %s6246_s29  ;;  %v6198_v56 = vpop.eup %6197  ;;  %v4365_v16 = vld [vmem:[%s8262_s14] sm:$0xff] }
0x16a9   :  { %v4024_v49 = vadd.f32 1.0, %v6198_v56  ;;  %v5967_v47 = vpack.c.bf16 %v4366_v8, %v4365_v16  ;;  %v4368_v56 = vld [vmem:[%s8262_s14 + $0x18] sm:$0xff] }
0x16ab   :  { %6199 = vrcp.f32 %v4024_v49  ;;  %5968 = vmatpush3.bf16.msra.mxu0 %v5967_v47 }
0x16ac   :  { %5969 = vmatprep.subr.bf16.mxu0 %v6247_v17 }
0x16b5   :  { %v6200_v58 = vpop.eup %6199 }
0x171a   :  { %v4047_v59 = vpop.permute.xlu0 %4046 }
0x171b   :  { %v4049_v57 = vmul.f32 %v6200_v58, %v4047_v59  ;;  %v4369_v58 = vld [vmem:[%s8262_s14 + $0x20] sm:$0xff]  ;;  %v4370_v59 = vld [vmem:[%s8262_s14 + $0x28] sm:$0xff] }
0x171d   :  { %v4051_v23 = vrot.slane %v4049_v57, 4  ;;  %v5973_v57 = vpack.c.bf16 %v4370_v59, %v4369_v58 }
0x171f   :  { %4823 = vmatmul.mubr.msk.f32.vlgmr.msra.gmra.mrb[40].mxu1 %vm1491_vm7, %v4051_v23  ;;  %v4371_v23 = vld [vmem:[%s8262_s14 + $0x30] sm:$0xff] }
0x1720   :  { %5345 = vmatprep.mubr.msk.f32.mxu1 %vm6248_vm4, %v6245_v6 }
0x17f2   :  { %v4120_v60 = vpop.f32.mrb[40].mxu1 }
0x17f3   :  { %v4122_v2 = vpop.f32.mrb[41].mxu1  ;;  %v4127_v10 = vrot.slane %v4120_v60, 2  ;;  %v4372_v60 = vld [vmem:[%s8262_s14 + $0x38] sm:$0xff] }
0x17f4   :  { %v4128_v63 = vrot.slane %v4122_v2, 2  ;;  %v5976_v2 = vpack.c.bf16 %v4372_v60, %v4371_v23 }
0x17f5   :  { %v4131_v41 = vadd.f32 %v4127_v10, %v8020_v3  ;;  %v4169_v3 = vld [vmem:[%s8261_s13 + $0x10] sm:$0xff]  ;;  %v4352_v10 = vrot.slane %v8170_v46, %v6499_v12  ;;  %v4376_v12 = vrot.slane %v8170_v46, %v2423_v53  ;;  %v4481_v53 = vld [vmem:[%s8263_s15 + $0x8] sm:$0xff] }
0x17f6   :  { %v4132_v22 = vadd.f32 %v4128_v63, %v8022_v15  ;;  %v4167_v15 = vld [vmem:[%s8261_s13] sm:$0xff]  ;;  %v5958_v32 = vpack.c.bf16 %v4170_v31, %v4169_v3 }
0x17f7   :  { %v4824_v5 = vmul.f32 -1.442695, %v4131_v41  ;;  %v5955_v30 = vpack.c.bf16 %v4168_v13, %v4167_v15 }
0x17f8   :  { %6201 = vtanh.f32 %v4132_v22  ;;  %v4825_v62 = vmul.f32 -1.442695, %v4132_v22 }
0x17f9   :  { %6203 = vpow2.f32 %v4824_v5  ;;  %5956 = vmatpush3.bf16.msra.mxu1 %v5955_v30  ;;  %v4357_v5 = vrot.slane %v8170_v46, %v2401_v7 }
0x17fa   :  { %5957 = vmatprep.subr.bf16.mxu1 %v6247_v17 }
0x17fd   :  { %5959 = vmatpush3.bf16.msra.mxu1 %v5958_v32 }
0x17fe   :  { %5960 = vmatprep.subr.bf16.mxu1 %v6247_v17 }
0x1801   :  { %5962 = vmatpush3.bf16.msra.mxu1 %v5961_v34 }
0x1802   :  { %v6202_v11 = vpop.eup %6201  ;;  %5963 = vmatprep.subr.bf16.mxu1 %v6247_v17 }
0x1803   :  { %4151 = vrot.lane.b32.xlu1 %v6202_v11, %s6246_s29  ;;  %v6204_v19 = vpop.eup %6203 }
0x1804   :  { %v4139_v20 = vadd.f32 1.0, %v6204_v19 }
0x1805   :  { %5965 = vmatpush3.bf16.msra.mxu1 %v5964_v39 }
0x1806   :  { %6205 = vrcp.f32 %v4139_v20  ;;  %5978 = vmatprep.subr.bf16.mxu1 %v6247_v17 }
0x1810   :  { %v6206_v25 = vpop.eup %6205 }
0x1811   :  { %v4149_v26 = vmul.f32 %v6206_v25, %v4147_v18 }
0x1875   :  { %v4152_v24 = vpop.permute.xlu1 %4151 }
0x1876   :  { %v4154_v27 = vmul.f32 %v6206_v25, %v4152_v24 }
0x1878   :  { %4156 = vrot.lane.b32.xlu0 %v4154_v27, %s6246_s29 }
0x18ea   :  { %v4157_v9 = vpop.permute.xlu0 %4156 }
0x18eb   :  { %v4159_v35 = vadd.f32 %v4157_v9, %v4149_v26  ;;  %v4480_v9 = vld [vmem:[%s8263_s15] sm:$0xff] }
0x18ec   :  { %v5979_v36 = vpack.c.bf16 %v4481_v53, %v4480_v9 }
0x18ed   :  { %6207 = vtanh.f32 %v4159_v35  ;;  %v4482_v35 = vld [vmem:[%s8263_s15 + $0x10] sm:$0xff]  ;;  %s6249_s15 = smov [#allocation5]  }
0x18ee   :  { %6209 = vpow2.f32 %v4825_v62  ;;  %v5982_v39 = vpack.c.bf16 %v4483_v38, %v4482_v35  ;;  %s4568_s4 = sshll.u32 %s6249_s15, 4  ;;  %s4569_s4 = int_to_ptr.vmem [resolvable:$true] %s4568_s4 }
0x18ef   :  { %s6221_s21 = scalar_lea.vmem %s4569_s4, 32  ;;  %p6226_p1 = scmp.lt.s32.totalorder %s4569_s4, %s4569_s4 }
0x18f0   :  { %p6222_p0 = scmp.ne.s32.totalorder %s4569_s4, %s6221_s21  ;;  %p6227_p2 = scmp.lt.s32.totalorder %s6221_s21, %s6221_s21 }
0x18f2   :  { %p6228_p3 = por %p6227_p2, %p6226_p1 }
0x18f4   :  { %p6229_p4 = pnand %p6228_p3, %p6222_p0 }
0x18f7   :  { %v6208_v40 = vpop.eup %6207 }
0x18f8   :  { %4162 = vrot.lane.b32.xlu1 %v6208_v40, %s6246_s29  ;;  %v6210_v0 = vpop.eup %6209 }
0x18f9   :  { %v4140_v61 = vadd.f32 1.0, %v6210_v0 }
0x18fb   :  { %6211 = vrcp.f32 %v4140_v61  ;;  %v4466_v61 = vsub.s32 4, %v6484_v4 }
0x1905   :  { %v6212_v42 = vpop.eup %6211 }
0x196a   :  { %v4163_v43 = vpop.permute.xlu1 %4162 }
0x196b   :  { %v4165_v44 = vmul.f32 %v6212_v42, %v4163_v43  ;;  %v4471_v42 = vsub.s32 5, %v6484_v4  ;;  %v4467_v43 = vrot.slane %v8170_v46, %v4466_v61 }
0x196d   :  { %v4257_v45 = vrot.slane %v4165_v44, 6 }
0x196f   :  { %5346 = vmatmul.mubr.msk.f32.vlgmr.msra.gmra.mrb[42].mxu1 %vm1491_vm7, %v4257_v45 }
0x1970   :  { %5375 = vmatprep.mubr.msk.f32.mxu1 %vm6248_vm4, %v6245_v6  ;;  %5980 = vmatpush3.bf16.msra.mxu1 %v5979_v36 }
0x1971   :  { %5981 = vmatprep.subr.bf16.mxu1 %v6247_v17 }
0x1974   :  { %5983 = vmatpush3.bf16.msra.mxu1 %v5982_v39 }
0x1a42   :  { %v4326_v14 = vpop.f32.mrb[42].mxu1 }
0x1a43   :  { %v4327_v50 = vadd.f32 %v4326_v14, %v8121_v1  ;;  %v5347_v21 = vpop.f32.mrb[43].mxu1  ;;  %v4367_v1 = vld [vmem:[%s8262_s14 + $0x10] sm:$0xff] }
0x1a44   :  { %v5970_v49 = vpack.c.bf16 %v4368_v56, %v4367_v1 }
0x1a45   :  { %v4334_v51 = vadd.f32 %v4333_v48, %v4327_v50  ;;  %v4472_v48 = vrot.slane %v8170_v46, %v4471_v42 }
0x1a46   :  { %5971 = vmatpush3.bf16.msra.mxu0 %v5970_v49 }
0x1a47   :  { %v4335_v28 = vsel %vm1589_vm6, %v4334_v51, 0.0  ;;  %5972 = vmatprep.subr.bf16.mxu0 %v6247_v17 }
0x1a48   :  { %4336 = vadd.xlane.f32.xlu0 %v4335_v28 }
0x1a4a   :  { %5974 = vmatpush3.bf16.msra.mxu0 %v5973_v57 }
0x1a4b   :  { %5975 = vmatprep.subr.bf16.mxu0 %v6247_v17 }
0x1a4e   :  { %5977 = vmatpush3.bf16.msra.mxu0 %v5976_v2 }
0x1ad5   :  { %v4337_v29 = vpop.xlane.xlu0 %4336 }
0x1ad6   :  { %v4339_v52 = vmul.f32 0.015625, %v4337_v29 }
0x1ad8   :  { %v4340_v54 = vsub.f32 %v4334_v51, %v4339_v52  ;;  %v4486_v52 = vsub.s32 6, %v6484_v4 }
0x1ada   :  { %v4341_v6 = vmul.f32 %v4340_v54, %v4340_v54 }
0x1adc   :  { %v4342_v55 = vsel %vm1589_vm6, %v4341_v6, 0.0 }
0x1add   :  { %4343 = vadd.xlane.f32.xlu1 %v4342_v55 }
0x1b6a   :  { %v4344_v63 = vpop.xlane.xlu1 %4343 }
0x1b6b   :  { %v4345_v22 = vmul.f32 0.015625, %v4344_v63 }
0x1b6d   :  { %v4346_v11 = vadd.f32 1e-05, %v4345_v22 }
0x1b6f   :  { %6213 = vrsqrt.f32 %v4346_v11 }
0x1b79   :  { %v6214_v41 = vpop.eup %6213 }
0x1b7a   :  { %v4348_v19 = vmul.f32 %v6214_v41, %v4340_v54  ;;  %v4487_v54 = vrot.slane %v8170_v46, %v4486_v52 }
0x1b7c   :  { %v4353_v20 = vmul.f32 %v4352_v10, %v4348_v19 }
0x1b7e   :  { %v4358_v25 = vadd.f32 %v4357_v5, %v4353_v20 }
0x1b80   :  { %v4360_v24 = vmin.f32 %v4358_v25, 0.0  ;;  %vm4359_vm6 = vcmp.gt.f32.partialorder %v4358_v25, 0.0 }
0x1b82   :  { %v4361_v27 = vmul.f32 1.442695, %v4360_v24 }
0x1b84   :  { %6215 = vpow2.f32 %v4361_v27 }
0x1b8e   :  { %v6216_v15 = vpop.eup %6215 }
0x1b8f   :  { %v4828_v13 = vadd.f32 -1.0, %v6216_v15 }
0x1b91   :  { %v4364_v3 = vsel %vm4359_vm6, %v4358_v25, %v4828_v13 }
0x1b92   :  { %5365 = vmatmul.mubr.msk.f32.vlgmr.msra.gmra.mrb[50].mxu0 %vm1491_vm7, %v4364_v3 }
0x1c65   :  { %v4446_v30 = vpop.f32.mrb[50].mxu0 }
0x1c66   :  { %v4447_v31 = vadd.f32 %v4446_v30, %v4376_v12  ;;  %v5366_v32 = vpop.f32.mrb[51].mxu0 }
0x1c68   :  { %v4450_v7 = vsel %vm975_vm2, %v4447_v31, 0.0 }
0x1c69   :  { %4451 = vadd.xlane.f32.xlu0 %v4450_v7 }
0x1cf6   :  { %v4452_v37 = vpop.xlane.xlu0 %4451 }
0x1cf7   :  { %v4454_v33 = vmul.f32 0.03125, %v4452_v37 }
0x1cf9   :  { %v4455_v34 = vsub.f32 %v4447_v31, %v4454_v33 }
0x1cfb   :  { %v4456_v18 = vmul.f32 %v4455_v34, %v4455_v34 }
0x1cfd   :  { %v4457_v26 = vsel %vm975_vm2, %v4456_v18, 0.0 }
0x1cfe   :  { %4458 = vadd.xlane.f32.xlu0 %v4457_v26 }
0x1d8b   :  { %v4459_v40 = vpop.xlane.xlu0 %4458 }
0x1d8c   :  { %v4460_v62 = vmul.f32 0.03125, %v4459_v40 }
0x1d8e   :  { %v4461_v0 = vadd.f32 1e-05, %v4460_v62 }
0x1d90   :  { %6217 = vrsqrt.f32 %v4461_v0 }
0x1d9a   :  { %v6218_v44 = vpop.eup %6217 }
0x1d9b   :  { %v4463_v45 = vmul.f32 %v6218_v44, %v4455_v34 }
0x1d9d   :  { %v4468_v14 = vmul.f32 %v4467_v43, %v4463_v45 }
0x1d9f   :  { %v4473_v50 = vadd.f32 %v4472_v48, %v4468_v14 }
0x1da1   :  { %v4475_v21 = vmin.f32 %v4473_v50, 0.0  ;;  %vm4474_vm2 = vcmp.gt.f32.partialorder %v4473_v50, 0.0 }
0x1da3   :  { %v4476_v51 = vmul.f32 1.442695, %v4475_v21 }
0x1da5   :  { %6219 = vpow2.f32 %v4476_v51 }
0x1daf   :  { %v6220_v17 = vpop.eup %6219 }
0x1db0   :  { %v4830_v28 = vadd.f32 -1.0, %v6220_v17 }
0x1db2   :  { %v4479_v29 = vsel %vm4474_vm2, %v4473_v50, %v4830_v28 }
0x1db3   :  { %5376 = vmatmul.mubr.msk.f32.vlgmr.msra.gmra.mrb[44].mxu1 %vm978_vm5, %v4479_v29 }
0x1e86   :  { %v4557_v6 = vpop.f32.mrb[44].mxu1 }
0x1e87   :  { %v4558_v55 = vadd.f32 %v4557_v6, %v4487_v54  ;;  %v5377_v16 = vpop.f32.mrb[45].mxu1 }
0x1e89   :  { %4561 = vst.msk [vmem:[#allocation5] sm:$0x3] %vm73_vm1, %v4558_v55 }
0x1e8a   :  { %6232 = shalt.err (!%p6229_p4)
}
0x1e8b   :  { %s6233_s23 = scalar_lea.hbm %s8265_s17, 32 }
0x1e8c   :  { %p6234_p5 = scmp.ne.s32.totalorder %s8265_s17, %s6233_s23  ;;  %p6237_p6 = scmp.lt.u32.totalorder %s6233_s23, %s8265_s17 }
0x1e8e   :  { %p6239_p7 = pnand %p6237_p6, %p6234_p5 }
0x1e90   :  { %6242 = shalt.err (!%p6239_p7)
}
0x1e91   :  { %4571 = dma.vmem_to_hbm [thread:$0]  %s4569_s4, 32, %s8265_s17, [#allocation6]  }
0x1e92   :  { %6243 = dma.done.wait [#allocation6], 32  }
0x1e93   :  { %6244 = vsyncadd [#allocation6], 4294967264 }
0x1e94   :  { %4575 = vsyncpa [#allocation6], 1 }

</bundles_post_ra>
